<compile_context>
chip_gen: v7x
topology: tpu7x:2x2x1
jax: 0.10.0
libtpu: 0.0.40
codegen_flags: <defaults>
</compile_context>

<pallas_src>
import jax
import jax.numpy as jnp
from jax import lax
from jax.experimental import pallas as pl
from jax.experimental.pallas import tpu as pltpu


# ----------------------------- fused Pallas kernel -----------------------------

def _build_abcdm_kernel(S, B, H, F, filter_sizes):
    """Fused ABCDM kernel for static (seq_len, batch, hidden, n_filters, filter_sizes)."""
    nfs = len(filter_sizes)
    max_fs = max(filter_sizes)
    H2, H4, H5, H6, H7 = 2 * H, 4 * H, 5 * H, 6 * H, 7 * H

    def kernel(ids_ref, emb_ref,
               wih_ref, bin_ref, whh_ref, brec_ref,
               w1_ref, b1_ref, w2_ref, b2_ref,
               wc_ref, bc_ref,
               bng_ref, bnb_ref, bnm_ref, bnv_ref,
               fc1w_ref, fc1b_ref, fc2w_ref, fc2b_ref,
               out_ref,
               hs_l, hs_g):
        f32 = jnp.float32
        bf16 = jnp.bfloat16
        V = emb_ref.shape[0]
        NH = w2_ref.shape[1]                                    # 30 attention hops

        # ---- embedding lookup fused as a one-hot matmul (V is tiny); exact gather ----
        ids = ids_ref[...]                                      # (S*B, 1), rows time-major t*B+b
        onehot = (ids == lax.broadcasted_iota(jnp.int32, (S * B, V), 1)).astype(f32)
        x2 = jnp.dot(onehot, emb_ref[...], preferred_element_type=f32)          # (S*B, E)

        # ---- ONE fused input projection for all 4 RNN directions ----
        # lanes: [fwd block | bwd block]; within each 7H block gate order = [i f o r z g n]
        proj = jnp.dot(x2.astype(bf16), wih_ref[...].astype(bf16),
                       preferred_element_type=f32) + bin_ref[...]               # (S*B, 14H)

        whh = whh_ref[...].astype(bf16)                         # block-diag (4H, 14H)
        brec = brec_ref[...]                                    # GRU hidden biases (LSTM cols 0)

        h_cat = jnp.zeros((B, H4), f32)                         # [h_lf | h_lb | h_gf | h_gb]
        c_l = [jnp.zeros((B, H), f32), jnp.zeros((B, H), f32)]  # LSTM cell state (fwd, bwd)

        for t in range(S):
            # ONE recurrent matmul per step covers LSTM fwd/bwd + GRU fwd/bwd.
            rec = jnp.dot(h_cat.astype(bf16), whh, preferred_element_type=f32) + brec   # (B,14H)
            new_h = [None] * 4
            for d, step in ((0, t), (1, S - 1 - t)):            # d=0 forward, d=1 backward
                off = d * H7
                p = proj[step * B:(step + 1) * B, off:off + H7]                  # (B, 7H)
                r = rec[:, off:off + H7]
                pre = p[:, :H6] + r[:, :H6]
                sg = jax.nn.sigmoid(pre[:, :H5])                # one wide sigmoid: i,f,o,r,z
                i_, f_, o_ = sg[:, 0:H], sg[:, H:2 * H], sg[:, 2 * H:3 * H]
                rg, zg = sg[:, 3 * H:4 * H], sg[:, 4 * H:H5]
                g_ = jnp.tanh(pre[:, H5:H6])
                n_ = jnp.tanh(p[:, H6:H7] + rg * r[:, H6:H7])   # GRU n-gate (PyTorch form)
                c_new = f_ * c_l[d] + i_ * g_
                h_lstm = o_ * jnp.tanh(c_new)
                h_gru = (1.0 - zg) * n_ + zg * h_cat[:, (2 + d) * H:(3 + d) * H]
                c_l[d] = c_new
                new_h[d] = h_lstm
                new_h[2 + d] = h_gru
                # hidden-state slabs (batch-major rows b*S + time); these stores are off
                # the recurrence's serial dependency chain.
                c0 = d * H
                for b in range(B):
                    row = b * S + step
                    hs_l[row:row + 1, c0:c0 + H] = h_lstm[b:b + 1, :]
                    hs_g[row:row + 1, c0:c0 + H] = h_gru[b:b + 1, :]
            h_cat = jnp.concatenate(new_h, axis=-1)             # (B, 4H)

        # ---- self-attention: projections batched over BOTH branches and all examples ----
        LG = jnp.concatenate([hs_l[...], hs_g[...]], axis=0)    # (2*B*S, 2H); S-row segments
        s1 = jnp.tanh(jnp.dot(LG.astype(bf16), w1_ref[...].astype(bf16),
                              preferred_element_type=f32) + b1_ref[...])        # (2BS, 350)
        att = jnp.dot(s1.astype(bf16), w2_ref[...].astype(bf16),
                      preferred_element_type=f32) + b2_ref[...]                 # (2BS, 30)

        hid_parts = []
        for n in range(2 * B):                                  # n = branch*B + example
            z = att[n * S:(n + 1) * S, :]                       # (S, 30)
            z = z - jnp.max(z, axis=0, keepdims=True)
            e = jnp.exp(z)
            aw = e / jnp.sum(e, axis=0, keepdims=True)          # softmax over the sequence
            xn = LG[n * S:(n + 1) * S, :]                       # (S, 2H)
            # attn^T @ x without materialising an explicit transpose
            hid_parts.append(lax.dot_general(aw, xn, (((0,), (0,)), ((), ())),
                                             preferred_element_type=f32))       # (30, 2H)
        hid = jnp.concatenate(hid_parts, axis=0)                # (2*B*30, 2H): lstm ex0.., gru ex0..

        # ---- all Conv1d's (both branches, all filter sizes) as ONE im2col matmul ----
        Ltot = 2 * B * NH
        hid_pad = jnp.concatenate([hid, jnp.zeros((max_fs - 1, H2), f32)], axis=0)
        win = jnp.concatenate([hid_pad[k:k + Ltot, :] for k in range(max_fs)], axis=-1)
        conv = jnp.dot(win.astype(bf16), wc_ref[...].astype(bf16),
                       preferred_element_type=f32) + bc_ref[...]                # (Ltot, 2*nfs*F)
        # conv columns: [convs_1 fs0 | convs_1 fs1 | ... | convs_2 fs0 | ...]

        pmax, pavg = [], []
        for i, fs in enumerate(filter_sizes):
            lout = NH - fs + 1
            mrows, arows = [], []
            for n in range(2 * B):
                seg = conv[n * NH:n * NH + lout, :]             # only this example's valid rows
                mrows.append(jnp.max(seg, axis=0, keepdims=True))
                arows.append(jnp.sum(seg, axis=0, keepdims=True) * (1.0 / lout))
            pmax.append(jnp.concatenate(mrows, axis=0))         # (2B, 2*nfs*F)
            pavg.append(jnp.concatenate(arows, axis=0))

        # pooled (B, 8F=128) lane-dense; order matches
        # torch.cat((lstm_max, lstm_avg, gru_max, gru_avg), dim=1)
        lstm_max = jnp.concatenate([pmax[i][0:B, i * F:(i + 1) * F] for i in range(nfs)], axis=-1)
        lstm_avg = jnp.concatenate([pavg[i][0:B, i * F:(i + 1) * F] for i in range(nfs)], axis=-1)
        gru_max = jnp.concatenate(
            [pmax[i][B:2 * B, (nfs + i) * F:(nfs + i + 1) * F] for i in range(nfs)], axis=-1)
        gru_avg = jnp.concatenate(
            [pavg[i][B:2 * B, (nfs + i) * F:(nfs + i + 1) * F] for i in range(nfs)], axis=-1)
        pooled = jnp.concatenate([lstm_max, lstm_avg, gru_max, gru_avg], axis=-1)   # (B, 8F)

        # ---- BatchNorm1d (eval) -> ReLU -> Linear -> Linear ----
        inv = lax.rsqrt(bnv_ref[...] + 1e-5)
        xn_ = (pooled - bnm_ref[...]) * inv * bng_ref[...] + bnb_ref[...]
        hfc = jnp.maximum(xn_, 0.0)
        hfc = jnp.dot(hfc, fc1w_ref[...], preferred_element_type=f32) + fc1b_ref[...]
        out_ref[...] = jnp.dot(hfc, fc2w_ref[...], preferred_element_type=f32) + fc2b_ref[...]

    return kernel


# ----------------------------- weight packing (wrapper side) -----------------------------

def _pack_rnn_weights(params, H):
    """Fuse per-direction LSTM/GRU weights into single lane-concatenated operands.

    14H columns = [fwd block | bwd block]; within each 7H block the gate order is
    [i, f, o, r, z, g, n] (i,f,o,g = LSTM, r,z,n = GRU) so all sigmoid gates of a
    direction are lane-contiguous.  PyTorch source orders: LSTM [i,f,g,o], GRU [r,z,n].
    """
    zH = jnp.zeros((H, H), jnp.float32)
    zb = jnp.zeros((1, H), jnp.float32)
    z7 = jnp.zeros((H, 7 * H), jnp.float32)

    def in_block(lp, gp):
        wl, wg = lp['wih_t'], gp['wih_t']
        return jnp.concatenate([wl[:, 0:H], wl[:, H:2 * H], wl[:, 3 * H:4 * H],
                                wg[:, 0:H], wg[:, H:2 * H],
                                wl[:, 2 * H:3 * H], wg[:, 2 * H:3 * H]], axis=-1)

    def in_bias_block(lp, gp):
        bl, bg = lp['b'], gp['bih']
        return jnp.concatenate([bl[:, 0:H], bl[:, H:2 * H], bl[:, 3 * H:4 * H],
                                bg[:, 0:H], bg[:, H:2 * H],
                                bl[:, 2 * H:3 * H], bg[:, 2 * H:3 * H]], axis=-1)

    def lstm_rec_block(wl):
        return jnp.concatenate([wl[:, 0:H], wl[:, H:2 * H], wl[:, 3 * H:4 * H],
                                zH, zH, wl[:, 2 * H:3 * H], zH], axis=-1)

    def gru_rec_block(wg):
        return jnp.concatenate([zH, zH, zH, wg[:, 0:H], wg[:, H:2 * H],
                                zH, wg[:, 2 * H:3 * H]], axis=-1)

    def rec_bias_block(bg):
        return jnp.concatenate([zb, zb, zb, bg[:, 0:H], bg[:, H:2 * H],
                                zb, bg[:, 2 * H:3 * H]], axis=-1)

    lf, lb = params['lstm']['fwd'], params['lstm']['bwd']
    gf, gb = params['gru']['fwd'], params['gru']['bwd']

    wih_all = jnp.concatenate([in_block(lf, gf), in_block(lb, gb)], axis=-1)        # (E, 14H)
    bin_all = jnp.concatenate([in_bias_block(lf, gf), in_bias_block(lb, gb)], axis=-1)
    whh_all = jnp.concatenate([                                                      # (4H, 14H)
        jnp.concatenate([lstm_rec_block(lf['whh_t']), z7], axis=-1),   # rows 0:H   <- h_lstm_fwd
        jnp.concatenate([z7, lstm_rec_block(lb['whh_t'])], axis=-1),   # rows H:2H  <- h_lstm_bwd
        jnp.concatenate([gru_rec_block(gf['whh_t']), z7], axis=-1),    # rows 2H:3H <- h_gru_fwd
        jnp.concatenate([z7, gru_rec_block(gb['whh_t'])], axis=-1),    # rows 3H:4H <- h_gru_bwd
    ], axis=0)
    brec_all = jnp.concatenate([rec_bias_block(gf['bhh']), rec_bias_block(gb['bhh'])], axis=-1)
    return wih_all, bin_all, whh_all, brec_all


def _pack_conv_weights(params, H, max_fs):
    """Zero-pad shorter im2col conv weights to max_fs*2H rows, lane-concat all convs."""
    def pad_w(w):
        need = max_fs * 2 * H - w.shape[0]
        if need == 0:
            return w
        return jnp.concatenate([w, jnp.zeros((need, w.shape[1]), jnp.float32)], axis=0)

    convs = list(params['convs_1']) + list(params['convs_2'])
    wc_all = jnp.concatenate([pad_w(c['w']) for c in convs], axis=-1)    # (max_fs*2H, 2*nfs*F)
    bc_all = jnp.concatenate([c['b'] for c in convs], axis=-1)           # (1, 2*nfs*F)
    return wc_all, bc_all


# ----------------------------- forward wrapper -----------------------------

def abcdm_forward(params, ids):
    """ids: (B, S) int32 token ids -> (B, output_size) logits (eval mode)."""
    B, S = ids.shape
    H = params['lstm']['fwd']['whh_t'].shape[0]
    H2 = 2 * H
    F = params['convs_1'][0]['w'].shape[1]
    O = params['fc2_t'].shape[1]
    filter_sizes = tuple(c['w'].shape[0] // H2 for c in params['convs_1'])
    max_fs = max(filter_sizes)

    # Tiny weight fusions (a few KB of concats) traced into the surrounding jit.
    wih_all, bin_all, whh_all, brec_all = _pack_rnn_weights(params, H)
    wc_all, bc_all = _pack_conv_weights(params, H, max_fs)

    # time-major rows (t*B + b) so each recurrence step reads a contiguous block
    ids_tm = jnp.transpose(ids).reshape(S * B, 1).astype(jnp.int32)

    bn = params['bn']
    kernel = _build_abcdm_kernel(S=S, B=B, H=H, F=F, filter_sizes=filter_sizes)
    # TODO(synk): for large batch add a 'parallel' batch-tile grid axis (v7x second
    #             TensorCore) and chunk the time axis if proj slabs outgrow 64 MiB VMEM;
    #             at B=2/S=8 the recurrence is latency-bound and a grid only adds overhead.
    return pl.pallas_call(
        kernel,
        out_shape=jax.ShapeDtypeStruct((B, O), jnp.float32),
        scratch_shapes=[pltpu.VMEM((B * S, H2), jnp.float32),     # LSTM hidden-state slab
                        pltpu.VMEM((B * S, H2), jnp.float32)],    # GRU  hidden-state slab
        compiler_params=pltpu.CompilerParams(vmem_limit_bytes=32 * 1024 * 1024),
    )(ids_tm, params['embedding'],
      wih_all, bin_all, whh_all, brec_all,
      params['w_s1_t'], params['b_s1'], params['w_s2_t'], params['b_s2'],
      wc_all, bc_all,
      bn['gamma'], bn['beta'], bn['mean'], bn['var'],
      params['fc1_t'], params['fc1_b'], params['fc2_t'], params['fc2_b'])


# ----------------------------- parameters -----------------------------

def init_params(key, cfg):
    E, H = cfg['embedding_dim'], cfg['lstm_hidden_dim']
    V, F = cfg['vocab_size'], cfg['n_filters']
    ks = iter(jax.random.split(key, 64))

    def nrm(shape, scale=0.1):
        return (scale * jax.random.normal(next(ks), shape)).astype(jnp.float32)

    emb = nrm((V, E)).at[cfg['pad_idx']].set(0.0)                      # padding_idx row is zero
    p = {'embedding': emb}

    # LSTM / GRU weights stored pre-transposed: (E, G*H), (H, G*H); biases (1, G*H).
    # LSTM bias b is the sum of PyTorch's bias_ih + bias_hh; GRU keeps them separate
    # (bias_hh must stay on the recurrent side because of the r-gated n gate).
    p['lstm'] = {d: dict(wih_t=nrm((E, 4 * H)), whh_t=nrm((H, 4 * H)), b=nrm((1, 4 * H)))
                 for d in ('fwd', 'bwd')}
    p['gru'] = {d: dict(wih_t=nrm((E, 3 * H)), whh_t=nrm((H, 3 * H)),
                        bih=nrm((1, 3 * H)), bhh=nrm((1, 3 * H)))
                for d in ('fwd', 'bwd')}

    p['w_s1_t'] = nrm((2 * H, 350))
    p['b_s1'] = nrm((1, 350))
    p['w_s2_t'] = nrm((350, 30))
    p['b_s2'] = nrm((1, 30))

    # Conv1d weights stored as im2col matrices (fs*2H, F): w[k*2H + c, f] = torch_W[f, c, k].
    p['convs_1'] = [dict(w=nrm((fs * 2 * H, F)), b=nrm((1, F))) for fs in cfg['filter_sizes']]
    p['convs_2'] = [dict(w=nrm((fs * 2 * H, F)), b=nrm((1, F))) for fs in cfg['filter_sizes']]

    D = 8 * F
    p['bn'] = dict(gamma=jnp.ones((1, D), jnp.float32), beta=jnp.zeros((1, D), jnp.float32),
                   mean=jnp.zeros((1, D), jnp.float32), var=jnp.ones((1, D), jnp.float32))
    p['fc1_t'] = nrm((D, cfg['dense_units']))
    p['fc1_b'] = nrm((1, cfg['dense_units']))
    p['fc2_t'] = nrm((cfg['dense_units'], cfg['output_size']))
    p['fc2_b'] = nrm((1, cfg['output_size']))
    return p


if __name__ == "__main__":
    cfg = dict(vocab_size=50, embedding_dim=32, lstm_hidden_dim=32, lstm_layers=1,
               bidirectional=True, dropout=0.2, n_filters=16, filter_sizes=(2, 3),
               dense_units=32, output_size=4, pad_idx=0)
    key = jax.random.PRNGKey(0)
    pkey, dkey = jax.random.split(key)
    params = init_params(pkey, cfg)

    B, S = 2, 8
    ids = jax.random.randint(dkey, (B, S), 0, cfg['vocab_size'], dtype=jnp.int32)

    fwd = jax.jit(abcdm_forward)
    out = jax.block_until_ready(fwd(params, ids))
    assert out.shape == (B, cfg['output_size'])
    assert bool(jnp.all(jnp.isfinite(out)))
    print("KERNEL_OK")
</pallas_src>

<mosaic_0001>
module attributes {stable_mosaic.version = 11 : i64} {
  func.func @kernel(%arg0: memref<16x1xi32, #tpu.memory_space<vmem>>, %arg1: memref<50x32xf32, #tpu.memory_space<vmem>>, %arg2: memref<32x448xf32, #tpu.memory_space<vmem>>, %arg3: memref<1x448xf32, #tpu.memory_space<vmem>>, %arg4: memref<128x448xf32, #tpu.memory_space<vmem>>, %arg5: memref<1x448xf32, #tpu.memory_space<vmem>>, %arg6: memref<64x350xf32, #tpu.memory_space<vmem>>, %arg7: memref<1x350xf32, #tpu.memory_space<vmem>>, %arg8: memref<350x30xf32, #tpu.memory_space<vmem>>, %arg9: memref<1x30xf32, #tpu.memory_space<vmem>>, %arg10: memref<192x64xf32, #tpu.memory_space<vmem>>, %arg11: memref<1x64xf32, #tpu.memory_space<vmem>>, %arg12: memref<1x128xf32, #tpu.memory_space<vmem>>, %arg13: memref<1x128xf32, #tpu.memory_space<vmem>>, %arg14: memref<1x128xf32, #tpu.memory_space<vmem>>, %arg15: memref<1x128xf32, #tpu.memory_space<vmem>>, %arg16: memref<128x32xf32, #tpu.memory_space<vmem>>, %arg17: memref<1x32xf32, #tpu.memory_space<vmem>>, %arg18: memref<32x4xf32, #tpu.memory_space<vmem>>, %arg19: memref<1x4xf32, #tpu.memory_space<vmem>>, %arg20: memref<2x4xf32, #tpu.memory_space<vmem>>, %arg21: memref<16x64xf32, #tpu.memory_space<vmem>>, %arg22: memref<16x64xf32, #tpu.memory_space<vmem>>) attributes {dimension_semantics = [], scalar_prefetch = 0 : i64, scratch_operands = 2 : i64, tpu.core_type = #tpu.core_type<tc>} {
    %c0 = arith.constant 0 : index
    %c0_0 = arith.constant 0 : index
    %0 = vector.load %arg0[%c0, %c0_0] : memref<16x1xi32, #tpu.memory_space<vmem>>, vector<16x1xi32>
    %1 = tpu.iota {dimensions = array<i32: 1>} : vector<16x50xi32>
    %2 = vector.broadcast %0 : vector<16x1xi32> to vector<16x50xi32>
    %3 = arith.cmpi eq, %2, %1 : vector<16x50xi32>
    %4 = arith.extui %3 : vector<16x50xi1> to vector<16x50xi32>
    %5 = arith.sitofp %4 : vector<16x50xi32> to vector<16x50xf32>
    %c0_1 = arith.constant 0 : index
    %c0_2 = arith.constant 0 : index
    %6 = vector.load %arg1[%c0_1, %c0_2] : memref<50x32xf32, #tpu.memory_space<vmem>>, vector<50x32xf32>
    %cst = arith.constant dense<0.000000e+00> : vector<16x32xf32>
    %7 = tpu.matmul %5, %6, %cst {dimension_numbers = #tpu.dot_dimension_numbers<[1], [0], [0], [1], [0, 0, 1, 1], [], []>} : vector<16x50xf32>, vector<50x32xf32>, vector<16x32xf32> -> vector<16x32xf32>
    %8 = arith.truncf %7 : vector<16x32xf32> to vector<16x32xbf16>
    %c0_3 = arith.constant 0 : index
    %c0_4 = arith.constant 0 : index
    %9 = vector.load %arg2[%c0_3, %c0_4] : memref<32x448xf32, #tpu.memory_space<vmem>>, vector<32x448xf32>
    %10 = arith.truncf %9 : vector<32x448xf32> to vector<32x448xbf16>
    %cst_5 = arith.constant dense<0.000000e+00> : vector<16x448xf32>
    %11 = tpu.matmul %8, %10, %cst_5 {dimension_numbers = #tpu.dot_dimension_numbers<[1], [0], [0], [1], [0, 0, 1, 1], [], []>} : vector<16x32xbf16>, vector<32x448xbf16>, vector<16x448xf32> -> vector<16x448xf32>
    %c0_6 = arith.constant 0 : index
    %c0_7 = arith.constant 0 : index
    %12 = vector.load %arg3[%c0_6, %c0_7] : memref<1x448xf32, #tpu.memory_space<vmem>>, vector<1x448xf32>
    %13 = vector.broadcast %12 : vector<1x448xf32> to vector<16x448xf32>
    %14 = arith.addf %11, %13 : vector<16x448xf32>
    %c0_8 = arith.constant 0 : index
    %c0_9 = arith.constant 0 : index
    %15 = vector.load %arg4[%c0_8, %c0_9] : memref<128x448xf32, #tpu.memory_space<vmem>>, vector<128x448xf32>
    %16 = arith.truncf %15 : vector<128x448xf32> to vector<128x448xbf16>
    %c0_10 = arith.constant 0 : index
    %c0_11 = arith.constant 0 : index
    %17 = vector.load %arg5[%c0_10, %c0_11] : memref<1x448xf32, #tpu.memory_space<vmem>>, vector<1x448xf32>
    %cst_12 = arith.constant 0.000000e+00 : f32
    %18 = vector.broadcast %cst_12 : f32 to vector<2x128xf32>
    %cst_13 = arith.constant 0.000000e+00 : f32
    %19 = vector.broadcast %cst_13 : f32 to vector<2x32xf32>
    %cst_14 = arith.constant 0.000000e+00 : f32
    %20 = vector.broadcast %cst_14 : f32 to vector<2x32xf32>
    %21 = arith.truncf %18 : vector<2x128xf32> to vector<2x128xbf16>
    %cst_15 = arith.constant dense<0.000000e+00> : vector<2x448xf32>
    %22 = tpu.matmul %21, %16, %cst_15 {dimension_numbers = #tpu.dot_dimension_numbers<[1], [0], [0], [1], [0, 0, 1, 1], [], []>} : vector<2x128xbf16>, vector<128x448xbf16>, vector<2x448xf32> -> vector<2x448xf32>
    %23 = vector.broadcast %17 : vector<1x448xf32> to vector<2x448xf32>
    %24 = arith.addf %22, %23 : vector<2x448xf32>
    %25 = vector.extract_strided_slice %14 {offsets = [0, 0], sizes = [2, 224], strides = [1, 1]} : vector<16x448xf32> to vector<2x224xf32>
    %26 = vector.extract_strided_slice %24 {offsets = [0, 0], sizes = [2, 224], strides = [1, 1]} : vector<2x448xf32> to vector<2x224xf32>
    %27 = vector.extract_strided_slice %25 {offsets = [0, 0], sizes = [2, 192], strides = [1, 1]} : vector<2x224xf32> to vector<2x192xf32>
    %28 = vector.extract_strided_slice %26 {offsets = [0, 0], sizes = [2, 192], strides = [1, 1]} : vector<2x224xf32> to vector<2x192xf32>
    %29 = arith.addf %27, %28 : vector<2x192xf32>
    %30 = vector.extract_strided_slice %29 {offsets = [0, 0], sizes = [2, 160], strides = [1, 1]} : vector<2x192xf32> to vector<2x160xf32>
    %31 = arith.negf %30 : vector<2x160xf32>
    %32 = math.exp %31 : vector<2x160xf32>
    %cst_16 = arith.constant 1.000000e+00 : f32
    %33 = vector.broadcast %cst_16 : f32 to vector<2x160xf32>
    %34 = arith.addf %33, %32 : vector<2x160xf32>
    %35 = arith.divf %33, %34 : vector<2x160xf32>
    %36 = vector.extract_strided_slice %35 {offsets = [0, 0], sizes = [2, 32], strides = [1, 1]} : vector<2x160xf32> to vector<2x32xf32>
    %37 = vector.extract_strided_slice %35 {offsets = [0, 32], sizes = [2, 32], strides = [1, 1]} : vector<2x160xf32> to vector<2x32xf32>
    %38 = vector.extract_strided_slice %35 {offsets = [0, 64], sizes = [2, 32], strides = [1, 1]} : vector<2x160xf32> to vector<2x32xf32>
    %39 = vector.extract_strided_slice %35 {offsets = [0, 96], sizes = [2, 32], strides = [1, 1]} : vector<2x160xf32> to vector<2x32xf32>
    %40 = vector.extract_strided_slice %35 {offsets = [0, 128], sizes = [2, 32], strides = [1, 1]} : vector<2x160xf32> to vector<2x32xf32>
    %41 = vector.extract_strided_slice %29 {offsets = [0, 160], sizes = [2, 32], strides = [1, 1]} : vector<2x192xf32> to vector<2x32xf32>
    %42 = math.tanh %41 : vector<2x32xf32>
    %43 = vector.extract_strided_slice %25 {offsets = [0, 192], sizes = [2, 32], strides = [1, 1]} : vector<2x224xf32> to vector<2x32xf32>
    %44 = vector.extract_strided_slice %26 {offsets = [0, 192], sizes = [2, 32], strides = [1, 1]} : vector<2x224xf32> to vector<2x32xf32>
    %45 = arith.mulf %39, %44 : vector<2x32xf32>
    %46 = arith.addf %43, %45 : vector<2x32xf32>
    %47 = math.tanh %46 : vector<2x32xf32>
    %48 = arith.mulf %37, %19 : vector<2x32xf32>
    %49 = arith.mulf %36, %42 : vector<2x32xf32>
    %50 = arith.addf %48, %49 : vector<2x32xf32>
    %51 = math.tanh %50 : vector<2x32xf32>
    %52 = arith.mulf %38, %51 : vector<2x32xf32>
    %cst_17 = arith.constant 1.000000e+00 : f32
    %53 = vector.broadcast %cst_17 : f32 to vector<2x32xf32>
    %54 = arith.subf %53, %40 : vector<2x32xf32>
    %55 = arith.mulf %54, %47 : vector<2x32xf32>
    %56 = vector.extract_strided_slice %18 {offsets = [0, 64], sizes = [2, 32], strides = [1, 1]} : vector<2x128xf32> to vector<2x32xf32>
    %57 = arith.mulf %40, %56 : vector<2x32xf32>
    %58 = arith.addf %55, %57 : vector<2x32xf32>
    %59 = vector.extract_strided_slice %52 {offsets = [0, 0], sizes = [1, 32], strides = [1, 1]} : vector<2x32xf32> to vector<1x32xf32>
    %c0_18 = arith.constant 0 : index
    %c0_19 = arith.constant 0 : index
    %60 = vector.load %arg21[%c0_18, %c0_19] : memref<16x64xf32, #tpu.memory_space<vmem>>, vector<1x32xf32>
    tpu.vector_store %arg21[%c0_18, %c0_19], %59 {strides = array<i32>} : memref<16x64xf32, #tpu.memory_space<vmem>>, vector<1x32xf32>,
    %61 = vector.extract_strided_slice %58 {offsets = [0, 0], sizes = [1, 32], strides = [1, 1]} : vector<2x32xf32> to vector<1x32xf32>
    %c0_20 = arith.constant 0 : index
    %c0_21 = arith.constant 0 : index
    %62 = vector.load %arg22[%c0_20, %c0_21] : memref<16x64xf32, #tpu.memory_space<vmem>>, vector<1x32xf32>
    tpu.vector_store %arg22[%c0_20, %c0_21], %61 {strides = array<i32>} : memref<16x64xf32, #tpu.memory_space<vmem>>, vector<1x32xf32>,
    %63 = vector.extract_strided_slice %52 {offsets = [1, 0], sizes = [1, 32], strides = [1, 1]} : vector<2x32xf32> to vector<1x32xf32>
    %c8 = arith.constant 8 : index
    %c0_22 = arith.constant 0 : index
    %64 = vector.load %arg21[%c8, %c0_22] : memref<16x64xf32, #tpu.memory_space<vmem>>, vector<1x32xf32>
    tpu.vector_store %arg21[%c8, %c0_22], %63 {strides = array<i32>} : memref<16x64xf32, #tpu.memory_space<vmem>>, vector<1x32xf32>,
    %65 = vector.extract_strided_slice %58 {offsets = [1, 0], sizes = [1, 32], strides = [1, 1]} : vector<2x32xf32> to vector<1x32xf32>
    %c8_23 = arith.constant 8 : index
    %c0_24 = arith.constant 0 : index
    %66 = vector.load %arg22[%c8_23, %c0_24] : memref<16x64xf32, #tpu.memory_space<vmem>>, vector<1x32xf32>
    tpu.vector_store %arg22[%c8_23, %c0_24], %65 {strides = array<i32>} : memref<16x64xf32, #tpu.memory_space<vmem>>, vector<1x32xf32>,
    %67 = vector.extract_strided_slice %14 {offsets = [14, 224], sizes = [2, 224], strides = [1, 1]} : vector<16x448xf32> to vector<2x224xf32>
    %68 = vector.extract_strided_slice %24 {offsets = [0, 224], sizes = [2, 224], strides = [1, 1]} : vector<2x448xf32> to vector<2x224xf32>
    %69 = vector.extract_strided_slice %67 {offsets = [0, 0], sizes = [2, 192], strides = [1, 1]} : vector<2x224xf32> to vector<2x192xf32>
    %70 = vector.extract_strided_slice %68 {offsets = [0, 0], sizes = [2, 192], strides = [1, 1]} : vector<2x224xf32> to vector<2x192xf32>
    %71 = arith.addf %69, %70 : vector<2x192xf32>
    %72 = vector.extract_strided_slice %71 {offsets = [0, 0], sizes = [2, 160], strides = [1, 1]} : vector<2x192xf32> to vector<2x160xf32>
    %73 = arith.negf %72 : vector<2x160xf32>
    %74 = math.exp %73 : vector<2x160xf32>
    %cst_25 = arith.constant 1.000000e+00 : f32
    %75 = vector.broadcast %cst_25 : f32 to vector<2x160xf32>
    %76 = arith.addf %75, %74 : vector<2x160xf32>
    %77 = arith.divf %75, %76 : vector<2x160xf32>
    %78 = vector.extract_strided_slice %77 {offsets = [0, 0], sizes = [2, 32], strides = [1, 1]} : vector<2x160xf32> to vector<2x32xf32>
    %79 = vector.extract_strided_slice %77 {offsets = [0, 32], sizes = [2, 32], strides = [1, 1]} : vector<2x160xf32> to vector<2x32xf32>
    %80 = vector.extract_strided_slice %77 {offsets = [0, 64], sizes = [2, 32], strides = [1, 1]} : vector<2x160xf32> to vector<2x32xf32>
    %81 = vector.extract_strided_slice %77 {offsets = [0, 96], sizes = [2, 32], strides = [1, 1]} : vector<2x160xf32> to vector<2x32xf32>
    %82 = vector.extract_strided_slice %77 {offsets = [0, 128], sizes = [2, 32], strides = [1, 1]} : vector<2x160xf32> to vector<2x32xf32>
    %83 = vector.extract_strided_slice %71 {offsets = [0, 160], sizes = [2, 32], strides = [1, 1]} : vector<2x192xf32> to vector<2x32xf32>
    %84 = math.tanh %83 : vector<2x32xf32>
    %85 = vector.extract_strided_slice %67 {offsets = [0, 192], sizes = [2, 32], strides = [1, 1]} : vector<2x224xf32> to vector<2x32xf32>
    %86 = vector.extract_strided_slice %68 {offsets = [0, 192], sizes = [2, 32], strides = [1, 1]} : vector<2x224xf32> to vector<2x32xf32>
    %87 = arith.mulf %81, %86 : vector<2x32xf32>
    %88 = arith.addf %85, %87 : vector<2x32xf32>
    %89 = math.tanh %88 : vector<2x32xf32>
    %90 = arith.mulf %79, %20 : vector<2x32xf32>
    %91 = arith.mulf %78, %84 : vector<2x32xf32>
    %92 = arith.addf %90, %91 : vector<2x32xf32>
    %93 = math.tanh %92 : vector<2x32xf32>
    %94 = arith.mulf %80, %93 : vector<2x32xf32>
    %cst_26 = arith.constant 1.000000e+00 : f32
    %95 = vector.broadcast %cst_26 : f32 to vector<2x32xf32>
    %96 = arith.subf %95, %82 : vector<2x32xf32>
    %97 = arith.mulf %96, %89 : vector<2x32xf32>
    %98 = vector.extract_strided_slice %18 {offsets = [0, 96], sizes = [2, 32], strides = [1, 1]} : vector<2x128xf32> to vector<2x32xf32>
    %99 = arith.mulf %82, %98 : vector<2x32xf32>
    %100 = arith.addf %97, %99 : vector<2x32xf32>
    %101 = vector.extract_strided_slice %94 {offsets = [0, 0], sizes = [1, 32], strides = [1, 1]} : vector<2x32xf32> to vector<1x32xf32>
    %c7 = arith.constant 7 : index
    %c32 = arith.constant 32 : index
    %102 = vector.load %arg21[%c7, %c32] : memref<16x64xf32, #tpu.memory_space<vmem>>, vector<1x32xf32>
    tpu.vector_store %arg21[%c7, %c32], %101 {strides = array<i32>} : memref<16x64xf32, #tpu.memory_space<vmem>>, vector<1x32xf32>,
    %103 = vector.extract_strided_slice %100 {offsets = [0, 0], sizes = [1, 32], strides = [1, 1]} : vector<2x32xf32> to vector<1x32xf32>
    %c7_27 = arith.constant 7 : index
    %c32_28 = arith.constant 32 : index
    %104 = vector.load %arg22[%c7_27, %c32_28] : memref<16x64xf32, #tpu.memory_space<vmem>>, vector<1x32xf32>
    tpu.vector_store %arg22[%c7_27, %c32_28], %103 {strides = array<i32>} : memref<16x64xf32, #tpu.memory_space<vmem>>, vector<1x32xf32>,
    %105 = vector.extract_strided_slice %94 {offsets = [1, 0], sizes = [1, 32], strides = [1, 1]} : vector<2x32xf32> to vector<1x32xf32>
    %c15 = arith.constant 15 : index
    %c32_29 = arith.constant 32 : index
    %106 = vector.load %arg21[%c15, %c32_29] : memref<16x64xf32, #tpu.memory_space<vmem>>, vector<1x32xf32>
    tpu.vector_store %arg21[%c15, %c32_29], %105 {strides = array<i32>} : memref<16x64xf32, #tpu.memory_space<vmem>>, vector<1x32xf32>,
    %107 = vector.extract_strided_slice %100 {offsets = [1, 0], sizes = [1, 32], strides = [1, 1]} : vector<2x32xf32> to vector<1x32xf32>
    %c15_30 = arith.constant 15 : index
    %c32_31 = arith.constant 32 : index
    %108 = vector.load %arg22[%c15_30, %c32_31] : memref<16x64xf32, #tpu.memory_space<vmem>>, vector<1x32xf32>
    tpu.vector_store %arg22[%c15_30, %c32_31], %107 {strides = array<i32>} : memref<16x64xf32, #tpu.memory_space<vmem>>, vector<1x32xf32>,
    %109 = tpu.concatenate %52, %94, %58, %100 in 1 : vector<2x32xf32>, vector<2x32xf32>, vector<2x32xf32>, vector<2x32xf32> -> vector<2x128xf32>
    %110 = arith.truncf %109 : vector<2x128xf32> to vector<2x128xbf16>
    %cst_32 = arith.constant dense<0.000000e+00> : vector<2x448xf32>
    %111 = tpu.matmul %110, %16, %cst_32 {dimension_numbers = #tpu.dot_dimension_numbers<[1], [0], [0], [1], [0, 0, 1, 1], [], []>} : vector<2x128xbf16>, vector<128x448xbf16>, vector<2x448xf32> -> vector<2x448xf32>
    %112 = vector.broadcast %17 : vector<1x448xf32> to vector<2x448xf32>
    %113 = arith.addf %111, %112 : vector<2x448xf32>
    %114 = vector.extract_strided_slice %14 {offsets = [2, 0], sizes = [2, 224], strides = [1, 1]} : vector<16x448xf32> to vector<2x224xf32>
    %115 = vector.extract_strided_slice %113 {offsets = [0, 0], sizes = [2, 224], strides = [1, 1]} : vector<2x448xf32> to vector<2x224xf32>
    %116 = vector.extract_strided_slice %114 {offsets = [0, 0], sizes = [2, 192], strides = [1, 1]} : vector<2x224xf32> to vector<2x192xf32>
    %117 = vector.extract_strided_slice %115 {offsets = [0, 0], sizes = [2, 192], strides = [1, 1]} : vector<2x224xf32> to vector<2x192xf32>
    %118 = arith.addf %116, %117 : vector<2x192xf32>
    %119 = vector.extract_strided_slice %118 {offsets = [0, 0], sizes = [2, 160], strides = [1, 1]} : vector<2x192xf32> to vector<2x160xf32>
    %120 = arith.negf %119 : vector<2x160xf32>
    %121 = math.exp %120 : vector<2x160xf32>
    %cst_33 = arith.constant 1.000000e+00 : f32
    %122 = vector.broadcast %cst_33 : f32 to vector<2x160xf32>
    %123 = arith.addf %122, %121 : vector<2x160xf32>
    %124 = arith.divf %122, %123 : vector<2x160xf32>
    %125 = vector.extract_strided_slice %124 {offsets = [0, 0], sizes = [2, 32], strides = [1, 1]} : vector<2x160xf32> to vector<2x32xf32>
    %126 = vector.extract_strided_slice %124 {offsets = [0, 32], sizes = [2, 32], strides = [1, 1]} : vector<2x160xf32> to vector<2x32xf32>
    %127 = vector.extract_strided_slice %124 {offsets = [0, 64], sizes = [2, 32], strides = [1, 1]} : vector<2x160xf32> to vector<2x32xf32>
    %128 = vector.extract_strided_slice %124 {offsets = [0, 96], sizes = [2, 32], strides = [1, 1]} : vector<2x160xf32> to vector<2x32xf32>
    %129 = vector.extract_strided_slice %124 {offsets = [0, 128], sizes = [2, 32], strides = [1, 1]} : vector<2x160xf32> to vector<2x32xf32>
    %130 = vector.extract_strided_slice %118 {offsets = [0, 160], sizes = [2, 32], strides = [1, 1]} : vector<2x192xf32> to vector<2x32xf32>
    %131 = math.tanh %130 : vector<2x32xf32>
    %132 = vector.extract_strided_slice %114 {offsets = [0, 192], sizes = [2, 32], strides = [1, 1]} : vector<2x224xf32> to vector<2x32xf32>
    %133 = vector.extract_strided_slice %115 {offsets = [0, 192], sizes = [2, 32], strides = [1, 1]} : vector<2x224xf32> to vector<2x32xf32>
    %134 = arith.mulf %128, %133 : vector<2x32xf32>
    %135 = arith.addf %132, %134 : vector<2x32xf32>
    %136 = math.tanh %135 : vector<2x32xf32>
    %137 = arith.mulf %126, %50 : vector<2x32xf32>
    %138 = arith.mulf %125, %131 : vector<2x32xf32>
    %139 = arith.addf %137, %138 : vector<2x32xf32>
    %140 = math.tanh %139 : vector<2x32xf32>
    %141 = arith.mulf %127, %140 : vector<2x32xf32>
    %cst_34 = arith.constant 1.000000e+00 : f32
    %142 = vector.broadcast %cst_34 : f32 to vector<2x32xf32>
    %143 = arith.subf %142, %129 : vector<2x32xf32>
    %144 = arith.mulf %143, %136 : vector<2x32xf32>
    %145 = vector.extract_strided_slice %109 {offsets = [0, 64], sizes = [2, 32], strides = [1, 1]} : vector<2x128xf32> to vector<2x32xf32>
    %146 = arith.mulf %129, %145 : vector<2x32xf32>
    %147 = arith.addf %144, %146 : vector<2x32xf32>
    %148 = vector.extract_strided_slice %141 {offsets = [0, 0], sizes = [1, 32], strides = [1, 1]} : vector<2x32xf32> to vector<1x32xf32>
    %c1 = arith.constant 1 : index
    %c0_35 = arith.constant 0 : index
    %149 = vector.load %arg21[%c1, %c0_35] : memref<16x64xf32, #tpu.memory_space<vmem>>, vector<1x32xf32>
    tpu.vector_store %arg21[%c1, %c0_35], %148 {strides = array<i32>} : memref<16x64xf32, #tpu.memory_space<vmem>>, vector<1x32xf32>,
    %150 = vector.extract_strided_slice %147 {offsets = [0, 0], sizes = [1, 32], strides = [1, 1]} : vector<2x32xf32> to vector<1x32xf32>
    %c1_36 = arith.constant 1 : index
    %c0_37 = arith.constant 0 : index
    %151 = vector.load %arg22[%c1_36, %c0_37] : memref<16x64xf32, #tpu.memory_space<vmem>>, vector<1x32xf32>
    tpu.vector_store %arg22[%c1_36, %c0_37], %150 {strides = array<i32>} : memref<16x64xf32, #tpu.memory_space<vmem>>, vector<1x32xf32>,
    %152 = vector.extract_strided_slice %141 {offsets = [1, 0], sizes = [1, 32], strides = [1, 1]} : vector<2x32xf32> to vector<1x32xf32>
    %c9 = arith.constant 9 : index
    %c0_38 = arith.constant 0 : index
    %153 = vector.load %arg21[%c9, %c0_38] : memref<16x64xf32, #tpu.memory_space<vmem>>, vector<1x32xf32>
    tpu.vector_store %arg21[%c9, %c0_38], %152 {strides = array<i32>} : memref<16x64xf32, #tpu.memory_space<vmem>>, vector<1x32xf32>,
    %154 = vector.extract_strided_slice %147 {offsets = [1, 0], sizes = [1, 32], strides = [1, 1]} : vector<2x32xf32> to vector<1x32xf32>
    %c9_39 = arith.constant 9 : index
    %c0_40 = arith.constant 0 : index
    %155 = vector.load %arg22[%c9_39, %c0_40] : memref<16x64xf32, #tpu.memory_space<vmem>>, vector<1x32xf32>
    tpu.vector_store %arg22[%c9_39, %c0_40], %154 {strides = array<i32>} : memref<16x64xf32, #tpu.memory_space<vmem>>, vector<1x32xf32>,
    %156 = vector.extract_strided_slice %14 {offsets = [12, 224], sizes = [2, 224], strides = [1, 1]} : vector<16x448xf32> to vector<2x224xf32>
    %157 = vector.extract_strided_slice %113 {offsets = [0, 224], sizes = [2, 224], strides = [1, 1]} : vector<2x448xf32> to vector<2x224xf32>
    %158 = vector.extract_strided_slice %156 {offsets = [0, 0], sizes = [2, 192], strides = [1, 1]} : vector<2x224xf32> to vector<2x192xf32>
    %159 = vector.extract_strided_slice %157 {offsets = [0, 0], sizes = [2, 192], strides = [1, 1]} : vector<2x224xf32> to vector<2x192xf32>
    %160 = arith.addf %158, %159 : vector<2x192xf32>
    %161 = vector.extract_strided_slice %160 {offsets = [0, 0], sizes = [2, 160], strides = [1, 1]} : vector<2x192xf32> to vector<2x160xf32>
    %162 = arith.negf %161 : vector<2x160xf32>
    %163 = math.exp %162 : vector<2x160xf32>
    %cst_41 = arith.constant 1.000000e+00 : f32
    %164 = vector.broadcast %cst_41 : f32 to vector<2x160xf32>
    %165 = arith.addf %164, %163 : vector<2x160xf32>
    %166 = arith.divf %164, %165 : vector<2x160xf32>
    %167 = vector.extract_strided_slice %166 {offsets = [0, 0], sizes = [2, 32], strides = [1, 1]} : vector<2x160xf32> to vector<2x32xf32>
    %168 = vector.extract_strided_slice %166 {offsets = [0, 32], sizes = [2, 32], strides = [1, 1]} : vector<2x160xf32> to vector<2x32xf32>
    %169 = vector.extract_strided_slice %166 {offsets = [0, 64], sizes = [2, 32], strides = [1, 1]} : vector<2x160xf32> to vector<2x32xf32>
    %170 = vector.extract_strided_slice %166 {offsets = [0, 96], sizes = [2, 32], strides = [1, 1]} : vector<2x160xf32> to vector<2x32xf32>
    %171 = vector.extract_strided_slice %166 {offsets = [0, 128], sizes = [2, 32], strides = [1, 1]} : vector<2x160xf32> to vector<2x32xf32>
    %172 = vector.extract_strided_slice %160 {offsets = [0, 160], sizes = [2, 32], strides = [1, 1]} : vector<2x192xf32> to vector<2x32xf32>
    %173 = math.tanh %172 : vector<2x32xf32>
    %174 = vector.extract_strided_slice %156 {offsets = [0, 192], sizes = [2, 32], strides = [1, 1]} : vector<2x224xf32> to vector<2x32xf32>
    %175 = vector.extract_strided_slice %157 {offsets = [0, 192], sizes = [2, 32], strides = [1, 1]} : vector<2x224xf32> to vector<2x32xf32>
    %176 = arith.mulf %170, %175 : vector<2x32xf32>
    %177 = arith.addf %174, %176 : vector<2x32xf32>
    %178 = math.tanh %177 : vector<2x32xf32>
    %179 = arith.mulf %168, %92 : vector<2x32xf32>
    %180 = arith.mulf %167, %173 : vector<2x32xf32>
    %181 = arith.addf %179, %180 : vector<2x32xf32>
    %182 = math.tanh %181 : vector<2x32xf32>
    %183 = arith.mulf %169, %182 : vector<2x32xf32>
    %cst_42 = arith.constant 1.000000e+00 : f32
    %184 = vector.broadcast %cst_42 : f32 to vector<2x32xf32>
    %185 = arith.subf %184, %171 : vector<2x32xf32>
    %186 = arith.mulf %185, %178 : vector<2x32xf32>
    %187 = vector.extract_strided_slice %109 {offsets = [0, 96], sizes = [2, 32], strides = [1, 1]} : vector<2x128xf32> to vector<2x32xf32>
    %188 = arith.mulf %171, %187 : vector<2x32xf32>
    %189 = arith.addf %186, %188 : vector<2x32xf32>
    %190 = vector.extract_strided_slice %183 {offsets = [0, 0], sizes = [1, 32], strides = [1, 1]} : vector<2x32xf32> to vector<1x32xf32>
    %c6 = arith.constant 6 : index
    %c32_43 = arith.constant 32 : index
    %191 = vector.load %arg21[%c6, %c32_43] : memref<16x64xf32, #tpu.memory_space<vmem>>, vector<1x32xf32>
    tpu.vector_store %arg21[%c6, %c32_43], %190 {strides = array<i32>} : memref<16x64xf32, #tpu.memory_space<vmem>>, vector<1x32xf32>,
    %192 = vector.extract_strided_slice %189 {offsets = [0, 0], sizes = [1, 32], strides = [1, 1]} : vector<2x32xf32> to vector<1x32xf32>
    %c6_44 = arith.constant 6 : index
    %c32_45 = arith.constant 32 : index
    %193 = vector.load %arg22[%c6_44, %c32_45] : memref<16x64xf32, #tpu.memory_space<vmem>>, vector<1x32xf32>
    tpu.vector_store %arg22[%c6_44, %c32_45], %192 {strides = array<i32>} : memref<16x64xf32, #tpu.memory_space<vmem>>, vector<1x32xf32>,
    %194 = vector.extract_strided_slice %183 {offsets = [1, 0], sizes = [1, 32], strides = [1, 1]} : vector<2x32xf32> to vector<1x32xf32>
    %c14 = arith.constant 14 : index
    %c32_46 = arith.constant 32 : index
    %195 = vector.load %arg21[%c14, %c32_46] : memref<16x64xf32, #tpu.memory_space<vmem>>, vector<1x32xf32>
    tpu.vector_store %arg21[%c14, %c32_46], %194 {strides = array<i32>} : memref<16x64xf32, #tpu.memory_space<vmem>>, vector<1x32xf32>,
    %196 = vector.extract_strided_slice %189 {offsets = [1, 0], sizes = [1, 32], strides = [1, 1]} : vector<2x32xf32> to vector<1x32xf32>
    %c14_47 = arith.constant 14 : index
    %c32_48 = arith.constant 32 : index
    %197 = vector.load %arg22[%c14_47, %c32_48] : memref<16x64xf32, #tpu.memory_space<vmem>>, vector<1x32xf32>
    tpu.vector_store %arg22[%c14_47, %c32_48], %196 {strides = array<i32>} : memref<16x64xf32, #tpu.memory_space<vmem>>, vector<1x32xf32>,
    %198 = tpu.concatenate %141, %183, %147, %189 in 1 : vector<2x32xf32>, vector<2x32xf32>, vector<2x32xf32>, vector<2x32xf32> -> vector<2x128xf32>
    %199 = arith.truncf %198 : vector<2x128xf32> to vector<2x128xbf16>
    %cst_49 = arith.constant dense<0.000000e+00> : vector<2x448xf32>
    %200 = tpu.matmul %199, %16, %cst_49 {dimension_numbers = #tpu.dot_dimension_numbers<[1], [0], [0], [1], [0, 0, 1, 1], [], []>} : vector<2x128xbf16>, vector<128x448xbf16>, vector<2x448xf32> -> vector<2x448xf32>
    %201 = vector.broadcast %17 : vector<1x448xf32> to vector<2x448xf32>
    %202 = arith.addf %200, %201 : vector<2x448xf32>
    %203 = vector.extract_strided_slice %14 {offsets = [4, 0], sizes = [2, 224], strides = [1, 1]} : vector<16x448xf32> to vector<2x224xf32>
    %204 = vector.extract_strided_slice %202 {offsets = [0, 0], sizes = [2, 224], strides = [1, 1]} : vector<2x448xf32> to vector<2x224xf32>
    %205 = vector.extract_strided_slice %203 {offsets = [0, 0], sizes = [2, 192], strides = [1, 1]} : vector<2x224xf32> to vector<2x192xf32>
    %206 = vector.extract_strided_slice %204 {offsets = [0, 0], sizes = [2, 192], strides = [1, 1]} : vector<2x224xf32> to vector<2x192xf32>
    %207 = arith.addf %205, %206 : vector<2x192xf32>
    %208 = vector.extract_strided_slice %207 {offsets = [0, 0], sizes = [2, 160], strides = [1, 1]} : vector<2x192xf32> to vector<2x160xf32>
    %209 = arith.negf %208 : vector<2x160xf32>
    %210 = math.exp %209 : vector<2x160xf32>
    %cst_50 = arith.constant 1.000000e+00 : f32
    %211 = vector.broadcast %cst_50 : f32 to vector<2x160xf32>
    %212 = arith.addf %211, %210 : vector<2x160xf32>
    %213 = arith.divf %211, %212 : vector<2x160xf32>
    %214 = vector.extract_strided_slice %213 {offsets = [0, 0], sizes = [2, 32], strides = [1, 1]} : vector<2x160xf32> to vector<2x32xf32>
    %215 = vector.extract_strided_slice %213 {offsets = [0, 32], sizes = [2, 32], strides = [1, 1]} : vector<2x160xf32> to vector<2x32xf32>
    %216 = vector.extract_strided_slice %213 {offsets = [0, 64], sizes = [2, 32], strides = [1, 1]} : vector<2x160xf32> to vector<2x32xf32>
    %217 = vector.extract_strided_slice %213 {offsets = [0, 96], sizes = [2, 32], strides = [1, 1]} : vector<2x160xf32> to vector<2x32xf32>
    %218 = vector.extract_strided_slice %213 {offsets = [0, 128], sizes = [2, 32], strides = [1, 1]} : vector<2x160xf32> to vector<2x32xf32>
    %219 = vector.extract_strided_slice %207 {offsets = [0, 160], sizes = [2, 32], strides = [1, 1]} : vector<2x192xf32> to vector<2x32xf32>
    %220 = math.tanh %219 : vector<2x32xf32>
    %221 = vector.extract_strided_slice %203 {offsets = [0, 192], sizes = [2, 32], strides = [1, 1]} : vector<2x224xf32> to vector<2x32xf32>
    %222 = vector.extract_strided_slice %204 {offsets = [0, 192], sizes = [2, 32], strides = [1, 1]} : vector<2x224xf32> to vector<2x32xf32>
    %223 = arith.mulf %217, %222 : vector<2x32xf32>
    %224 = arith.addf %221, %223 : vector<2x32xf32>
    %225 = math.tanh %224 : vector<2x32xf32>
    %226 = arith.mulf %215, %139 : vector<2x32xf32>
    %227 = arith.mulf %214, %220 : vector<2x32xf32>
    %228 = arith.addf %226, %227 : vector<2x32xf32>
    %229 = math.tanh %228 : vector<2x32xf32>
    %230 = arith.mulf %216, %229 : vector<2x32xf32>
    %cst_51 = arith.constant 1.000000e+00 : f32
    %231 = vector.broadcast %cst_51 : f32 to vector<2x32xf32>
    %232 = arith.subf %231, %218 : vector<2x32xf32>
    %233 = arith.mulf %232, %225 : vector<2x32xf32>
    %234 = vector.extract_strided_slice %198 {offsets = [0, 64], sizes = [2, 32], strides = [1, 1]} : vector<2x128xf32> to vector<2x32xf32>
    %235 = arith.mulf %218, %234 : vector<2x32xf32>
    %236 = arith.addf %233, %235 : vector<2x32xf32>
    %237 = vector.extract_strided_slice %230 {offsets = [0, 0], sizes = [1, 32], strides = [1, 1]} : vector<2x32xf32> to vector<1x32xf32>
    %c2 = arith.constant 2 : index
    %c0_52 = arith.constant 0 : index
    %238 = vector.load %arg21[%c2, %c0_52] : memref<16x64xf32, #tpu.memory_space<vmem>>, vector<1x32xf32>
    tpu.vector_store %arg21[%c2, %c0_52], %237 {strides = array<i32>} : memref<16x64xf32, #tpu.memory_space<vmem>>, vector<1x32xf32>,
    %239 = vector.extract_strided_slice %236 {offsets = [0, 0], sizes = [1, 32], strides = [1, 1]} : vector<2x32xf32> to vector<1x32xf32>
    %c2_53 = arith.constant 2 : index
    %c0_54 = arith.constant 0 : index
    %240 = vector.load %arg22[%c2_53, %c0_54] : memref<16x64xf32, #tpu.memory_space<vmem>>, vector<1x32xf32>
    tpu.vector_store %arg22[%c2_53, %c0_54], %239 {strides = array<i32>} : memref<16x64xf32, #tpu.memory_space<vmem>>, vector<1x32xf32>,
    %241 = vector.extract_strided_slice %230 {offsets = [1, 0], sizes = [1, 32], strides = [1, 1]} : vector<2x32xf32> to vector<1x32xf32>
    %c10 = arith.constant 10 : index
    %c0_55 = arith.constant 0 : index
    %242 = vector.load %arg21[%c10, %c0_55] : memref<16x64xf32, #tpu.memory_space<vmem>>, vector<1x32xf32>
    tpu.vector_store %arg21[%c10, %c0_55], %241 {strides = array<i32>} : memref<16x64xf32, #tpu.memory_space<vmem>>, vector<1x32xf32>,
    %243 = vector.extract_strided_slice %236 {offsets = [1, 0], sizes = [1, 32], strides = [1, 1]} : vector<2x32xf32> to vector<1x32xf32>
    %c10_56 = arith.constant 10 : index
    %c0_57 = arith.constant 0 : index
    %244 = vector.load %arg22[%c10_56, %c0_57] : memref<16x64xf32, #tpu.memory_space<vmem>>, vector<1x32xf32>
    tpu.vector_store %arg22[%c10_56, %c0_57], %243 {strides = array<i32>} : memref<16x64xf32, #tpu.memory_space<vmem>>, vector<1x32xf32>,
    %245 = vector.extract_strided_slice %14 {offsets = [10, 224], sizes = [2, 224], strides = [1, 1]} : vector<16x448xf32> to vector<2x224xf32>
    %246 = vector.extract_strided_slice %202 {offsets = [0, 224], sizes = [2, 224], strides = [1, 1]} : vector<2x448xf32> to vector<2x224xf32>
    %247 = vector.extract_strided_slice %245 {offsets = [0, 0], sizes = [2, 192], strides = [1, 1]} : vector<2x224xf32> to vector<2x192xf32>
    %248 = vector.extract_strided_slice %246 {offsets = [0, 0], sizes = [2, 192], strides = [1, 1]} : vector<2x224xf32> to vector<2x192xf32>
    %249 = arith.addf %247, %248 : vector<2x192xf32>
    %250 = vector.extract_strided_slice %249 {offsets = [0, 0], sizes = [2, 160], strides = [1, 1]} : vector<2x192xf32> to vector<2x160xf32>
    %251 = arith.negf %250 : vector<2x160xf32>
    %252 = math.exp %251 : vector<2x160xf32>
    %cst_58 = arith.constant 1.000000e+00 : f32
    %253 = vector.broadcast %cst_58 : f32 to vector<2x160xf32>
    %254 = arith.addf %253, %252 : vector<2x160xf32>
    %255 = arith.divf %253, %254 : vector<2x160xf32>
    %256 = vector.extract_strided_slice %255 {offsets = [0, 0], sizes = [2, 32], strides = [1, 1]} : vector<2x160xf32> to vector<2x32xf32>
    %257 = vector.extract_strided_slice %255 {offsets = [0, 32], sizes = [2, 32], strides = [1, 1]} : vector<2x160xf32> to vector<2x32xf32>
    %258 = vector.extract_strided_slice %255 {offsets = [0, 64], sizes = [2, 32], strides = [1, 1]} : vector<2x160xf32> to vector<2x32xf32>
    %259 = vector.extract_strided_slice %255 {offsets = [0, 96], sizes = [2, 32], strides = [1, 1]} : vector<2x160xf32> to vector<2x32xf32>
    %260 = vector.extract_strided_slice %255 {offsets = [0, 128], sizes = [2, 32], strides = [1, 1]} : vector<2x160xf32> to vector<2x32xf32>
    %261 = vector.extract_strided_slice %249 {offsets = [0, 160], sizes = [2, 32], strides = [1, 1]} : vector<2x192xf32> to vector<2x32xf32>
    %262 = math.tanh %261 : vector<2x32xf32>
    %263 = vector.extract_strided_slice %245 {offsets = [0, 192], sizes = [2, 32], strides = [1, 1]} : vector<2x224xf32> to vector<2x32xf32>
    %264 = vector.extract_strided_slice %246 {offsets = [0, 192], sizes = [2, 32], strides = [1, 1]} : vector<2x224xf32> to vector<2x32xf32>
    %265 = arith.mulf %259, %264 : vector<2x32xf32>
    %266 = arith.addf %263, %265 : vector<2x32xf32>
    %267 = math.tanh %266 : vector<2x32xf32>
    %268 = arith.mulf %257, %181 : vector<2x32xf32>
    %269 = arith.mulf %256, %262 : vector<2x32xf32>
    %270 = arith.addf %268, %269 : vector<2x32xf32>
    %271 = math.tanh %270 : vector<2x32xf32>
    %272 = arith.mulf %258, %271 : vector<2x32xf32>
    %cst_59 = arith.constant 1.000000e+00 : f32
    %273 = vector.broadcast %cst_59 : f32 to vector<2x32xf32>
    %274 = arith.subf %273, %260 : vector<2x32xf32>
    %275 = arith.mulf %274, %267 : vector<2x32xf32>
    %276 = vector.extract_strided_slice %198 {offsets = [0, 96], sizes = [2, 32], strides = [1, 1]} : vector<2x128xf32> to vector<2x32xf32>
    %277 = arith.mulf %260, %276 : vector<2x32xf32>
    %278 = arith.addf %275, %277 : vector<2x32xf32>
    %279 = vector.extract_strided_slice %272 {offsets = [0, 0], sizes = [1, 32], strides = [1, 1]} : vector<2x32xf32> to vector<1x32xf32>
    %c5 = arith.constant 5 : index
    %c32_60 = arith.constant 32 : index
    %280 = vector.load %arg21[%c5, %c32_60] : memref<16x64xf32, #tpu.memory_space<vmem>>, vector<1x32xf32>
    tpu.vector_store %arg21[%c5, %c32_60], %279 {strides = array<i32>} : memref<16x64xf32, #tpu.memory_space<vmem>>, vector<1x32xf32>,
    %281 = vector.extract_strided_slice %278 {offsets = [0, 0], sizes = [1, 32], strides = [1, 1]} : vector<2x32xf32> to vector<1x32xf32>
    %c5_61 = arith.constant 5 : index
    %c32_62 = arith.constant 32 : index
    %282 = vector.load %arg22[%c5_61, %c32_62] : memref<16x64xf32, #tpu.memory_space<vmem>>, vector<1x32xf32>
    tpu.vector_store %arg22[%c5_61, %c32_62], %281 {strides = array<i32>} : memref<16x64xf32, #tpu.memory_space<vmem>>, vector<1x32xf32>,
    %283 = vector.extract_strided_slice %272 {offsets = [1, 0], sizes = [1, 32], strides = [1, 1]} : vector<2x32xf32> to vector<1x32xf32>
    %c13 = arith.constant 13 : index
    %c32_63 = arith.constant 32 : index
    %284 = vector.load %arg21[%c13, %c32_63] : memref<16x64xf32, #tpu.memory_space<vmem>>, vector<1x32xf32>
    tpu.vector_store %arg21[%c13, %c32_63], %283 {strides = array<i32>} : memref<16x64xf32, #tpu.memory_space<vmem>>, vector<1x32xf32>,
    %285 = vector.extract_strided_slice %278 {offsets = [1, 0], sizes = [1, 32], strides = [1, 1]} : vector<2x32xf32> to vector<1x32xf32>
    %c13_64 = arith.constant 13 : index
    %c32_65 = arith.constant 32 : index
    %286 = vector.load %arg22[%c13_64, %c32_65] : memref<16x64xf32, #tpu.memory_space<vmem>>, vector<1x32xf32>
    tpu.vector_store %arg22[%c13_64, %c32_65], %285 {strides = array<i32>} : memref<16x64xf32, #tpu.memory_space<vmem>>, vector<1x32xf32>,
    %287 = tpu.concatenate %230, %272, %236, %278 in 1 : vector<2x32xf32>, vector<2x32xf32>, vector<2x32xf32>, vector<2x32xf32> -> vector<2x128xf32>
    %288 = arith.truncf %287 : vector<2x128xf32> to vector<2x128xbf16>
    %cst_66 = arith.constant dense<0.000000e+00> : vector<2x448xf32>
    %289 = tpu.matmul %288, %16, %cst_66 {dimension_numbers = #tpu.dot_dimension_numbers<[1], [0], [0], [1], [0, 0, 1, 1], [], []>} : vector<2x128xbf16>, vector<128x448xbf16>, vector<2x448xf32> -> vector<2x448xf32>
    %290 = vector.broadcast %17 : vector<1x448xf32> to vector<2x448xf32>
    %291 = arith.addf %289, %290 : vector<2x448xf32>
    %292 = vector.extract_strided_slice %14 {offsets = [6, 0], sizes = [2, 224], strides = [1, 1]} : vector<16x448xf32> to vector<2x224xf32>
    %293 = vector.extract_strided_slice %291 {offsets = [0, 0], sizes = [2, 224], strides = [1, 1]} : vector<2x448xf32> to vector<2x224xf32>
    %294 = vector.extract_strided_slice %292 {offsets = [0, 0], sizes = [2, 192], strides = [1, 1]} : vector<2x224xf32> to vector<2x192xf32>
    %295 = vector.extract_strided_slice %293 {offsets = [0, 0], sizes = [2, 192], strides = [1, 1]} : vector<2x224xf32> to vector<2x192xf32>
    %296 = arith.addf %294, %295 : vector<2x192xf32>
    %297 = vector.extract_strided_slice %296 {offsets = [0, 0], sizes = [2, 160], strides = [1, 1]} : vector<2x192xf32> to vector<2x160xf32>
    %298 = arith.negf %297 : vector<2x160xf32>
    %299 = math.exp %298 : vector<2x160xf32>
    %cst_67 = arith.constant 1.000000e+00 : f32
    %300 = vector.broadcast %cst_67 : f32 to vector<2x160xf32>
    %301 = arith.addf %300, %299 : vector<2x160xf32>
    %302 = arith.divf %300, %301 : vector<2x160xf32>
    %303 = vector.extract_strided_slice %302 {offsets = [0, 0], sizes = [2, 32], strides = [1, 1]} : vector<2x160xf32> to vector<2x32xf32>
    %304 = vector.extract_strided_slice %302 {offsets = [0, 32], sizes = [2, 32], strides = [1, 1]} : vector<2x160xf32> to vector<2x32xf32>
    %305 = vector.extract_strided_slice %302 {offsets = [0, 64], sizes = [2, 32], strides = [1, 1]} : vector<2x160xf32> to vector<2x32xf32>
    %306 = vector.extract_strided_slice %302 {offsets = [0, 96], sizes = [2, 32], strides = [1, 1]} : vector<2x160xf32> to vector<2x32xf32>
    %307 = vector.extract_strided_slice %302 {offsets = [0, 128], sizes = [2, 32], strides = [1, 1]} : vector<2x160xf32> to vector<2x32xf32>
    %308 = vector.extract_strided_slice %296 {offsets = [0, 160], sizes = [2, 32], strides = [1, 1]} : vector<2x192xf32> to vector<2x32xf32>
    %309 = math.tanh %308 : vector<2x32xf32>
    %310 = vector.extract_strided_slice %292 {offsets = [0, 192], sizes = [2, 32], strides = [1, 1]} : vector<2x224xf32> to vector<2x32xf32>
    %311 = vector.extract_strided_slice %293 {offsets = [0, 192], sizes = [2, 32], strides = [1, 1]} : vector<2x224xf32> to vector<2x32xf32>
    %312 = arith.mulf %306, %311 : vector<2x32xf32>
    %313 = arith.addf %310, %312 : vector<2x32xf32>
    %314 = math.tanh %313 : vector<2x32xf32>
    %315 = arith.mulf %304, %228 : vector<2x32xf32>
    %316 = arith.mulf %303, %309 : vector<2x32xf32>
    %317 = arith.addf %315, %316 : vector<2x32xf32>
    %318 = math.tanh %317 : vector<2x32xf32>
    %319 = arith.mulf %305, %318 : vector<2x32xf32>
    %cst_68 = arith.constant 1.000000e+00 : f32
    %320 = vector.broadcast %cst_68 : f32 to vector<2x32xf32>
    %321 = arith.subf %320, %307 : vector<2x32xf32>
    %322 = arith.mulf %321, %314 : vector<2x32xf32>
    %323 = vector.extract_strided_slice %287 {offsets = [0, 64], sizes = [2, 32], strides = [1, 1]} : vector<2x128xf32> to vector<2x32xf32>
    %324 = arith.mulf %307, %323 : vector<2x32xf32>
    %325 = arith.addf %322, %324 : vector<2x32xf32>
    %326 = vector.extract_strided_slice %319 {offsets = [0, 0], sizes = [1, 32], strides = [1, 1]} : vector<2x32xf32> to vector<1x32xf32>
    %c3 = arith.constant 3 : index
    %c0_69 = arith.constant 0 : index
    %327 = vector.load %arg21[%c3, %c0_69] : memref<16x64xf32, #tpu.memory_space<vmem>>, vector<1x32xf32>
    tpu.vector_store %arg21[%c3, %c0_69], %326 {strides = array<i32>} : memref<16x64xf32, #tpu.memory_space<vmem>>, vector<1x32xf32>,
    %328 = vector.extract_strided_slice %325 {offsets = [0, 0], sizes = [1, 32], strides = [1, 1]} : vector<2x32xf32> to vector<1x32xf32>
    %c3_70 = arith.constant 3 : index
    %c0_71 = arith.constant 0 : index
    %329 = vector.load %arg22[%c3_70, %c0_71] : memref<16x64xf32, #tpu.memory_space<vmem>>, vector<1x32xf32>
    tpu.vector_store %arg22[%c3_70, %c0_71], %328 {strides = array<i32>} : memref<16x64xf32, #tpu.memory_space<vmem>>, vector<1x32xf32>,
    %330 = vector.extract_strided_slice %319 {offsets = [1, 0], sizes = [1, 32], strides = [1, 1]} : vector<2x32xf32> to vector<1x32xf32>
    %c11 = arith.constant 11 : index
    %c0_72 = arith.constant 0 : index
    %331 = vector.load %arg21[%c11, %c0_72] : memref<16x64xf32, #tpu.memory_space<vmem>>, vector<1x32xf32>
    tpu.vector_store %arg21[%c11, %c0_72], %330 {strides = array<i32>} : memref<16x64xf32, #tpu.memory_space<vmem>>, vector<1x32xf32>,
    %332 = vector.extract_strided_slice %325 {offsets = [1, 0], sizes = [1, 32], strides = [1, 1]} : vector<2x32xf32> to vector<1x32xf32>
    %c11_73 = arith.constant 11 : index
    %c0_74 = arith.constant 0 : index
    %333 = vector.load %arg22[%c11_73, %c0_74] : memref<16x64xf32, #tpu.memory_space<vmem>>, vector<1x32xf32>
    tpu.vector_store %arg22[%c11_73, %c0_74], %332 {strides = array<i32>} : memref<16x64xf32, #tpu.memory_space<vmem>>, vector<1x32xf32>,
    %334 = vector.extract_strided_slice %14 {offsets = [8, 224], sizes = [2, 224], strides = [1, 1]} : vector<16x448xf32> to vector<2x224xf32>
    %335 = vector.extract_strided_slice %291 {offsets = [0, 224], sizes = [2, 224], strides = [1, 1]} : vector<2x448xf32> to vector<2x224xf32>
    %336 = vector.extract_strided_slice %334 {offsets = [0, 0], sizes = [2, 192], strides = [1, 1]} : vector<2x224xf32> to vector<2x192xf32>
    %337 = vector.extract_strided_slice %335 {offsets = [0, 0], sizes = [2, 192], strides = [1, 1]} : vector<2x224xf32> to vector<2x192xf32>
    %338 = arith.addf %336, %337 : vector<2x192xf32>
    %339 = vector.extract_strided_slice %338 {offsets = [0, 0], sizes = [2, 160], strides = [1, 1]} : vector<2x192xf32> to vector<2x160xf32>
    %340 = arith.negf %339 : vector<2x160xf32>
    %341 = math.exp %340 : vector<2x160xf32>
    %cst_75 = arith.constant 1.000000e+00 : f32
    %342 = vector.broadcast %cst_75 : f32 to vector<2x160xf32>
    %343 = arith.addf %342, %341 : vector<2x160xf32>
    %344 = arith.divf %342, %343 : vector<2x160xf32>
    %345 = vector.extract_strided_slice %344 {offsets = [0, 0], sizes = [2, 32], strides = [1, 1]} : vector<2x160xf32> to vector<2x32xf32>
    %346 = vector.extract_strided_slice %344 {offsets = [0, 32], sizes = [2, 32], strides = [1, 1]} : vector<2x160xf32> to vector<2x32xf32>
    %347 = vector.extract_strided_slice %344 {offsets = [0, 64], sizes = [2, 32], strides = [1, 1]} : vector<2x160xf32> to vector<2x32xf32>
    %348 = vector.extract_strided_slice %344 {offsets = [0, 96], sizes = [2, 32], strides = [1, 1]} : vector<2x160xf32> to vector<2x32xf32>
    %349 = vector.extract_strided_slice %344 {offsets = [0, 128], sizes = [2, 32], strides = [1, 1]} : vector<2x160xf32> to vector<2x32xf32>
    %350 = vector.extract_strided_slice %338 {offsets = [0, 160], sizes = [2, 32], strides = [1, 1]} : vector<2x192xf32> to vector<2x32xf32>
    %351 = math.tanh %350 : vector<2x32xf32>
    %352 = vector.extract_strided_slice %334 {offsets = [0, 192], sizes = [2, 32], strides = [1, 1]} : vector<2x224xf32> to vector<2x32xf32>
    %353 = vector.extract_strided_slice %335 {offsets = [0, 192], sizes = [2, 32], strides = [1, 1]} : vector<2x224xf32> to vector<2x32xf32>
    %354 = arith.mulf %348, %353 : vector<2x32xf32>
    %355 = arith.addf %352, %354 : vector<2x32xf32>
    %356 = math.tanh %355 : vector<2x32xf32>
    %357 = arith.mulf %346, %270 : vector<2x32xf32>
    %358 = arith.mulf %345, %351 : vector<2x32xf32>
    %359 = arith.addf %357, %358 : vector<2x32xf32>
    %360 = math.tanh %359 : vector<2x32xf32>
    %361 = arith.mulf %347, %360 : vector<2x32xf32>
    %cst_76 = arith.constant 1.000000e+00 : f32
    %362 = vector.broadcast %cst_76 : f32 to vector<2x32xf32>
    %363 = arith.subf %362, %349 : vector<2x32xf32>
    %364 = arith.mulf %363, %356 : vector<2x32xf32>
    %365 = vector.extract_strided_slice %287 {offsets = [0, 96], sizes = [2, 32], strides = [1, 1]} : vector<2x128xf32> to vector<2x32xf32>
    %366 = arith.mulf %349, %365 : vector<2x32xf32>
    %367 = arith.addf %364, %366 : vector<2x32xf32>
    %368 = vector.extract_strided_slice %361 {offsets = [0, 0], sizes = [1, 32], strides = [1, 1]} : vector<2x32xf32> to vector<1x32xf32>
    %c4 = arith.constant 4 : index
    %c32_77 = arith.constant 32 : index
    %369 = vector.load %arg21[%c4, %c32_77] : memref<16x64xf32, #tpu.memory_space<vmem>>, vector<1x32xf32>
    tpu.vector_store %arg21[%c4, %c32_77], %368 {strides = array<i32>} : memref<16x64xf32, #tpu.memory_space<vmem>>, vector<1x32xf32>,
    %370 = vector.extract_strided_slice %367 {offsets = [0, 0], sizes = [1, 32], strides = [1, 1]} : vector<2x32xf32> to vector<1x32xf32>
    %c4_78 = arith.constant 4 : index
    %c32_79 = arith.constant 32 : index
    %371 = vector.load %arg22[%c4_78, %c32_79] : memref<16x64xf32, #tpu.memory_space<vmem>>, vector<1x32xf32>
    tpu.vector_store %arg22[%c4_78, %c32_79], %370 {strides = array<i32>} : memref<16x64xf32, #tpu.memory_space<vmem>>, vector<1x32xf32>,
    %372 = vector.extract_strided_slice %361 {offsets = [1, 0], sizes = [1, 32], strides = [1, 1]} : vector<2x32xf32> to vector<1x32xf32>
    %c12 = arith.constant 12 : index
    %c32_80 = arith.constant 32 : index
    %373 = vector.load %arg21[%c12, %c32_80] : memref<16x64xf32, #tpu.memory_space<vmem>>, vector<1x32xf32>
    tpu.vector_store %arg21[%c12, %c32_80], %372 {strides = array<i32>} : memref<16x64xf32, #tpu.memory_space<vmem>>, vector<1x32xf32>,
    %374 = vector.extract_strided_slice %367 {offsets = [1, 0], sizes = [1, 32], strides = [1, 1]} : vector<2x32xf32> to vector<1x32xf32>
    %c12_81 = arith.constant 12 : index
    %c32_82 = arith.constant 32 : index
    %375 = vector.load %arg22[%c12_81, %c32_82] : memref<16x64xf32, #tpu.memory_space<vmem>>, vector<1x32xf32>
    tpu.vector_store %arg22[%c12_81, %c32_82], %374 {strides = array<i32>} : memref<16x64xf32, #tpu.memory_space<vmem>>, vector<1x32xf32>,
    %376 = tpu.concatenate %319, %361, %325, %367 in 1 : vector<2x32xf32>, vector<2x32xf32>, vector<2x32xf32>, vector<2x32xf32> -> vector<2x128xf32>
    %377 = arith.truncf %376 : vector<2x128xf32> to vector<2x128xbf16>
    %cst_83 = arith.constant dense<0.000000e+00> : vector<2x448xf32>
    %378 = tpu.matmul %377, %16, %cst_83 {dimension_numbers = #tpu.dot_dimension_numbers<[1], [0], [0], [1], [0, 0, 1, 1], [], []>} : vector<2x128xbf16>, vector<128x448xbf16>, vector<2x448xf32> -> vector<2x448xf32>
    %379 = vector.broadcast %17 : vector<1x448xf32> to vector<2x448xf32>
    %380 = arith.addf %378, %379 : vector<2x448xf32>
    %381 = vector.extract_strided_slice %14 {offsets = [8, 0], sizes = [2, 224], strides = [1, 1]} : vector<16x448xf32> to vector<2x224xf32>
    %382 = vector.extract_strided_slice %380 {offsets = [0, 0], sizes = [2, 224], strides = [1, 1]} : vector<2x448xf32> to vector<2x224xf32>
    %383 = vector.extract_strided_slice %381 {offsets = [0, 0], sizes = [2, 192], strides = [1, 1]} : vector<2x224xf32> to vector<2x192xf32>
    %384 = vector.extract_strided_slice %382 {offsets = [0, 0], sizes = [2, 192], strides = [1, 1]} : vector<2x224xf32> to vector<2x192xf32>
    %385 = arith.addf %383, %384 : vector<2x192xf32>
    %386 = vector.extract_strided_slice %385 {offsets = [0, 0], sizes = [2, 160], strides = [1, 1]} : vector<2x192xf32> to vector<2x160xf32>
    %387 = arith.negf %386 : vector<2x160xf32>
    %388 = math.exp %387 : vector<2x160xf32>
    %cst_84 = arith.constant 1.000000e+00 : f32
    %389 = vector.broadcast %cst_84 : f32 to vector<2x160xf32>
    %390 = arith.addf %389, %388 : vector<2x160xf32>
    %391 = arith.divf %389, %390 : vector<2x160xf32>
    %392 = vector.extract_strided_slice %391 {offsets = [0, 0], sizes = [2, 32], strides = [1, 1]} : vector<2x160xf32> to vector<2x32xf32>
    %393 = vector.extract_strided_slice %391 {offsets = [0, 32], sizes = [2, 32], strides = [1, 1]} : vector<2x160xf32> to vector<2x32xf32>
    %394 = vector.extract_strided_slice %391 {offsets = [0, 64], sizes = [2, 32], strides = [1, 1]} : vector<2x160xf32> to vector<2x32xf32>
    %395 = vector.extract_strided_slice %391 {offsets = [0, 96], sizes = [2, 32], strides = [1, 1]} : vector<2x160xf32> to vector<2x32xf32>
    %396 = vector.extract_strided_slice %391 {offsets = [0, 128], sizes = [2, 32], strides = [1, 1]} : vector<2x160xf32> to vector<2x32xf32>
    %397 = vector.extract_strided_slice %385 {offsets = [0, 160], sizes = [2, 32], strides = [1, 1]} : vector<2x192xf32> to vector<2x32xf32>
    %398 = math.tanh %397 : vector<2x32xf32>
    %399 = vector.extract_strided_slice %381 {offsets = [0, 192], sizes = [2, 32], strides = [1, 1]} : vector<2x224xf32> to vector<2x32xf32>
    %400 = vector.extract_strided_slice %382 {offsets = [0, 192], sizes = [2, 32], strides = [1, 1]} : vector<2x224xf32> to vector<2x32xf32>
    %401 = arith.mulf %395, %400 : vector<2x32xf32>
    %402 = arith.addf %399, %401 : vector<2x32xf32>
    %403 = math.tanh %402 : vector<2x32xf32>
    %404 = arith.mulf %393, %317 : vector<2x32xf32>
    %405 = arith.mulf %392, %398 : vector<2x32xf32>
    %406 = arith.addf %404, %405 : vector<2x32xf32>
    %407 = math.tanh %406 : vector<2x32xf32>
    %408 = arith.mulf %394, %407 : vector<2x32xf32>
    %cst_85 = arith.constant 1.000000e+00 : f32
    %409 = vector.broadcast %cst_85 : f32 to vector<2x32xf32>
    %410 = arith.subf %409, %396 : vector<2x32xf32>
    %411 = arith.mulf %410, %403 : vector<2x32xf32>
    %412 = vector.extract_strided_slice %376 {offsets = [0, 64], sizes = [2, 32], strides = [1, 1]} : vector<2x128xf32> to vector<2x32xf32>
    %413 = arith.mulf %396, %412 : vector<2x32xf32>
    %414 = arith.addf %411, %413 : vector<2x32xf32>
    %415 = vector.extract_strided_slice %408 {offsets = [0, 0], sizes = [1, 32], strides = [1, 1]} : vector<2x32xf32> to vector<1x32xf32>
    %c4_86 = arith.constant 4 : index
    %c0_87 = arith.constant 0 : index
    %416 = vector.load %arg21[%c4_86, %c0_87] : memref<16x64xf32, #tpu.memory_space<vmem>>, vector<1x32xf32>
    tpu.vector_store %arg21[%c4_86, %c0_87], %415 {strides = array<i32>} : memref<16x64xf32, #tpu.memory_space<vmem>>, vector<1x32xf32>,
    %417 = vector.extract_strided_slice %414 {offsets = [0, 0], sizes = [1, 32], strides = [1, 1]} : vector<2x32xf32> to vector<1x32xf32>
    %c4_88 = arith.constant 4 : index
    %c0_89 = arith.constant 0 : index
    %418 = vector.load %arg22[%c4_88, %c0_89] : memref<16x64xf32, #tpu.memory_space<vmem>>, vector<1x32xf32>
    tpu.vector_store %arg22[%c4_88, %c0_89], %417 {strides = array<i32>} : memref<16x64xf32, #tpu.memory_space<vmem>>, vector<1x32xf32>,
    %419 = vector.extract_strided_slice %408 {offsets = [1, 0], sizes = [1, 32], strides = [1, 1]} : vector<2x32xf32> to vector<1x32xf32>
    %c12_90 = arith.constant 12 : index
    %c0_91 = arith.constant 0 : index
    %420 = vector.load %arg21[%c12_90, %c0_91] : memref<16x64xf32, #tpu.memory_space<vmem>>, vector<1x32xf32>
    tpu.vector_store %arg21[%c12_90, %c0_91], %419 {strides = array<i32>} : memref<16x64xf32, #tpu.memory_space<vmem>>, vector<1x32xf32>,
    %421 = vector.extract_strided_slice %414 {offsets = [1, 0], sizes = [1, 32], strides = [1, 1]} : vector<2x32xf32> to vector<1x32xf32>
    %c12_92 = arith.constant 12 : index
    %c0_93 = arith.constant 0 : index
    %422 = vector.load %arg22[%c12_92, %c0_93] : memref<16x64xf32, #tpu.memory_space<vmem>>, vector<1x32xf32>
    tpu.vector_store %arg22[%c12_92, %c0_93], %421 {strides = array<i32>} : memref<16x64xf32, #tpu.memory_space<vmem>>, vector<1x32xf32>,
    %423 = vector.extract_strided_slice %14 {offsets = [6, 224], sizes = [2, 224], strides = [1, 1]} : vector<16x448xf32> to vector<2x224xf32>
    %424 = vector.extract_strided_slice %380 {offsets = [0, 224], sizes = [2, 224], strides = [1, 1]} : vector<2x448xf32> to vector<2x224xf32>
    %425 = vector.extract_strided_slice %423 {offsets = [0, 0], sizes = [2, 192], strides = [1, 1]} : vector<2x224xf32> to vector<2x192xf32>
    %426 = vector.extract_strided_slice %424 {offsets = [0, 0], sizes = [2, 192], strides = [1, 1]} : vector<2x224xf32> to vector<2x192xf32>
    %427 = arith.addf %425, %426 : vector<2x192xf32>
    %428 = vector.extract_strided_slice %427 {offsets = [0, 0], sizes = [2, 160], strides = [1, 1]} : vector<2x192xf32> to vector<2x160xf32>
    %429 = arith.negf %428 : vector<2x160xf32>
    %430 = math.exp %429 : vector<2x160xf32>
    %cst_94 = arith.constant 1.000000e+00 : f32
    %431 = vector.broadcast %cst_94 : f32 to vector<2x160xf32>
    %432 = arith.addf %431, %430 : vector<2x160xf32>
    %433 = arith.divf %431, %432 : vector<2x160xf32>
    %434 = vector.extract_strided_slice %433 {offsets = [0, 0], sizes = [2, 32], strides = [1, 1]} : vector<2x160xf32> to vector<2x32xf32>
    %435 = vector.extract_strided_slice %433 {offsets = [0, 32], sizes = [2, 32], strides = [1, 1]} : vector<2x160xf32> to vector<2x32xf32>
    %436 = vector.extract_strided_slice %433 {offsets = [0, 64], sizes = [2, 32], strides = [1, 1]} : vector<2x160xf32> to vector<2x32xf32>
    %437 = vector.extract_strided_slice %433 {offsets = [0, 96], sizes = [2, 32], strides = [1, 1]} : vector<2x160xf32> to vector<2x32xf32>
    %438 = vector.extract_strided_slice %433 {offsets = [0, 128], sizes = [2, 32], strides = [1, 1]} : vector<2x160xf32> to vector<2x32xf32>
    %439 = vector.extract_strided_slice %427 {offsets = [0, 160], sizes = [2, 32], strides = [1, 1]} : vector<2x192xf32> to vector<2x32xf32>
    %440 = math.tanh %439 : vector<2x32xf32>
    %441 = vector.extract_strided_slice %423 {offsets = [0, 192], sizes = [2, 32], strides = [1, 1]} : vector<2x224xf32> to vector<2x32xf32>
    %442 = vector.extract_strided_slice %424 {offsets = [0, 192], sizes = [2, 32], strides = [1, 1]} : vector<2x224xf32> to vector<2x32xf32>
    %443 = arith.mulf %437, %442 : vector<2x32xf32>
    %444 = arith.addf %441, %443 : vector<2x32xf32>
    %445 = math.tanh %444 : vector<2x32xf32>
    %446 = arith.mulf %435, %359 : vector<2x32xf32>
    %447 = arith.mulf %434, %440 : vector<2x32xf32>
    %448 = arith.addf %446, %447 : vector<2x32xf32>
    %449 = math.tanh %448 : vector<2x32xf32>
    %450 = arith.mulf %436, %449 : vector<2x32xf32>
    %cst_95 = arith.constant 1.000000e+00 : f32
    %451 = vector.broadcast %cst_95 : f32 to vector<2x32xf32>
    %452 = arith.subf %451, %438 : vector<2x32xf32>
    %453 = arith.mulf %452, %445 : vector<2x32xf32>
    %454 = vector.extract_strided_slice %376 {offsets = [0, 96], sizes = [2, 32], strides = [1, 1]} : vector<2x128xf32> to vector<2x32xf32>
    %455 = arith.mulf %438, %454 : vector<2x32xf32>
    %456 = arith.addf %453, %455 : vector<2x32xf32>
    %457 = vector.extract_strided_slice %450 {offsets = [0, 0], sizes = [1, 32], strides = [1, 1]} : vector<2x32xf32> to vector<1x32xf32>
    %c3_96 = arith.constant 3 : index
    %c32_97 = arith.constant 32 : index
    %458 = vector.load %arg21[%c3_96, %c32_97] : memref<16x64xf32, #tpu.memory_space<vmem>>, vector<1x32xf32>
    tpu.vector_store %arg21[%c3_96, %c32_97], %457 {strides = array<i32>} : memref<16x64xf32, #tpu.memory_space<vmem>>, vector<1x32xf32>,
    %459 = vector.extract_strided_slice %456 {offsets = [0, 0], sizes = [1, 32], strides = [1, 1]} : vector<2x32xf32> to vector<1x32xf32>
    %c3_98 = arith.constant 3 : index
    %c32_99 = arith.constant 32 : index
    %460 = vector.load %arg22[%c3_98, %c32_99] : memref<16x64xf32, #tpu.memory_space<vmem>>, vector<1x32xf32>
    tpu.vector_store %arg22[%c3_98, %c32_99], %459 {strides = array<i32>} : memref<16x64xf32, #tpu.memory_space<vmem>>, vector<1x32xf32>,
    %461 = vector.extract_strided_slice %450 {offsets = [1, 0], sizes = [1, 32], strides = [1, 1]} : vector<2x32xf32> to vector<1x32xf32>
    %c11_100 = arith.constant 11 : index
    %c32_101 = arith.constant 32 : index
    %462 = vector.load %arg21[%c11_100, %c32_101] : memref<16x64xf32, #tpu.memory_space<vmem>>, vector<1x32xf32>
    tpu.vector_store %arg21[%c11_100, %c32_101], %461 {strides = array<i32>} : memref<16x64xf32, #tpu.memory_space<vmem>>, vector<1x32xf32>,
    %463 = vector.extract_strided_slice %456 {offsets = [1, 0], sizes = [1, 32], strides = [1, 1]} : vector<2x32xf32> to vector<1x32xf32>
    %c11_102 = arith.constant 11 : index
    %c32_103 = arith.constant 32 : index
    %464 = vector.load %arg22[%c11_102, %c32_103] : memref<16x64xf32, #tpu.memory_space<vmem>>, vector<1x32xf32>
    tpu.vector_store %arg22[%c11_102, %c32_103], %463 {strides = array<i32>} : memref<16x64xf32, #tpu.memory_space<vmem>>, vector<1x32xf32>,
    %465 = tpu.concatenate %408, %450, %414, %456 in 1 : vector<2x32xf32>, vector<2x32xf32>, vector<2x32xf32>, vector<2x32xf32> -> vector<2x128xf32>
    %466 = arith.truncf %465 : vector<2x128xf32> to vector<2x128xbf16>
    %cst_104 = arith.constant dense<0.000000e+00> : vector<2x448xf32>
    %467 = tpu.matmul %466, %16, %cst_104 {dimension_numbers = #tpu.dot_dimension_numbers<[1], [0], [0], [1], [0, 0, 1, 1], [], []>} : vector<2x128xbf16>, vector<128x448xbf16>, vector<2x448xf32> -> vector<2x448xf32>
    %468 = vector.broadcast %17 : vector<1x448xf32> to vector<2x448xf32>
    %469 = arith.addf %467, %468 : vector<2x448xf32>
    %470 = vector.extract_strided_slice %14 {offsets = [10, 0], sizes = [2, 224], strides = [1, 1]} : vector<16x448xf32> to vector<2x224xf32>
    %471 = vector.extract_strided_slice %469 {offsets = [0, 0], sizes = [2, 224], strides = [1, 1]} : vector<2x448xf32> to vector<2x224xf32>
    %472 = vector.extract_strided_slice %470 {offsets = [0, 0], sizes = [2, 192], strides = [1, 1]} : vector<2x224xf32> to vector<2x192xf32>
    %473 = vector.extract_strided_slice %471 {offsets = [0, 0], sizes = [2, 192], strides = [1, 1]} : vector<2x224xf32> to vector<2x192xf32>
    %474 = arith.addf %472, %473 : vector<2x192xf32>
    %475 = vector.extract_strided_slice %474 {offsets = [0, 0], sizes = [2, 160], strides = [1, 1]} : vector<2x192xf32> to vector<2x160xf32>
    %476 = arith.negf %475 : vector<2x160xf32>
    %477 = math.exp %476 : vector<2x160xf32>
    %cst_105 = arith.constant 1.000000e+00 : f32
    %478 = vector.broadcast %cst_105 : f32 to vector<2x160xf32>
    %479 = arith.addf %478, %477 : vector<2x160xf32>
    %480 = arith.divf %478, %479 : vector<2x160xf32>
    %481 = vector.extract_strided_slice %480 {offsets = [0, 0], sizes = [2, 32], strides = [1, 1]} : vector<2x160xf32> to vector<2x32xf32>
    %482 = vector.extract_strided_slice %480 {offsets = [0, 32], sizes = [2, 32], strides = [1, 1]} : vector<2x160xf32> to vector<2x32xf32>
    %483 = vector.extract_strided_slice %480 {offsets = [0, 64], sizes = [2, 32], strides = [1, 1]} : vector<2x160xf32> to vector<2x32xf32>
    %484 = vector.extract_strided_slice %480 {offsets = [0, 96], sizes = [2, 32], strides = [1, 1]} : vector<2x160xf32> to vector<2x32xf32>
    %485 = vector.extract_strided_slice %480 {offsets = [0, 128], sizes = [2, 32], strides = [1, 1]} : vector<2x160xf32> to vector<2x32xf32>
    %486 = vector.extract_strided_slice %474 {offsets = [0, 160], sizes = [2, 32], strides = [1, 1]} : vector<2x192xf32> to vector<2x32xf32>
    %487 = math.tanh %486 : vector<2x32xf32>
    %488 = vector.extract_strided_slice %470 {offsets = [0, 192], sizes = [2, 32], strides = [1, 1]} : vector<2x224xf32> to vector<2x32xf32>
    %489 = vector.extract_strided_slice %471 {offsets = [0, 192], sizes = [2, 32], strides = [1, 1]} : vector<2x224xf32> to vector<2x32xf32>
    %490 = arith.mulf %484, %489 : vector<2x32xf32>
    %491 = arith.addf %488, %490 : vector<2x32xf32>
    %492 = math.tanh %491 : vector<2x32xf32>
    %493 = arith.mulf %482, %406 : vector<2x32xf32>
    %494 = arith.mulf %481, %487 : vector<2x32xf32>
    %495 = arith.addf %493, %494 : vector<2x32xf32>
    %496 = math.tanh %495 : vector<2x32xf32>
    %497 = arith.mulf %483, %496 : vector<2x32xf32>
    %cst_106 = arith.constant 1.000000e+00 : f32
    %498 = vector.broadcast %cst_106 : f32 to vector<2x32xf32>
    %499 = arith.subf %498, %485 : vector<2x32xf32>
    %500 = arith.mulf %499, %492 : vector<2x32xf32>
    %501 = vector.extract_strided_slice %465 {offsets = [0, 64], sizes = [2, 32], strides = [1, 1]} : vector<2x128xf32> to vector<2x32xf32>
    %502 = arith.mulf %485, %501 : vector<2x32xf32>
    %503 = arith.addf %500, %502 : vector<2x32xf32>
    %504 = vector.extract_strided_slice %497 {offsets = [0, 0], sizes = [1, 32], strides = [1, 1]} : vector<2x32xf32> to vector<1x32xf32>
    %c5_107 = arith.constant 5 : index
    %c0_108 = arith.constant 0 : index
    %505 = vector.load %arg21[%c5_107, %c0_108] : memref<16x64xf32, #tpu.memory_space<vmem>>, vector<1x32xf32>
    tpu.vector_store %arg21[%c5_107, %c0_108], %504 {strides = array<i32>} : memref<16x64xf32, #tpu.memory_space<vmem>>, vector<1x32xf32>,
    %506 = vector.extract_strided_slice %503 {offsets = [0, 0], sizes = [1, 32], strides = [1, 1]} : vector<2x32xf32> to vector<1x32xf32>
    %c5_109 = arith.constant 5 : index
    %c0_110 = arith.constant 0 : index
    %507 = vector.load %arg22[%c5_109, %c0_110] : memref<16x64xf32, #tpu.memory_space<vmem>>, vector<1x32xf32>
    tpu.vector_store %arg22[%c5_109, %c0_110], %506 {strides = array<i32>} : memref<16x64xf32, #tpu.memory_space<vmem>>, vector<1x32xf32>,
    %508 = vector.extract_strided_slice %497 {offsets = [1, 0], sizes = [1, 32], strides = [1, 1]} : vector<2x32xf32> to vector<1x32xf32>
    %c13_111 = arith.constant 13 : index
    %c0_112 = arith.constant 0 : index
    %509 = vector.load %arg21[%c13_111, %c0_112] : memref<16x64xf32, #tpu.memory_space<vmem>>, vector<1x32xf32>
    tpu.vector_store %arg21[%c13_111, %c0_112], %508 {strides = array<i32>} : memref<16x64xf32, #tpu.memory_space<vmem>>, vector<1x32xf32>,
    %510 = vector.extract_strided_slice %503 {offsets = [1, 0], sizes = [1, 32], strides = [1, 1]} : vector<2x32xf32> to vector<1x32xf32>
    %c13_113 = arith.constant 13 : index
    %c0_114 = arith.constant 0 : index
    %511 = vector.load %arg22[%c13_113, %c0_114] : memref<16x64xf32, #tpu.memory_space<vmem>>, vector<1x32xf32>
    tpu.vector_store %arg22[%c13_113, %c0_114], %510 {strides = array<i32>} : memref<16x64xf32, #tpu.memory_space<vmem>>, vector<1x32xf32>,
    %512 = vector.extract_strided_slice %14 {offsets = [4, 224], sizes = [2, 224], strides = [1, 1]} : vector<16x448xf32> to vector<2x224xf32>
    %513 = vector.extract_strided_slice %469 {offsets = [0, 224], sizes = [2, 224], strides = [1, 1]} : vector<2x448xf32> to vector<2x224xf32>
    %514 = vector.extract_strided_slice %512 {offsets = [0, 0], sizes = [2, 192], strides = [1, 1]} : vector<2x224xf32> to vector<2x192xf32>
    %515 = vector.extract_strided_slice %513 {offsets = [0, 0], sizes = [2, 192], strides = [1, 1]} : vector<2x224xf32> to vector<2x192xf32>
    %516 = arith.addf %514, %515 : vector<2x192xf32>
    %517 = vector.extract_strided_slice %516 {offsets = [0, 0], sizes = [2, 160], strides = [1, 1]} : vector<2x192xf32> to vector<2x160xf32>
    %518 = arith.negf %517 : vector<2x160xf32>
    %519 = math.exp %518 : vector<2x160xf32>
    %cst_115 = arith.constant 1.000000e+00 : f32
    %520 = vector.broadcast %cst_115 : f32 to vector<2x160xf32>
    %521 = arith.addf %520, %519 : vector<2x160xf32>
    %522 = arith.divf %520, %521 : vector<2x160xf32>
    %523 = vector.extract_strided_slice %522 {offsets = [0, 0], sizes = [2, 32], strides = [1, 1]} : vector<2x160xf32> to vector<2x32xf32>
    %524 = vector.extract_strided_slice %522 {offsets = [0, 32], sizes = [2, 32], strides = [1, 1]} : vector<2x160xf32> to vector<2x32xf32>
    %525 = vector.extract_strided_slice %522 {offsets = [0, 64], sizes = [2, 32], strides = [1, 1]} : vector<2x160xf32> to vector<2x32xf32>
    %526 = vector.extract_strided_slice %522 {offsets = [0, 96], sizes = [2, 32], strides = [1, 1]} : vector<2x160xf32> to vector<2x32xf32>
    %527 = vector.extract_strided_slice %522 {offsets = [0, 128], sizes = [2, 32], strides = [1, 1]} : vector<2x160xf32> to vector<2x32xf32>
    %528 = vector.extract_strided_slice %516 {offsets = [0, 160], sizes = [2, 32], strides = [1, 1]} : vector<2x192xf32> to vector<2x32xf32>
    %529 = math.tanh %528 : vector<2x32xf32>
    %530 = vector.extract_strided_slice %512 {offsets = [0, 192], sizes = [2, 32], strides = [1, 1]} : vector<2x224xf32> to vector<2x32xf32>
    %531 = vector.extract_strided_slice %513 {offsets = [0, 192], sizes = [2, 32], strides = [1, 1]} : vector<2x224xf32> to vector<2x32xf32>
    %532 = arith.mulf %526, %531 : vector<2x32xf32>
    %533 = arith.addf %530, %532 : vector<2x32xf32>
    %534 = math.tanh %533 : vector<2x32xf32>
    %535 = arith.mulf %524, %448 : vector<2x32xf32>
    %536 = arith.mulf %523, %529 : vector<2x32xf32>
    %537 = arith.addf %535, %536 : vector<2x32xf32>
    %538 = math.tanh %537 : vector<2x32xf32>
    %539 = arith.mulf %525, %538 : vector<2x32xf32>
    %cst_116 = arith.constant 1.000000e+00 : f32
    %540 = vector.broadcast %cst_116 : f32 to vector<2x32xf32>
    %541 = arith.subf %540, %527 : vector<2x32xf32>
    %542 = arith.mulf %541, %534 : vector<2x32xf32>
    %543 = vector.extract_strided_slice %465 {offsets = [0, 96], sizes = [2, 32], strides = [1, 1]} : vector<2x128xf32> to vector<2x32xf32>
    %544 = arith.mulf %527, %543 : vector<2x32xf32>
    %545 = arith.addf %542, %544 : vector<2x32xf32>
    %546 = vector.extract_strided_slice %539 {offsets = [0, 0], sizes = [1, 32], strides = [1, 1]} : vector<2x32xf32> to vector<1x32xf32>
    %c2_117 = arith.constant 2 : index
    %c32_118 = arith.constant 32 : index
    %547 = vector.load %arg21[%c2_117, %c32_118] : memref<16x64xf32, #tpu.memory_space<vmem>>, vector<1x32xf32>
    tpu.vector_store %arg21[%c2_117, %c32_118], %546 {strides = array<i32>} : memref<16x64xf32, #tpu.memory_space<vmem>>, vector<1x32xf32>,
    %548 = vector.extract_strided_slice %545 {offsets = [0, 0], sizes = [1, 32], strides = [1, 1]} : vector<2x32xf32> to vector<1x32xf32>
    %c2_119 = arith.constant 2 : index
    %c32_120 = arith.constant 32 : index
    %549 = vector.load %arg22[%c2_119, %c32_120] : memref<16x64xf32, #tpu.memory_space<vmem>>, vector<1x32xf32>
    tpu.vector_store %arg22[%c2_119, %c32_120], %548 {strides = array<i32>} : memref<16x64xf32, #tpu.memory_space<vmem>>, vector<1x32xf32>,
    %550 = vector.extract_strided_slice %539 {offsets = [1, 0], sizes = [1, 32], strides = [1, 1]} : vector<2x32xf32> to vector<1x32xf32>
    %c10_121 = arith.constant 10 : index
    %c32_122 = arith.constant 32 : index
    %551 = vector.load %arg21[%c10_121, %c32_122] : memref<16x64xf32, #tpu.memory_space<vmem>>, vector<1x32xf32>
    tpu.vector_store %arg21[%c10_121, %c32_122], %550 {strides = array<i32>} : memref<16x64xf32, #tpu.memory_space<vmem>>, vector<1x32xf32>,
    %552 = vector.extract_strided_slice %545 {offsets = [1, 0], sizes = [1, 32], strides = [1, 1]} : vector<2x32xf32> to vector<1x32xf32>
    %c10_123 = arith.constant 10 : index
    %c32_124 = arith.constant 32 : index
    %553 = vector.load %arg22[%c10_123, %c32_124] : memref<16x64xf32, #tpu.memory_space<vmem>>, vector<1x32xf32>
    tpu.vector_store %arg22[%c10_123, %c32_124], %552 {strides = array<i32>} : memref<16x64xf32, #tpu.memory_space<vmem>>, vector<1x32xf32>,
    %554 = tpu.concatenate %497, %539, %503, %545 in 1 : vector<2x32xf32>, vector<2x32xf32>, vector<2x32xf32>, vector<2x32xf32> -> vector<2x128xf32>
    %555 = arith.truncf %554 : vector<2x128xf32> to vector<2x128xbf16>
    %cst_125 = arith.constant dense<0.000000e+00> : vector<2x448xf32>
    %556 = tpu.matmul %555, %16, %cst_125 {dimension_numbers = #tpu.dot_dimension_numbers<[1], [0], [0], [1], [0, 0, 1, 1], [], []>} : vector<2x128xbf16>, vector<128x448xbf16>, vector<2x448xf32> -> vector<2x448xf32>
    %557 = vector.broadcast %17 : vector<1x448xf32> to vector<2x448xf32>
    %558 = arith.addf %556, %557 : vector<2x448xf32>
    %559 = vector.extract_strided_slice %14 {offsets = [12, 0], sizes = [2, 224], strides = [1, 1]} : vector<16x448xf32> to vector<2x224xf32>
    %560 = vector.extract_strided_slice %558 {offsets = [0, 0], sizes = [2, 224], strides = [1, 1]} : vector<2x448xf32> to vector<2x224xf32>
    %561 = vector.extract_strided_slice %559 {offsets = [0, 0], sizes = [2, 192], strides = [1, 1]} : vector<2x224xf32> to vector<2x192xf32>
    %562 = vector.extract_strided_slice %560 {offsets = [0, 0], sizes = [2, 192], strides = [1, 1]} : vector<2x224xf32> to vector<2x192xf32>
    %563 = arith.addf %561, %562 : vector<2x192xf32>
    %564 = vector.extract_strided_slice %563 {offsets = [0, 0], sizes = [2, 160], strides = [1, 1]} : vector<2x192xf32> to vector<2x160xf32>
    %565 = arith.negf %564 : vector<2x160xf32>
    %566 = math.exp %565 : vector<2x160xf32>
    %cst_126 = arith.constant 1.000000e+00 : f32
    %567 = vector.broadcast %cst_126 : f32 to vector<2x160xf32>
    %568 = arith.addf %567, %566 : vector<2x160xf32>
    %569 = arith.divf %567, %568 : vector<2x160xf32>
    %570 = vector.extract_strided_slice %569 {offsets = [0, 0], sizes = [2, 32], strides = [1, 1]} : vector<2x160xf32> to vector<2x32xf32>
    %571 = vector.extract_strided_slice %569 {offsets = [0, 32], sizes = [2, 32], strides = [1, 1]} : vector<2x160xf32> to vector<2x32xf32>
    %572 = vector.extract_strided_slice %569 {offsets = [0, 64], sizes = [2, 32], strides = [1, 1]} : vector<2x160xf32> to vector<2x32xf32>
    %573 = vector.extract_strided_slice %569 {offsets = [0, 96], sizes = [2, 32], strides = [1, 1]} : vector<2x160xf32> to vector<2x32xf32>
    %574 = vector.extract_strided_slice %569 {offsets = [0, 128], sizes = [2, 32], strides = [1, 1]} : vector<2x160xf32> to vector<2x32xf32>
    %575 = vector.extract_strided_slice %563 {offsets = [0, 160], sizes = [2, 32], strides = [1, 1]} : vector<2x192xf32> to vector<2x32xf32>
    %576 = math.tanh %575 : vector<2x32xf32>
    %577 = vector.extract_strided_slice %559 {offsets = [0, 192], sizes = [2, 32], strides = [1, 1]} : vector<2x224xf32> to vector<2x32xf32>
    %578 = vector.extract_strided_slice %560 {offsets = [0, 192], sizes = [2, 32], strides = [1, 1]} : vector<2x224xf32> to vector<2x32xf32>
    %579 = arith.mulf %573, %578 : vector<2x32xf32>
    %580 = arith.addf %577, %579 : vector<2x32xf32>
    %581 = math.tanh %580 : vector<2x32xf32>
    %582 = arith.mulf %571, %495 : vector<2x32xf32>
    %583 = arith.mulf %570, %576 : vector<2x32xf32>
    %584 = arith.addf %582, %583 : vector<2x32xf32>
    %585 = math.tanh %584 : vector<2x32xf32>
    %586 = arith.mulf %572, %585 : vector<2x32xf32>
    %cst_127 = arith.constant 1.000000e+00 : f32
    %587 = vector.broadcast %cst_127 : f32 to vector<2x32xf32>
    %588 = arith.subf %587, %574 : vector<2x32xf32>
    %589 = arith.mulf %588, %581 : vector<2x32xf32>
    %590 = vector.extract_strided_slice %554 {offsets = [0, 64], sizes = [2, 32], strides = [1, 1]} : vector<2x128xf32> to vector<2x32xf32>
    %591 = arith.mulf %574, %590 : vector<2x32xf32>
    %592 = arith.addf %589, %591 : vector<2x32xf32>
    %593 = vector.extract_strided_slice %586 {offsets = [0, 0], sizes = [1, 32], strides = [1, 1]} : vector<2x32xf32> to vector<1x32xf32>
    %c6_128 = arith.constant 6 : index
    %c0_129 = arith.constant 0 : index
    %594 = vector.load %arg21[%c6_128, %c0_129] : memref<16x64xf32, #tpu.memory_space<vmem>>, vector<1x32xf32>
    tpu.vector_store %arg21[%c6_128, %c0_129], %593 {strides = array<i32>} : memref<16x64xf32, #tpu.memory_space<vmem>>, vector<1x32xf32>,
    %595 = vector.extract_strided_slice %592 {offsets = [0, 0], sizes = [1, 32], strides = [1, 1]} : vector<2x32xf32> to vector<1x32xf32>
    %c6_130 = arith.constant 6 : index
    %c0_131 = arith.constant 0 : index
    %596 = vector.load %arg22[%c6_130, %c0_131] : memref<16x64xf32, #tpu.memory_space<vmem>>, vector<1x32xf32>
    tpu.vector_store %arg22[%c6_130, %c0_131], %595 {strides = array<i32>} : memref<16x64xf32, #tpu.memory_space<vmem>>, vector<1x32xf32>,
    %597 = vector.extract_strided_slice %586 {offsets = [1, 0], sizes = [1, 32], strides = [1, 1]} : vector<2x32xf32> to vector<1x32xf32>
    %c14_132 = arith.constant 14 : index
    %c0_133 = arith.constant 0 : index
    %598 = vector.load %arg21[%c14_132, %c0_133] : memref<16x64xf32, #tpu.memory_space<vmem>>, vector<1x32xf32>
    tpu.vector_store %arg21[%c14_132, %c0_133], %597 {strides = array<i32>} : memref<16x64xf32, #tpu.memory_space<vmem>>, vector<1x32xf32>,
    %599 = vector.extract_strided_slice %592 {offsets = [1, 0], sizes = [1, 32], strides = [1, 1]} : vector<2x32xf32> to vector<1x32xf32>
    %c14_134 = arith.constant 14 : index
    %c0_135 = arith.constant 0 : index
    %600 = vector.load %arg22[%c14_134, %c0_135] : memref<16x64xf32, #tpu.memory_space<vmem>>, vector<1x32xf32>
    tpu.vector_store %arg22[%c14_134, %c0_135], %599 {strides = array<i32>} : memref<16x64xf32, #tpu.memory_space<vmem>>, vector<1x32xf32>,
    %601 = vector.extract_strided_slice %14 {offsets = [2, 224], sizes = [2, 224], strides = [1, 1]} : vector<16x448xf32> to vector<2x224xf32>
    %602 = vector.extract_strided_slice %558 {offsets = [0, 224], sizes = [2, 224], strides = [1, 1]} : vector<2x448xf32> to vector<2x224xf32>
    %603 = vector.extract_strided_slice %601 {offsets = [0, 0], sizes = [2, 192], strides = [1, 1]} : vector<2x224xf32> to vector<2x192xf32>
    %604 = vector.extract_strided_slice %602 {offsets = [0, 0], sizes = [2, 192], strides = [1, 1]} : vector<2x224xf32> to vector<2x192xf32>
    %605 = arith.addf %603, %604 : vector<2x192xf32>
    %606 = vector.extract_strided_slice %605 {offsets = [0, 0], sizes = [2, 160], strides = [1, 1]} : vector<2x192xf32> to vector<2x160xf32>
    %607 = arith.negf %606 : vector<2x160xf32>
    %608 = math.exp %607 : vector<2x160xf32>
    %cst_136 = arith.constant 1.000000e+00 : f32
    %609 = vector.broadcast %cst_136 : f32 to vector<2x160xf32>
    %610 = arith.addf %609, %608 : vector<2x160xf32>
    %611 = arith.divf %609, %610 : vector<2x160xf32>
    %612 = vector.extract_strided_slice %611 {offsets = [0, 0], sizes = [2, 32], strides = [1, 1]} : vector<2x160xf32> to vector<2x32xf32>
    %613 = vector.extract_strided_slice %611 {offsets = [0, 32], sizes = [2, 32], strides = [1, 1]} : vector<2x160xf32> to vector<2x32xf32>
    %614 = vector.extract_strided_slice %611 {offsets = [0, 64], sizes = [2, 32], strides = [1, 1]} : vector<2x160xf32> to vector<2x32xf32>
    %615 = vector.extract_strided_slice %611 {offsets = [0, 96], sizes = [2, 32], strides = [1, 1]} : vector<2x160xf32> to vector<2x32xf32>
    %616 = vector.extract_strided_slice %611 {offsets = [0, 128], sizes = [2, 32], strides = [1, 1]} : vector<2x160xf32> to vector<2x32xf32>
    %617 = vector.extract_strided_slice %605 {offsets = [0, 160], sizes = [2, 32], strides = [1, 1]} : vector<2x192xf32> to vector<2x32xf32>
    %618 = math.tanh %617 : vector<2x32xf32>
    %619 = vector.extract_strided_slice %601 {offsets = [0, 192], sizes = [2, 32], strides = [1, 1]} : vector<2x224xf32> to vector<2x32xf32>
    %620 = vector.extract_strided_slice %602 {offsets = [0, 192], sizes = [2, 32], strides = [1, 1]} : vector<2x224xf32> to vector<2x32xf32>
    %621 = arith.mulf %615, %620 : vector<2x32xf32>
    %622 = arith.addf %619, %621 : vector<2x32xf32>
    %623 = math.tanh %622 : vector<2x32xf32>
    %624 = arith.mulf %613, %537 : vector<2x32xf32>
    %625 = arith.mulf %612, %618 : vector<2x32xf32>
    %626 = arith.addf %624, %625 : vector<2x32xf32>
    %627 = math.tanh %626 : vector<2x32xf32>
    %628 = arith.mulf %614, %627 : vector<2x32xf32>
    %cst_137 = arith.constant 1.000000e+00 : f32
    %629 = vector.broadcast %cst_137 : f32 to vector<2x32xf32>
    %630 = arith.subf %629, %616 : vector<2x32xf32>
    %631 = arith.mulf %630, %623 : vector<2x32xf32>
    %632 = vector.extract_strided_slice %554 {offsets = [0, 96], sizes = [2, 32], strides = [1, 1]} : vector<2x128xf32> to vector<2x32xf32>
    %633 = arith.mulf %616, %632 : vector<2x32xf32>
    %634 = arith.addf %631, %633 : vector<2x32xf32>
    %635 = vector.extract_strided_slice %628 {offsets = [0, 0], sizes = [1, 32], strides = [1, 1]} : vector<2x32xf32> to vector<1x32xf32>
    %c1_138 = arith.constant 1 : index
    %c32_139 = arith.constant 32 : index
    %636 = vector.load %arg21[%c1_138, %c32_139] : memref<16x64xf32, #tpu.memory_space<vmem>>, vector<1x32xf32>
    tpu.vector_store %arg21[%c1_138, %c32_139], %635 {strides = array<i32>} : memref<16x64xf32, #tpu.memory_space<vmem>>, vector<1x32xf32>,
    %637 = vector.extract_strided_slice %634 {offsets = [0, 0], sizes = [1, 32], strides = [1, 1]} : vector<2x32xf32> to vector<1x32xf32>
    %c1_140 = arith.constant 1 : index
    %c32_141 = arith.constant 32 : index
    %638 = vector.load %arg22[%c1_140, %c32_141] : memref<16x64xf32, #tpu.memory_space<vmem>>, vector<1x32xf32>
    tpu.vector_store %arg22[%c1_140, %c32_141], %637 {strides = array<i32>} : memref<16x64xf32, #tpu.memory_space<vmem>>, vector<1x32xf32>,
    %639 = vector.extract_strided_slice %628 {offsets = [1, 0], sizes = [1, 32], strides = [1, 1]} : vector<2x32xf32> to vector<1x32xf32>
    %c9_142 = arith.constant 9 : index
    %c32_143 = arith.constant 32 : index
    %640 = vector.load %arg21[%c9_142, %c32_143] : memref<16x64xf32, #tpu.memory_space<vmem>>, vector<1x32xf32>
    tpu.vector_store %arg21[%c9_142, %c32_143], %639 {strides = array<i32>} : memref<16x64xf32, #tpu.memory_space<vmem>>, vector<1x32xf32>,
    %641 = vector.extract_strided_slice %634 {offsets = [1, 0], sizes = [1, 32], strides = [1, 1]} : vector<2x32xf32> to vector<1x32xf32>
    %c9_144 = arith.constant 9 : index
    %c32_145 = arith.constant 32 : index
    %642 = vector.load %arg22[%c9_144, %c32_145] : memref<16x64xf32, #tpu.memory_space<vmem>>, vector<1x32xf32>
    tpu.vector_store %arg22[%c9_144, %c32_145], %641 {strides = array<i32>} : memref<16x64xf32, #tpu.memory_space<vmem>>, vector<1x32xf32>,
    %643 = tpu.concatenate %586, %628, %592, %634 in 1 : vector<2x32xf32>, vector<2x32xf32>, vector<2x32xf32>, vector<2x32xf32> -> vector<2x128xf32>
    %644 = arith.truncf %643 : vector<2x128xf32> to vector<2x128xbf16>
    %cst_146 = arith.constant dense<0.000000e+00> : vector<2x448xf32>
    %645 = tpu.matmul %644, %16, %cst_146 {dimension_numbers = #tpu.dot_dimension_numbers<[1], [0], [0], [1], [0, 0, 1, 1], [], []>} : vector<2x128xbf16>, vector<128x448xbf16>, vector<2x448xf32> -> vector<2x448xf32>
    %646 = vector.broadcast %17 : vector<1x448xf32> to vector<2x448xf32>
    %647 = arith.addf %645, %646 : vector<2x448xf32>
    %648 = vector.extract_strided_slice %14 {offsets = [14, 0], sizes = [2, 224], strides = [1, 1]} : vector<16x448xf32> to vector<2x224xf32>
    %649 = vector.extract_strided_slice %647 {offsets = [0, 0], sizes = [2, 224], strides = [1, 1]} : vector<2x448xf32> to vector<2x224xf32>
    %650 = vector.extract_strided_slice %648 {offsets = [0, 0], sizes = [2, 192], strides = [1, 1]} : vector<2x224xf32> to vector<2x192xf32>
    %651 = vector.extract_strided_slice %649 {offsets = [0, 0], sizes = [2, 192], strides = [1, 1]} : vector<2x224xf32> to vector<2x192xf32>
    %652 = arith.addf %650, %651 : vector<2x192xf32>
    %653 = vector.extract_strided_slice %652 {offsets = [0, 0], sizes = [2, 160], strides = [1, 1]} : vector<2x192xf32> to vector<2x160xf32>
    %654 = arith.negf %653 : vector<2x160xf32>
    %655 = math.exp %654 : vector<2x160xf32>
    %cst_147 = arith.constant 1.000000e+00 : f32
    %656 = vector.broadcast %cst_147 : f32 to vector<2x160xf32>
    %657 = arith.addf %656, %655 : vector<2x160xf32>
    %658 = arith.divf %656, %657 : vector<2x160xf32>
    %659 = vector.extract_strided_slice %658 {offsets = [0, 0], sizes = [2, 32], strides = [1, 1]} : vector<2x160xf32> to vector<2x32xf32>
    %660 = vector.extract_strided_slice %658 {offsets = [0, 32], sizes = [2, 32], strides = [1, 1]} : vector<2x160xf32> to vector<2x32xf32>
    %661 = vector.extract_strided_slice %658 {offsets = [0, 64], sizes = [2, 32], strides = [1, 1]} : vector<2x160xf32> to vector<2x32xf32>
    %662 = vector.extract_strided_slice %658 {offsets = [0, 96], sizes = [2, 32], strides = [1, 1]} : vector<2x160xf32> to vector<2x32xf32>
    %663 = vector.extract_strided_slice %658 {offsets = [0, 128], sizes = [2, 32], strides = [1, 1]} : vector<2x160xf32> to vector<2x32xf32>
    %664 = vector.extract_strided_slice %652 {offsets = [0, 160], sizes = [2, 32], strides = [1, 1]} : vector<2x192xf32> to vector<2x32xf32>
    %665 = math.tanh %664 : vector<2x32xf32>
    %666 = vector.extract_strided_slice %648 {offsets = [0, 192], sizes = [2, 32], strides = [1, 1]} : vector<2x224xf32> to vector<2x32xf32>
    %667 = vector.extract_strided_slice %649 {offsets = [0, 192], sizes = [2, 32], strides = [1, 1]} : vector<2x224xf32> to vector<2x32xf32>
    %668 = arith.mulf %662, %667 : vector<2x32xf32>
    %669 = arith.addf %666, %668 : vector<2x32xf32>
    %670 = math.tanh %669 : vector<2x32xf32>
    %671 = arith.mulf %660, %584 : vector<2x32xf32>
    %672 = arith.mulf %659, %665 : vector<2x32xf32>
    %673 = arith.addf %671, %672 : vector<2x32xf32>
    %674 = math.tanh %673 : vector<2x32xf32>
    %675 = arith.mulf %661, %674 : vector<2x32xf32>
    %cst_148 = arith.constant 1.000000e+00 : f32
    %676 = vector.broadcast %cst_148 : f32 to vector<2x32xf32>
    %677 = arith.subf %676, %663 : vector<2x32xf32>
    %678 = arith.mulf %677, %670 : vector<2x32xf32>
    %679 = vector.extract_strided_slice %643 {offsets = [0, 64], sizes = [2, 32], strides = [1, 1]} : vector<2x128xf32> to vector<2x32xf32>
    %680 = arith.mulf %663, %679 : vector<2x32xf32>
    %681 = arith.addf %678, %680 : vector<2x32xf32>
    %682 = vector.extract_strided_slice %675 {offsets = [0, 0], sizes = [1, 32], strides = [1, 1]} : vector<2x32xf32> to vector<1x32xf32>
    %c7_149 = arith.constant 7 : index
    %c0_150 = arith.constant 0 : index
    %683 = vector.load %arg21[%c7_149, %c0_150] : memref<16x64xf32, #tpu.memory_space<vmem>>, vector<1x32xf32>
    tpu.vector_store %arg21[%c7_149, %c0_150], %682 {strides = array<i32>} : memref<16x64xf32, #tpu.memory_space<vmem>>, vector<1x32xf32>,
    %684 = vector.extract_strided_slice %681 {offsets = [0, 0], sizes = [1, 32], strides = [1, 1]} : vector<2x32xf32> to vector<1x32xf32>
    %c7_151 = arith.constant 7 : index
    %c0_152 = arith.constant 0 : index
    %685 = vector.load %arg22[%c7_151, %c0_152] : memref<16x64xf32, #tpu.memory_space<vmem>>, vector<1x32xf32>
    tpu.vector_store %arg22[%c7_151, %c0_152], %684 {strides = array<i32>} : memref<16x64xf32, #tpu.memory_space<vmem>>, vector<1x32xf32>,
    %686 = vector.extract_strided_slice %675 {offsets = [1, 0], sizes = [1, 32], strides = [1, 1]} : vector<2x32xf32> to vector<1x32xf32>
    %c15_153 = arith.constant 15 : index
    %c0_154 = arith.constant 0 : index
    %687 = vector.load %arg21[%c15_153, %c0_154] : memref<16x64xf32, #tpu.memory_space<vmem>>, vector<1x32xf32>
    tpu.vector_store %arg21[%c15_153, %c0_154], %686 {strides = array<i32>} : memref<16x64xf32, #tpu.memory_space<vmem>>, vector<1x32xf32>,
    %688 = vector.extract_strided_slice %681 {offsets = [1, 0], sizes = [1, 32], strides = [1, 1]} : vector<2x32xf32> to vector<1x32xf32>
    %c15_155 = arith.constant 15 : index
    %c0_156 = arith.constant 0 : index
    %689 = vector.load %arg22[%c15_155, %c0_156] : memref<16x64xf32, #tpu.memory_space<vmem>>, vector<1x32xf32>
    tpu.vector_store %arg22[%c15_155, %c0_156], %688 {strides = array<i32>} : memref<16x64xf32, #tpu.memory_space<vmem>>, vector<1x32xf32>,
    %690 = vector.extract_strided_slice %14 {offsets = [0, 224], sizes = [2, 224], strides = [1, 1]} : vector<16x448xf32> to vector<2x224xf32>
    %691 = vector.extract_strided_slice %647 {offsets = [0, 224], sizes = [2, 224], strides = [1, 1]} : vector<2x448xf32> to vector<2x224xf32>
    %692 = vector.extract_strided_slice %690 {offsets = [0, 0], sizes = [2, 192], strides = [1, 1]} : vector<2x224xf32> to vector<2x192xf32>
    %693 = vector.extract_strided_slice %691 {offsets = [0, 0], sizes = [2, 192], strides = [1, 1]} : vector<2x224xf32> to vector<2x192xf32>
    %694 = arith.addf %692, %693 : vector<2x192xf32>
    %695 = vector.extract_strided_slice %694 {offsets = [0, 0], sizes = [2, 160], strides = [1, 1]} : vector<2x192xf32> to vector<2x160xf32>
    %696 = arith.negf %695 : vector<2x160xf32>
    %697 = math.exp %696 : vector<2x160xf32>
    %cst_157 = arith.constant 1.000000e+00 : f32
    %698 = vector.broadcast %cst_157 : f32 to vector<2x160xf32>
    %699 = arith.addf %698, %697 : vector<2x160xf32>
    %700 = arith.divf %698, %699 : vector<2x160xf32>
    %701 = vector.extract_strided_slice %700 {offsets = [0, 0], sizes = [2, 32], strides = [1, 1]} : vector<2x160xf32> to vector<2x32xf32>
    %702 = vector.extract_strided_slice %700 {offsets = [0, 32], sizes = [2, 32], strides = [1, 1]} : vector<2x160xf32> to vector<2x32xf32>
    %703 = vector.extract_strided_slice %700 {offsets = [0, 64], sizes = [2, 32], strides = [1, 1]} : vector<2x160xf32> to vector<2x32xf32>
    %704 = vector.extract_strided_slice %700 {offsets = [0, 96], sizes = [2, 32], strides = [1, 1]} : vector<2x160xf32> to vector<2x32xf32>
    %705 = vector.extract_strided_slice %700 {offsets = [0, 128], sizes = [2, 32], strides = [1, 1]} : vector<2x160xf32> to vector<2x32xf32>
    %706 = vector.extract_strided_slice %694 {offsets = [0, 160], sizes = [2, 32], strides = [1, 1]} : vector<2x192xf32> to vector<2x32xf32>
    %707 = math.tanh %706 : vector<2x32xf32>
    %708 = vector.extract_strided_slice %690 {offsets = [0, 192], sizes = [2, 32], strides = [1, 1]} : vector<2x224xf32> to vector<2x32xf32>
    %709 = vector.extract_strided_slice %691 {offsets = [0, 192], sizes = [2, 32], strides = [1, 1]} : vector<2x224xf32> to vector<2x32xf32>
    %710 = arith.mulf %704, %709 : vector<2x32xf32>
    %711 = arith.addf %708, %710 : vector<2x32xf32>
    %712 = math.tanh %711 : vector<2x32xf32>
    %713 = arith.mulf %702, %626 : vector<2x32xf32>
    %714 = arith.mulf %701, %707 : vector<2x32xf32>
    %715 = arith.addf %713, %714 : vector<2x32xf32>
    %716 = math.tanh %715 : vector<2x32xf32>
    %717 = arith.mulf %703, %716 : vector<2x32xf32>
    %cst_158 = arith.constant 1.000000e+00 : f32
    %718 = vector.broadcast %cst_158 : f32 to vector<2x32xf32>
    %719 = arith.subf %718, %705 : vector<2x32xf32>
    %720 = arith.mulf %719, %712 : vector<2x32xf32>
    %721 = vector.extract_strided_slice %643 {offsets = [0, 96], sizes = [2, 32], strides = [1, 1]} : vector<2x128xf32> to vector<2x32xf32>
    %722 = arith.mulf %705, %721 : vector<2x32xf32>
    %723 = arith.addf %720, %722 : vector<2x32xf32>
    %724 = vector.extract_strided_slice %717 {offsets = [0, 0], sizes = [1, 32], strides = [1, 1]} : vector<2x32xf32> to vector<1x32xf32>
    %c0_159 = arith.constant 0 : index
    %c32_160 = arith.constant 32 : index
    %725 = vector.load %arg21[%c0_159, %c32_160] : memref<16x64xf32, #tpu.memory_space<vmem>>, vector<1x32xf32>
    tpu.vector_store %arg21[%c0_159, %c32_160], %724 {strides = array<i32>} : memref<16x64xf32, #tpu.memory_space<vmem>>, vector<1x32xf32>,
    %726 = vector.extract_strided_slice %723 {offsets = [0, 0], sizes = [1, 32], strides = [1, 1]} : vector<2x32xf32> to vector<1x32xf32>
    %c0_161 = arith.constant 0 : index
    %c32_162 = arith.constant 32 : index
    %727 = vector.load %arg22[%c0_161, %c32_162] : memref<16x64xf32, #tpu.memory_space<vmem>>, vector<1x32xf32>
    tpu.vector_store %arg22[%c0_161, %c32_162], %726 {strides = array<i32>} : memref<16x64xf32, #tpu.memory_space<vmem>>, vector<1x32xf32>,
    %728 = vector.extract_strided_slice %717 {offsets = [1, 0], sizes = [1, 32], strides = [1, 1]} : vector<2x32xf32> to vector<1x32xf32>
    %c8_163 = arith.constant 8 : index
    %c32_164 = arith.constant 32 : index
    %729 = vector.load %arg21[%c8_163, %c32_164] : memref<16x64xf32, #tpu.memory_space<vmem>>, vector<1x32xf32>
    tpu.vector_store %arg21[%c8_163, %c32_164], %728 {strides = array<i32>} : memref<16x64xf32, #tpu.memory_space<vmem>>, vector<1x32xf32>,
    %730 = vector.extract_strided_slice %723 {offsets = [1, 0], sizes = [1, 32], strides = [1, 1]} : vector<2x32xf32> to vector<1x32xf32>
    %c8_165 = arith.constant 8 : index
    %c32_166 = arith.constant 32 : index
    %731 = vector.load %arg22[%c8_165, %c32_166] : memref<16x64xf32, #tpu.memory_space<vmem>>, vector<1x32xf32>
    tpu.vector_store %arg22[%c8_165, %c32_166], %730 {strides = array<i32>} : memref<16x64xf32, #tpu.memory_space<vmem>>, vector<1x32xf32>,
    %c0_167 = arith.constant 0 : index
    %c0_168 = arith.constant 0 : index
    %732 = vector.load %arg21[%c0_167, %c0_168] : memref<16x64xf32, #tpu.memory_space<vmem>>, vector<16x64xf32>
    %c0_169 = arith.constant 0 : index
    %c0_170 = arith.constant 0 : index
    %733 = vector.load %arg22[%c0_169, %c0_170] : memref<16x64xf32, #tpu.memory_space<vmem>>, vector<16x64xf32>
    %734 = tpu.concatenate %732, %733 in 0 : vector<16x64xf32>, vector<16x64xf32> -> vector<32x64xf32>
    %735 = arith.truncf %734 : vector<32x64xf32> to vector<32x64xbf16>
    %c0_171 = arith.constant 0 : index
    %c0_172 = arith.constant 0 : index
    %736 = vector.load %arg6[%c0_171, %c0_172] : memref<64x350xf32, #tpu.memory_space<vmem>>, vector<64x350xf32>
    %737 = arith.truncf %736 : vector<64x350xf32> to vector<64x350xbf16>
    %cst_173 = arith.constant dense<0.000000e+00> : vector<32x350xf32>
    %738 = tpu.matmul %735, %737, %cst_173 {dimension_numbers = #tpu.dot_dimension_numbers<[1], [0], [0], [1], [0, 0, 1, 1], [], []>} : vector<32x64xbf16>, vector<64x350xbf16>, vector<32x350xf32> -> vector<32x350xf32>
    %c0_174 = arith.constant 0 : index
    %c0_175 = arith.constant 0 : index
    %739 = vector.load %arg7[%c0_174, %c0_175] : memref<1x350xf32, #tpu.memory_space<vmem>>, vector<1x350xf32>
    %740 = vector.broadcast %739 : vector<1x350xf32> to vector<32x350xf32>
    %741 = arith.addf %738, %740 : vector<32x350xf32>
    %742 = math.tanh %741 : vector<32x350xf32>
    %743 = arith.truncf %742 : vector<32x350xf32> to vector<32x350xbf16>
    %c0_176 = arith.constant 0 : index
    %c0_177 = arith.constant 0 : index
    %744 = vector.load %arg8[%c0_176, %c0_177] : memref<350x30xf32, #tpu.memory_space<vmem>>, vector<350x30xf32>
    %745 = arith.truncf %744 : vector<350x30xf32> to vector<350x30xbf16>
    %cst_178 = arith.constant dense<0.000000e+00> : vector<32x30xf32>
    %746 = tpu.matmul %743, %745, %cst_178 {dimension_numbers = #tpu.dot_dimension_numbers<[1], [0], [0], [1], [0, 0, 1, 1], [], []>} : vector<32x350xbf16>, vector<350x30xbf16>, vector<32x30xf32> -> vector<32x30xf32>
    %c0_179 = arith.constant 0 : index
    %c0_180 = arith.constant 0 : index
    %747 = vector.load %arg9[%c0_179, %c0_180] : memref<1x30xf32, #tpu.memory_space<vmem>>, vector<1x30xf32>
    %748 = vector.broadcast %747 : vector<1x30xf32> to vector<32x30xf32>
    %749 = arith.addf %746, %748 : vector<32x30xf32>
    %750 = vector.extract_strided_slice %749 {offsets = [0, 0], sizes = [8, 30], strides = [1, 1]} : vector<32x30xf32> to vector<8x30xf32>
    %cst_181 = arith.constant dense<0xFF800000> : vector<30xf32>
    %751 = vector.multi_reduction <maximumf>, %750, %cst_181 [0] : vector<8x30xf32> to vector<30xf32>
    %752 = vector.shape_cast %751 : vector<30xf32> to vector<1x30xf32>
    %753 = vector.broadcast %752 : vector<1x30xf32> to vector<8x30xf32>
    %754 = arith.subf %750, %753 : vector<8x30xf32>
    %755 = math.exp %754 : vector<8x30xf32>
    %cst_182 = arith.constant dense<0.000000e+00> : vector<30xf32>
    %756 = vector.multi_reduction <add>, %755, %cst_182 [0] : vector<8x30xf32> to vector<30xf32>
    %757 = vector.shape_cast %756 : vector<30xf32> to vector<1x30xf32>
    %758 = vector.broadcast %757 : vector<1x30xf32> to vector<8x30xf32>
    %759 = arith.divf %755, %758 : vector<8x30xf32>
    %760 = vector.extract_strided_slice %734 {offsets = [0, 0], sizes = [8, 64], strides = [1, 1]} : vector<32x64xf32> to vector<8x64xf32>
    %cst_183 = arith.constant dense<0.000000e+00> : vector<30x64xf32>
    %761 = tpu.matmul %759, %760, %cst_183 {dimension_numbers = #tpu.dot_dimension_numbers<[0], [0], [1], [1], [0, 1, 1, 1], [], []>} : vector<8x30xf32>, vector<8x64xf32>, vector<30x64xf32> -> vector<30x64xf32>
    %762 = vector.extract_strided_slice %749 {offsets = [8, 0], sizes = [8, 30], strides = [1, 1]} : vector<32x30xf32> to vector<8x30xf32>
    %cst_184 = arith.constant dense<0xFF800000> : vector<30xf32>
    %763 = vector.multi_reduction <maximumf>, %762, %cst_184 [0] : vector<8x30xf32> to vector<30xf32>
    %764 = vector.shape_cast %763 : vector<30xf32> to vector<1x30xf32>
    %765 = vector.broadcast %764 : vector<1x30xf32> to vector<8x30xf32>
    %766 = arith.subf %762, %765 : vector<8x30xf32>
    %767 = math.exp %766 : vector<8x30xf32>
    %cst_185 = arith.constant dense<0.000000e+00> : vector<30xf32>
    %768 = vector.multi_reduction <add>, %767, %cst_185 [0] : vector<8x30xf32> to vector<30xf32>
    %769 = vector.shape_cast %768 : vector<30xf32> to vector<1x30xf32>
    %770 = vector.broadcast %769 : vector<1x30xf32> to vector<8x30xf32>
    %771 = arith.divf %767, %770 : vector<8x30xf32>
    %772 = vector.extract_strided_slice %734 {offsets = [8, 0], sizes = [8, 64], strides = [1, 1]} : vector<32x64xf32> to vector<8x64xf32>
    %cst_186 = arith.constant dense<0.000000e+00> : vector<30x64xf32>
    %773 = tpu.matmul %771, %772, %cst_186 {dimension_numbers = #tpu.dot_dimension_numbers<[0], [0], [1], [1], [0, 1, 1, 1], [], []>} : vector<8x30xf32>, vector<8x64xf32>, vector<30x64xf32> -> vector<30x64xf32>
    %774 = vector.extract_strided_slice %749 {offsets = [16, 0], sizes = [8, 30], strides = [1, 1]} : vector<32x30xf32> to vector<8x30xf32>
    %cst_187 = arith.constant dense<0xFF800000> : vector<30xf32>
    %775 = vector.multi_reduction <maximumf>, %774, %cst_187 [0] : vector<8x30xf32> to vector<30xf32>
    %776 = vector.shape_cast %775 : vector<30xf32> to vector<1x30xf32>
    %777 = vector.broadcast %776 : vector<1x30xf32> to vector<8x30xf32>
    %778 = arith.subf %774, %777 : vector<8x30xf32>
    %779 = math.exp %778 : vector<8x30xf32>
    %cst_188 = arith.constant dense<0.000000e+00> : vector<30xf32>
    %780 = vector.multi_reduction <add>, %779, %cst_188 [0] : vector<8x30xf32> to vector<30xf32>
    %781 = vector.shape_cast %780 : vector<30xf32> to vector<1x30xf32>
    %782 = vector.broadcast %781 : vector<1x30xf32> to vector<8x30xf32>
    %783 = arith.divf %779, %782 : vector<8x30xf32>
    %784 = vector.extract_strided_slice %734 {offsets = [16, 0], sizes = [8, 64], strides = [1, 1]} : vector<32x64xf32> to vector<8x64xf32>
    %cst_189 = arith.constant dense<0.000000e+00> : vector<30x64xf32>
    %785 = tpu.matmul %783, %784, %cst_189 {dimension_numbers = #tpu.dot_dimension_numbers<[0], [0], [1], [1], [0, 1, 1, 1], [], []>} : vector<8x30xf32>, vector<8x64xf32>, vector<30x64xf32> -> vector<30x64xf32>
    %786 = vector.extract_strided_slice %749 {offsets = [24, 0], sizes = [8, 30], strides = [1, 1]} : vector<32x30xf32> to vector<8x30xf32>
    %cst_190 = arith.constant dense<0xFF800000> : vector<30xf32>
    %787 = vector.multi_reduction <maximumf>, %786, %cst_190 [0] : vector<8x30xf32> to vector<30xf32>
    %788 = vector.shape_cast %787 : vector<30xf32> to vector<1x30xf32>
    %789 = vector.broadcast %788 : vector<1x30xf32> to vector<8x30xf32>
    %790 = arith.subf %786, %789 : vector<8x30xf32>
    %791 = math.exp %790 : vector<8x30xf32>
    %cst_191 = arith.constant dense<0.000000e+00> : vector<30xf32>
    %792 = vector.multi_reduction <add>, %791, %cst_191 [0] : vector<8x30xf32> to vector<30xf32>
    %793 = vector.shape_cast %792 : vector<30xf32> to vector<1x30xf32>
    %794 = vector.broadcast %793 : vector<1x30xf32> to vector<8x30xf32>
    %795 = arith.divf %791, %794 : vector<8x30xf32>
    %796 = vector.extract_strided_slice %734 {offsets = [24, 0], sizes = [8, 64], strides = [1, 1]} : vector<32x64xf32> to vector<8x64xf32>
    %cst_192 = arith.constant dense<0.000000e+00> : vector<30x64xf32>
    %797 = tpu.matmul %795, %796, %cst_192 {dimension_numbers = #tpu.dot_dimension_numbers<[0], [0], [1], [1], [0, 1, 1, 1], [], []>} : vector<8x30xf32>, vector<8x64xf32>, vector<30x64xf32> -> vector<30x64xf32>
    %798 = tpu.concatenate %761, %773, %785, %797 in 0 : vector<30x64xf32>, vector<30x64xf32>, vector<30x64xf32>, vector<30x64xf32> -> vector<120x64xf32>
    %cst_193 = arith.constant 0.000000e+00 : f32
    %799 = vector.broadcast %cst_193 : f32 to vector<2x64xf32>
    %800 = tpu.concatenate %798, %799 in 0 : vector<120x64xf32>, vector<2x64xf32> -> vector<122x64xf32>
    %801 = vector.extract_strided_slice %800 {offsets = [0, 0], sizes = [120, 64], strides = [1, 1]} : vector<122x64xf32> to vector<120x64xf32>
    %802 = vector.extract_strided_slice %800 {offsets = [1, 0], sizes = [120, 64], strides = [1, 1]} : vector<122x64xf32> to vector<120x64xf32>
    %803 = vector.extract_strided_slice %800 {offsets = [2, 0], sizes = [120, 64], strides = [1, 1]} : vector<122x64xf32> to vector<120x64xf32>
    %804 = tpu.concatenate %801, %802, %803 in 1 : vector<120x64xf32>, vector<120x64xf32>, vector<120x64xf32> -> vector<120x192xf32>
    %805 = arith.truncf %804 : vector<120x192xf32> to vector<120x192xbf16>
    %c0_194 = arith.constant 0 : index
    %c0_195 = arith.constant 0 : index
    %806 = vector.load %arg10[%c0_194, %c0_195] : memref<192x64xf32, #tpu.memory_space<vmem>>, vector<192x64xf32>
    %807 = arith.truncf %806 : vector<192x64xf32> to vector<192x64xbf16>
    %cst_196 = arith.constant dense<0.000000e+00> : vector<120x64xf32>
    %808 = tpu.matmul %805, %807, %cst_196 {dimension_numbers = #tpu.dot_dimension_numbers<[1], [0], [0], [1], [0, 0, 1, 1], [], []>} : vector<120x192xbf16>, vector<192x64xbf16>, vector<120x64xf32> -> vector<120x64xf32>
    %c0_197 = arith.constant 0 : index
    %c0_198 = arith.constant 0 : index
    %809 = vector.load %arg11[%c0_197, %c0_198] : memref<1x64xf32, #tpu.memory_space<vmem>>, vector<1x64xf32>
    %810 = vector.broadcast %809 : vector<1x64xf32> to vector<120x64xf32>
    %811 = arith.addf %808, %810 : vector<120x64xf32>
    %812 = vector.extract_strided_slice %811 {offsets = [0, 0], sizes = [29, 64], strides = [1, 1]} : vector<120x64xf32> to vector<29x64xf32>
    %cst_199 = arith.constant dense<0xFF800000> : vector<64xf32>
    %813 = vector.multi_reduction <maximumf>, %812, %cst_199 [0] : vector<29x64xf32> to vector<64xf32>
    %814 = vector.shape_cast %813 : vector<64xf32> to vector<1x64xf32>
    %cst_200 = arith.constant dense<0.000000e+00> : vector<64xf32>
    %815 = vector.multi_reduction <add>, %812, %cst_200 [0] : vector<29x64xf32> to vector<64xf32>
    %816 = vector.shape_cast %815 : vector<64xf32> to vector<1x64xf32>
    %cst_201 = arith.constant 0.0344827585 : f32
    %817 = vector.broadcast %cst_201 : f32 to vector<1x64xf32>
    %818 = arith.mulf %816, %817 : vector<1x64xf32>
    %819 = vector.extract_strided_slice %811 {offsets = [30, 0], sizes = [29, 64], strides = [1, 1]} : vector<120x64xf32> to vector<29x64xf32>
    %cst_202 = arith.constant dense<0xFF800000> : vector<64xf32>
    %820 = vector.multi_reduction <maximumf>, %819, %cst_202 [0] : vector<29x64xf32> to vector<64xf32>
    %821 = vector.shape_cast %820 : vector<64xf32> to vector<1x64xf32>
    %cst_203 = arith.constant dense<0.000000e+00> : vector<64xf32>
    %822 = vector.multi_reduction <add>, %819, %cst_203 [0] : vector<29x64xf32> to vector<64xf32>
    %823 = vector.shape_cast %822 : vector<64xf32> to vector<1x64xf32>
    %cst_204 = arith.constant 0.0344827585 : f32
    %824 = vector.broadcast %cst_204 : f32 to vector<1x64xf32>
    %825 = arith.mulf %823, %824 : vector<1x64xf32>
    %826 = vector.extract_strided_slice %811 {offsets = [60, 0], sizes = [29, 64], strides = [1, 1]} : vector<120x64xf32> to vector<29x64xf32>
    %cst_205 = arith.constant dense<0xFF800000> : vector<64xf32>
    %827 = vector.multi_reduction <maximumf>, %826, %cst_205 [0] : vector<29x64xf32> to vector<64xf32>
    %828 = vector.shape_cast %827 : vector<64xf32> to vector<1x64xf32>
    %cst_206 = arith.constant dense<0.000000e+00> : vector<64xf32>
    %829 = vector.multi_reduction <add>, %826, %cst_206 [0] : vector<29x64xf32> to vector<64xf32>
    %830 = vector.shape_cast %829 : vector<64xf32> to vector<1x64xf32>
    %cst_207 = arith.constant 0.0344827585 : f32
    %831 = vector.broadcast %cst_207 : f32 to vector<1x64xf32>
    %832 = arith.mulf %830, %831 : vector<1x64xf32>
    %833 = vector.extract_strided_slice %811 {offsets = [90, 0], sizes = [29, 64], strides = [1, 1]} : vector<120x64xf32> to vector<29x64xf32>
    %cst_208 = arith.constant dense<0xFF800000> : vector<64xf32>
    %834 = vector.multi_reduction <maximumf>, %833, %cst_208 [0] : vector<29x64xf32> to vector<64xf32>
    %835 = vector.shape_cast %834 : vector<64xf32> to vector<1x64xf32>
    %cst_209 = arith.constant dense<0.000000e+00> : vector<64xf32>
    %836 = vector.multi_reduction <add>, %833, %cst_209 [0] : vector<29x64xf32> to vector<64xf32>
    %837 = vector.shape_cast %836 : vector<64xf32> to vector<1x64xf32>
    %cst_210 = arith.constant 0.0344827585 : f32
    %838 = vector.broadcast %cst_210 : f32 to vector<1x64xf32>
    %839 = arith.mulf %837, %838 : vector<1x64xf32>
    %840 = tpu.concatenate %814, %821, %828, %835 in 0 : vector<1x64xf32>, vector<1x64xf32>, vector<1x64xf32>, vector<1x64xf32> -> vector<4x64xf32>
    %841 = tpu.concatenate %818, %825, %832, %839 in 0 : vector<1x64xf32>, vector<1x64xf32>, vector<1x64xf32>, vector<1x64xf32> -> vector<4x64xf32>
    %842 = vector.extract_strided_slice %811 {offsets = [0, 0], sizes = [28, 64], strides = [1, 1]} : vector<120x64xf32> to vector<28x64xf32>
    %cst_211 = arith.constant dense<0xFF800000> : vector<64xf32>
    %843 = vector.multi_reduction <maximumf>, %842, %cst_211 [0] : vector<28x64xf32> to vector<64xf32>
    %844 = vector.shape_cast %843 : vector<64xf32> to vector<1x64xf32>
    %cst_212 = arith.constant dense<0.000000e+00> : vector<64xf32>
    %845 = vector.multi_reduction <add>, %842, %cst_212 [0] : vector<28x64xf32> to vector<64xf32>
    %846 = vector.shape_cast %845 : vector<64xf32> to vector<1x64xf32>
    %cst_213 = arith.constant 0.0357142873 : f32
    %847 = vector.broadcast %cst_213 : f32 to vector<1x64xf32>
    %848 = arith.mulf %846, %847 : vector<1x64xf32>
    %849 = vector.extract_strided_slice %811 {offsets = [30, 0], sizes = [28, 64], strides = [1, 1]} : vector<120x64xf32> to vector<28x64xf32>
    %cst_214 = arith.constant dense<0xFF800000> : vector<64xf32>
    %850 = vector.multi_reduction <maximumf>, %849, %cst_214 [0] : vector<28x64xf32> to vector<64xf32>
    %851 = vector.shape_cast %850 : vector<64xf32> to vector<1x64xf32>
    %cst_215 = arith.constant dense<0.000000e+00> : vector<64xf32>
    %852 = vector.multi_reduction <add>, %849, %cst_215 [0] : vector<28x64xf32> to vector<64xf32>
    %853 = vector.shape_cast %852 : vector<64xf32> to vector<1x64xf32>
    %cst_216 = arith.constant 0.0357142873 : f32
    %854 = vector.broadcast %cst_216 : f32 to vector<1x64xf32>
    %855 = arith.mulf %853, %854 : vector<1x64xf32>
    %856 = vector.extract_strided_slice %811 {offsets = [60, 0], sizes = [28, 64], strides = [1, 1]} : vector<120x64xf32> to vector<28x64xf32>
    %cst_217 = arith.constant dense<0xFF800000> : vector<64xf32>
    %857 = vector.multi_reduction <maximumf>, %856, %cst_217 [0] : vector<28x64xf32> to vector<64xf32>
    %858 = vector.shape_cast %857 : vector<64xf32> to vector<1x64xf32>
    %cst_218 = arith.constant dense<0.000000e+00> : vector<64xf32>
    %859 = vector.multi_reduction <add>, %856, %cst_218 [0] : vector<28x64xf32> to vector<64xf32>
    %860 = vector.shape_cast %859 : vector<64xf32> to vector<1x64xf32>
    %cst_219 = arith.constant 0.0357142873 : f32
    %861 = vector.broadcast %cst_219 : f32 to vector<1x64xf32>
    %862 = arith.mulf %860, %861 : vector<1x64xf32>
    %863 = vector.extract_strided_slice %811 {offsets = [90, 0], sizes = [28, 64], strides = [1, 1]} : vector<120x64xf32> to vector<28x64xf32>
    %cst_220 = arith.constant dense<0xFF800000> : vector<64xf32>
    %864 = vector.multi_reduction <maximumf>, %863, %cst_220 [0] : vector<28x64xf32> to vector<64xf32>
    %865 = vector.shape_cast %864 : vector<64xf32> to vector<1x64xf32>
    %cst_221 = arith.constant dense<0.000000e+00> : vector<64xf32>
    %866 = vector.multi_reduction <add>, %863, %cst_221 [0] : vector<28x64xf32> to vector<64xf32>
    %867 = vector.shape_cast %866 : vector<64xf32> to vector<1x64xf32>
    %cst_222 = arith.constant 0.0357142873 : f32
    %868 = vector.broadcast %cst_222 : f32 to vector<1x64xf32>
    %869 = arith.mulf %867, %868 : vector<1x64xf32>
    %870 = tpu.concatenate %844, %851, %858, %865 in 0 : vector<1x64xf32>, vector<1x64xf32>, vector<1x64xf32>, vector<1x64xf32> -> vector<4x64xf32>
    %871 = tpu.concatenate %848, %855, %862, %869 in 0 : vector<1x64xf32>, vector<1x64xf32>, vector<1x64xf32>, vector<1x64xf32> -> vector<4x64xf32>
    %872 = vector.extract_strided_slice %840 {offsets = [0, 0], sizes = [2, 16], strides = [1, 1]} : vector<4x64xf32> to vector<2x16xf32>
    %873 = vector.extract_strided_slice %870 {offsets = [0, 16], sizes = [2, 16], strides = [1, 1]} : vector<4x64xf32> to vector<2x16xf32>
    %874 = tpu.concatenate %872, %873 in 1 : vector<2x16xf32>, vector<2x16xf32> -> vector<2x32xf32>
    %875 = vector.extract_strided_slice %841 {offsets = [0, 0], sizes = [2, 16], strides = [1, 1]} : vector<4x64xf32> to vector<2x16xf32>
    %876 = vector.extract_strided_slice %871 {offsets = [0, 16], sizes = [2, 16], strides = [1, 1]} : vector<4x64xf32> to vector<2x16xf32>
    %877 = tpu.concatenate %875, %876 in 1 : vector<2x16xf32>, vector<2x16xf32> -> vector<2x32xf32>
    %878 = vector.extract_strided_slice %840 {offsets = [2, 32], sizes = [2, 16], strides = [1, 1]} : vector<4x64xf32> to vector<2x16xf32>
    %879 = vector.extract_strided_slice %870 {offsets = [2, 48], sizes = [2, 16], strides = [1, 1]} : vector<4x64xf32> to vector<2x16xf32>
    %880 = tpu.concatenate %878, %879 in 1 : vector<2x16xf32>, vector<2x16xf32> -> vector<2x32xf32>
    %881 = vector.extract_strided_slice %841 {offsets = [2, 32], sizes = [2, 16], strides = [1, 1]} : vector<4x64xf32> to vector<2x16xf32>
    %882 = vector.extract_strided_slice %871 {offsets = [2, 48], sizes = [2, 16], strides = [1, 1]} : vector<4x64xf32> to vector<2x16xf32>
    %883 = tpu.concatenate %881, %882 in 1 : vector<2x16xf32>, vector<2x16xf32> -> vector<2x32xf32>
    %884 = tpu.concatenate %874, %877, %880, %883 in 1 : vector<2x32xf32>, vector<2x32xf32>, vector<2x32xf32>, vector<2x32xf32> -> vector<2x128xf32>
    %c0_223 = arith.constant 0 : index
    %c0_224 = arith.constant 0 : index
    %885 = vector.load %arg15[%c0_223, %c0_224] : memref<1x128xf32, #tpu.memory_space<vmem>>, vector<1x128xf32>
    %cst_225 = arith.constant 9.99999974E-6 : f32
    %886 = vector.broadcast %cst_225 : f32 to vector<1x128xf32>
    %887 = arith.addf %885, %886 : vector<1x128xf32>
    %888 = math.rsqrt %887 : vector<1x128xf32>
    %c0_226 = arith.constant 0 : index
    %c0_227 = arith.constant 0 : index
    %889 = vector.load %arg14[%c0_226, %c0_227] : memref<1x128xf32, #tpu.memory_space<vmem>>, vector<1x128xf32>
    %890 = vector.broadcast %889 : vector<1x128xf32> to vector<2x128xf32>
    %891 = arith.subf %884, %890 : vector<2x128xf32>
    %892 = vector.broadcast %888 : vector<1x128xf32> to vector<2x128xf32>
    %893 = arith.mulf %891, %892 : vector<2x128xf32>
    %c0_228 = arith.constant 0 : index
    %c0_229 = arith.constant 0 : index
    %894 = vector.load %arg12[%c0_228, %c0_229] : memref<1x128xf32, #tpu.memory_space<vmem>>, vector<1x128xf32>
    %895 = vector.broadcast %894 : vector<1x128xf32> to vector<2x128xf32>
    %896 = arith.mulf %893, %895 : vector<2x128xf32>
    %c0_230 = arith.constant 0 : index
    %c0_231 = arith.constant 0 : index
    %897 = vector.load %arg13[%c0_230, %c0_231] : memref<1x128xf32, #tpu.memory_space<vmem>>, vector<1x128xf32>
    %898 = vector.broadcast %897 : vector<1x128xf32> to vector<2x128xf32>
    %899 = arith.addf %896, %898 : vector<2x128xf32>
    %cst_232 = arith.constant 0.000000e+00 : f32
    %900 = vector.broadcast %cst_232 : f32 to vector<2x128xf32>
    %901 = arith.maximumf %899, %900 : vector<2x128xf32>
    %c0_233 = arith.constant 0 : index
    %c0_234 = arith.constant 0 : index
    %902 = vector.load %arg16[%c0_233, %c0_234] : memref<128x32xf32, #tpu.memory_space<vmem>>, vector<128x32xf32>
    %cst_235 = arith.constant dense<0.000000e+00> : vector<2x32xf32>
    %903 = tpu.matmul %901, %902, %cst_235 {dimension_numbers = #tpu.dot_dimension_numbers<[1], [0], [0], [1], [0, 0, 1, 1], [], []>} : vector<2x128xf32>, vector<128x32xf32>, vector<2x32xf32> -> vector<2x32xf32>
    %c0_236 = arith.constant 0 : index
    %c0_237 = arith.constant 0 : index
    %904 = vector.load %arg17[%c0_236, %c0_237] : memref<1x32xf32, #tpu.memory_space<vmem>>, vector<1x32xf32>
    %905 = vector.broadcast %904 : vector<1x32xf32> to vector<2x32xf32>
    %906 = arith.addf %903, %905 : vector<2x32xf32>
    %c0_238 = arith.constant 0 : index
    %c0_239 = arith.constant 0 : index
    %907 = vector.load %arg18[%c0_238, %c0_239] : memref<32x4xf32, #tpu.memory_space<vmem>>, vector<32x4xf32>
    %cst_240 = arith.constant dense<0.000000e+00> : vector<2x4xf32>
    %908 = tpu.matmul %906, %907, %cst_240 {dimension_numbers = #tpu.dot_dimension_numbers<[1], [0], [0], [1], [0, 0, 1, 1], [], []>} : vector<2x32xf32>, vector<32x4xf32>, vector<2x4xf32> -> vector<2x4xf32>
    %c0_241 = arith.constant 0 : index
    %c0_242 = arith.constant 0 : index
    %909 = vector.load %arg19[%c0_241, %c0_242] : memref<1x4xf32, #tpu.memory_space<vmem>>, vector<1x4xf32>
    %910 = vector.broadcast %909 : vector<1x4xf32> to vector<2x4xf32>
    %911 = arith.addf %908, %910 : vector<2x4xf32>
    %c0_243 = arith.constant 0 : index
    %c0_244 = arith.constant 0 : index
    %912 = vector.load %arg20[%c0_243, %c0_244] : memref<2x4xf32, #tpu.memory_space<vmem>>, vector<2x4xf32>
    tpu.vector_store %arg20[%c0_243, %c0_244], %911 {strides = array<i32>} : memref<2x4xf32, #tpu.memory_space<vmem>>, vector<2x4xf32>,
    return
  }
}

</mosaic_0001>

<bundles_post_ra>
// kernel: abcdm_forward.1
= control target key start
LH: loop header
LB: loop body
LE: loop exit
PB: predicated region body
PF: predicated region fallthrough
CT: control target
= control target key end

     0   :  { %s6869_s0 = inlined_call_operand.vmem [shape: s32[16,1], index: 0, kind: input, shape index: {}]   ;;  %s6870_s1 = inlined_call_operand.vmem [shape: f32[50,32], index: 1, kind: input, shape index: {}]   ;;  %s6871_s2 = inlined_call_operand.vmem [shape: f32[32,448], index: 2, kind: input, shape index: {}]   ;;  %s6872_s3 = inlined_call_operand.vmem [shape: f32[1,448], index: 3, kind: input, shape index: {}]   ;;  %s6873_s4 = inlined_call_operand.vmem [shape: f32[128,448], index: 4, kind: input, shape index: {}]   ;;  %s6874_s5 = inlined_call_operand.vmem [shape: f32[1,448], index: 5, kind: input, shape index: {}]   ;;  %s6875_s6 = inlined_call_operand.vmem [shape: f32[64,350], index: 6, kind: input, shape index: {}]   ;;  %s6876_s7 = inlined_call_operand.vmem [shape: f32[1,350], index: 7, kind: input, shape index: {}]   ;;  %s6877_s8 = inlined_call_operand.vmem [shape: f32[350,30], index: 8, kind: input, shape index: {}]   ;;  %s6878_s9 = inlined_call_operand.vmem [shape: f32[1,30], index: 9, kind: input, shape index: {}]   ;;  %s6879_s10 = inlined_call_operand.vmem [shape: f32[192,64], index: 10, kind: input, shape index: {}]   ;;  %s6880_s11 = inlined_call_operand.vmem [shape: f32[1,64], index: 11, kind: input, shape index: {}]   ;;  %s6881_s12 = inlined_call_operand.vmem [shape: f32[1,128], index: 12, kind: input, shape index: {}]   ;;  %s6882_s13 = inlined_call_operand.vmem [shape: f32[1,128], index: 13, kind: input, shape index: {}]   ;;  %s6883_s14 = inlined_call_operand.vmem [shape: f32[1,128], index: 14, kind: input, shape index: {}]   ;;  %s6884_s15 = inlined_call_operand.vmem [shape: f32[1,128], index: 15, kind: input, shape index: {}]   ;;  %s6885_s16 = inlined_call_operand.vmem [shape: f32[128,32], index: 16, kind: input, shape index: {}]   ;;  %s6886_s17 = inlined_call_operand.vmem [shape: f32[1,32], index: 17, kind: input, shape index: {}]   ;;  %s6887_s18 = inlined_call_operand.vmem [shape: f32[32,4], index: 18, kind: input, shape index: {}]   ;;  %s6888_s19 = inlined_call_operand.vmem [shape: f32[1,4], index: 19, kind: input, shape index: {}]   ;;  %s6889_s20 = inlined_call_operand.hbm [shape: f32[2,4], index: 20, kind: output, shape index: {}]  }
   0x1   :  { %6915 = sst [smem:[#allocation14_spill]] %s6869_s0 }
   0x2   :  { %6916 = sst [smem:[#allocation15_spill]] %s6870_s1 }
   0x3   :  { %6917 = sst [smem:[#allocation16_spill]] %s6871_s2 }
   0x4   :  { %6918 = sst [smem:[#allocation17_spill]] %s6872_s3 }
   0x5   :  { %6919 = sst [smem:[#allocation18_spill]] %s6873_s4 }
   0x6   :  { %6920 = sst [smem:[#allocation19_spill]] %s6882_s13 }
   0x7   :  { %s6921_s23 = sld [smem:[#allocation14_spill]]  ;;  %s6922_s13 = sld [smem:[#allocation15_spill]]  ;;  %v6896_v2 = vmov 0  }
   0x8   :  { %4523 = vset.pattern.permute.xlu0 %v6896_v2  ;;  %259 = vmatprep.mubr.bf16.mxu1 %v6896_v2 }
   0xd   :  { %v67_v0 = vld [vmem:[%s6921_s23] sm:$0xff]  ;;  %v84_v3 = vld [vmem:[%s6922_s13 + $0x8] sm:$0xff]  ;;  %v85_v4 = vld [vmem:[%s6922_s13 + $0x10] sm:$0xff] }
   0xe   :  { %v83_v1 = vld [vmem:[%s6922_s13] sm:$0xff]  ;;  %v86_v5 = vld [vmem:[%s6922_s13 + $0x18] sm:$0xff]  ;;  %72 = vperm.xlu0 %4523, %v67_v0  }
   0xf   :  { %v4472_v6 = vpack.c.bf16 %v84_v3, %v83_v1  ;;  %v4476_v7 = vpack.c.bf16 %v86_v5, %v85_v4 }
  0x10   :  { %25 = vsyncpa [#allocation5], 0  ;;  %v68_v8 = vld [vmem:[%s6921_s23 + $0x8] sm:$0xff]  ;;  %v87_v9 = vld [vmem:[%s6922_s13 + $0x20] sm:$0xff]  ;;  %s6923_s25 = sld [smem:[#allocation16_spill]]  ;;  %vm6906_vm0 = vcmask 1041408   ;;  %v69_v22 = vlaneseq }
  0x11   :  { %v88_v10 = vld [vmem:[%s6922_s13 + $0x28] sm:$0xff]  ;;  %4473 = vmatprep.subr.bf16.mxu0 %v4472_v6  ;;  %v89_v21 = vld [vmem:[%s6922_s13 + $0x30] sm:$0x3]  ;;  %vm90_vm1 = vcmask 408576   ;;  %v6894_v25 = vmov 0.0   ;;  %s6924_s30 = sld [smem:[#allocation18_spill]] }
  0x12   :  { %4475 = vmatpush3.bf16.msra.mxu0 %v4472_v6  ;;  %75 = vperm.xlu0 %4523, %v68_v8   ;;  %v4480_v11 = vpack.c.bf16 %v88_v10, %v87_v9  ;;  %v70_v23 = vand.u32 127, %v69_v22  ;;  %vm223_vm4 = vcmask 261120   ;;  %s6926_s26 = sld [smem:[#allocation17_spill]]  ;;  %s4851_s28 = smov 32   ;;  %vm568_vm5 = vcmask 253952  }
  0x13   :  { %4477 = vmatprep.subr.bf16.mxu0 %v4476_v7  ;;  %s4853_s4 = smov 64   ;;  %vm571_vm6 = vcmask 254977   ;;  %vm632_vm7 = vcmask 522502   ;;  %vm639_vm8 = vcmask 523527   ;;  %vm652_vm9 = vcmask 523264   ;;  %s6966_s27 = sld [smem:[#allocation19_spill]] }
  0x14   :  { %vm654_vm10 = vcmask 785408   ;;  %vm6913_vm11 = vcmask 256002   ;;  %vm6912_vm12 = vcmask 257027   ;;  %vm877_vm13 = vcmask 520452  }
  0x15   :  { %vm884_vm14 = vcmask 521477   ;;  %vm6908_vm15 = vcmask 258052  }
  0x16   :  { %v178_v12 = vld [vmem:[%s6923_s25 + $0x8] sm:$0xff]  ;;  %v177_v14 = vld [vmem:[%s6923_s25] sm:$0xff]  ;;  %4479 = vmatpush3.bf16.msra.mxu0 %v4476_v7  ;;  %v180_v32 = vld [vmem:[%s6923_s25 + $0x18] sm:$0xff] }
  0x17   :  { %v182_v13 = vld [vmem:[%s6923_s25 + $0x28] sm:$0xff]  ;;  %v181_v16 = vld [vmem:[%s6923_s25 + $0x20] sm:$0xff]  ;;  %4481 = vmatprep.subr.bf16.mxu0 %v4480_v11  ;;  %v184_v33 = vld [vmem:[%s6923_s25 + $0x38] sm:$0xff] }
  0x18   :  { %v194_v15 = vpack.c.bf16 %v182_v13, %v178_v12  ;;  %v186_v17 = vld [vmem:[%s6923_s25 + $0x48] sm:$0xff]  ;;  %v193_v19 = vpack.c.bf16 %v181_v16, %v177_v14  ;;  %v185_v29 = vld [vmem:[%s6923_s25 + $0x40] sm:$0xff]  ;;  %v196_v34 = vpack.c.bf16 %v184_v33, %v180_v32  ;;  %v191_v32 = vld [vmem:[%s6923_s25 + $0x70] sm:$0xff] }
  0x19   :  { %v190_v18 = vld [vmem:[%s6923_s25 + $0x68] sm:$0xff]  ;;  %v189_v30 = vld [vmem:[%s6923_s25 + $0x60] sm:$0xff] }
  0x1a   :  { %v198_v20 = vpack.c.bf16 %v190_v18, %v186_v17  ;;  %227 = vmatprep.subr.bf16.mxu1 %v194_v15  ;;  %4483 = vmatpush3.bf16.msra.mxu0 %v4480_v11  ;;  %v197_v31 = vpack.c.bf16 %v189_v30, %v185_v29  ;;  %v314_v35 = vld [vmem:[%s6924_s30 + $0x8] sm:$0xff]  ;;  %v313_v38 = vld [vmem:[%s6924_s30] sm:$0xff] }
  0x1b   :  { %228 = vmatpush1.bf16.msra.mxu1 %v193_v19  ;;  %4361 = vmatprep.subr.msk.mxu0 %vm6906_vm0, %v89_v21  ;;  %v318_v36 = vld [vmem:[%s6924_s30 + $0x28] sm:$0xff]  ;;  %v317_v39 = vld [vmem:[%s6924_s30 + $0x20] sm:$0xff] }
  0x1c   :  { %229 = vmatprep.subr.bf16.mxu1 %v198_v20  ;;  %v5033_v37 = vpack.c.bf16 %v318_v36, %v314_v35  ;;  %v5041_v40 = vpack.c.bf16 %v317_v39, %v313_v38  ;;  %v322_v41 = vld [vmem:[%s6924_s30 + $0x48] sm:$0xff]  ;;  %v321_v44 = vld [vmem:[%s6924_s30 + $0x40] sm:$0xff]  ;;  %v179_v20 = vld [vmem:[%s6923_s25 + $0x10] sm:$0xff] }
  0x1d   :  { %v326_v42 = vld [vmem:[%s6924_s30 + $0x68] sm:$0xff]  ;;  %v325_v45 = vld [vmem:[%s6924_s30 + $0x60] sm:$0xff]  ;;  %v320_v35 = vld [vmem:[%s6924_s30 + $0x38] sm:$0xff] }
  0x1e   :  { %4362 = vmatpush3.msk.msra.mxu0 %vm6906_vm0, %v89_v21  ;;  %v5051_v43 = vpack.c.bf16 %v326_v42, %v322_v41  ;;  %v5059_v46 = vpack.c.bf16 %v325_v45, %v321_v44  ;;  %v330_v47 = vld [vmem:[%s6924_s30 + $0x88] sm:$0xff]  ;;  %v329_v50 = vld [vmem:[%s6924_s30 + $0x80] sm:$0xff]  ;;  %v183_v21 = vld [vmem:[%s6923_s25 + $0x30] sm:$0xff]  ;;  %vm1297_vm0 = vcmask 260102  }
  0x1f   :  { %230 = vmatpush1.bf16.msra.mxu1 %v197_v31  ;;  %657 = vmatprep.subr.bf16.mxu0 %v5033_v37  ;;  %v334_v48 = vld [vmem:[%s6924_s30 + $0xa8] sm:$0xff]  ;;  %v333_v51 = vld [vmem:[%s6924_s30 + $0xa0] sm:$0xff]  ;;  %v187_v31 = vld [vmem:[%s6923_s25 + $0x50] sm:$0xff] }
  0x20   :  { %270 = vmatprep.subr.bf16.mxu1 %v196_v34  ;;  %v5069_v49 = vpack.c.bf16 %v334_v48, %v330_v47  ;;  %v5077_v52 = vpack.c.bf16 %v333_v51, %v329_v50  ;;  %v338_v53 = vld [vmem:[%s6924_s30 + $0xc8] sm:$0xff]  ;;  %v337_v56 = vld [vmem:[%s6924_s30 + $0xc0] sm:$0xff]  ;;  %v199_v33 = vpack.c.bf16 %v191_v32, %v187_v31  ;;  %v316_v34 = vld [vmem:[%s6924_s30 + $0x18] sm:$0xff] }
  0x21   :  { %v342_v54 = vld [vmem:[%s6924_s30 + $0xe8] sm:$0xff]  ;;  %v341_v57 = vld [vmem:[%s6924_s30 + $0xe0] sm:$0xff]  ;;  %v5215_v36 = vpack.c.bf16 %v320_v35, %v316_v34  ;;  %v315_v38 = vld [vmem:[%s6924_s30 + $0x10] sm:$0xff] }
  0x22   :  { %v5087_v55 = vpack.c.bf16 %v342_v54, %v338_v53  ;;  %v5095_v58 = vpack.c.bf16 %v341_v57, %v337_v56  ;;  %v346_v59 = vld [vmem:[%s6924_s30 + $0x108] sm:$0xff]  ;;  %v345_v62 = vld [vmem:[%s6924_s30 + $0x100] sm:$0xff]  ;;  %v319_v39 = vld [vmem:[%s6924_s30 + $0x30] sm:$0xff] }
  0x23   :  { %v350_v60 = vld [vmem:[%s6924_s30 + $0x128] sm:$0xff]  ;;  %v349_v63 = vld [vmem:[%s6924_s30 + $0x120] sm:$0xff]  ;;  %v324_v41 = vld [vmem:[%s6924_s30 + $0x58] sm:$0xff]  ;;  %v5230_v44 = vpack.c.bf16 %v319_v39, %v315_v38  ;;  %v204_v39 = vshrl.u32 %v69_v22, 7 }
  0x24   :  { %v5105_v61 = vpack.c.bf16 %v350_v60, %v346_v59  ;;  %v5113_v0 = vpack.c.bf16 %v349_v63, %v345_v62  ;;  %v354_v1 = vld [vmem:[%s6924_s30 + $0x148] sm:$0xff]  ;;  %v353_v5 = vld [vmem:[%s6924_s30 + $0x140] sm:$0xff]  ;;  %v328_v42 = vld [vmem:[%s6924_s30 + $0x78] sm:$0xff] }
  0x25   :  { %v358_v3 = vld [vmem:[%s6924_s30 + $0x168] sm:$0xff]  ;;  %v357_v6 = vld [vmem:[%s6924_s30 + $0x160] sm:$0xff]  ;;  %v5233_v45 = vpack.c.bf16 %v328_v42, %v324_v41  ;;  %v323_v47 = vld [vmem:[%s6924_s30 + $0x50] sm:$0xff]  ;;  %v5376_v41 = vsub.s32 0, %v204_v39 }
  0x26   :  { %v5123_v4 = vpack.c.bf16 %v358_v3, %v354_v1  ;;  %v5131_v7 = vpack.c.bf16 %v357_v6, %v353_v5  ;;  %v362_v8 = vld [vmem:[%s6924_s30 + $0x188] sm:$0xff]  ;;  %v361_v11 = vld [vmem:[%s6924_s30 + $0x180] sm:$0xff]  ;;  %v327_v48 = vld [vmem:[%s6924_s30 + $0x70] sm:$0xff] }
  0x27   :  { %v366_v9 = vld [vmem:[%s6924_s30 + $0x1a8] sm:$0xff]  ;;  %v365_v12 = vld [vmem:[%s6924_s30 + $0x1a0] sm:$0xff]  ;;  %v332_v50 = vld [vmem:[%s6924_s30 + $0x98] sm:$0xff]  ;;  %v5249_v53 = vpack.c.bf16 %v327_v48, %v323_v47  ;;  %6925 = vst [vmem:[#allocation7_spill] sm:$0xff] %v5376_v41  ;;  %v5381_v47 = vsub.s32 1, %v204_v39 }
  0x28   :  { %v5141_v10 = vpack.c.bf16 %v366_v9, %v362_v8  ;;  %v5149_v13 = vpack.c.bf16 %v365_v12, %v361_v11  ;;  %v370_v14 = vld [vmem:[%s6924_s30 + $0x1c8] sm:$0xff]  ;;  %v369_v17 = vld [vmem:[%s6924_s30 + $0x1c0] sm:$0xff]  ;;  %v336_v51 = vld [vmem:[%s6924_s30 + $0xb8] sm:$0xff] }
  0x29   :  { %v374_v15 = vld [vmem:[%s6924_s30 + $0x1e8] sm:$0xff]  ;;  %v373_v18 = vld [vmem:[%s6924_s30 + $0x1e0] sm:$0xff]  ;;  %v5253_v54 = vpack.c.bf16 %v336_v51, %v332_v50  ;;  %v331_v56 = vld [vmem:[%s6924_s30 + $0x90] sm:$0xff]  ;;  %6927 = vst [vmem:[#allocation8_spill] sm:$0xff] %v5381_v47 }
  0x2a   :  { %v5159_v16 = vpack.c.bf16 %v374_v15, %v370_v14  ;;  %v5167_v19 = vpack.c.bf16 %v373_v18, %v369_v17  ;;  %v335_v57 = vld [vmem:[%s6924_s30 + $0xb0] sm:$0xff]  ;;  %v340_v59 = vld [vmem:[%s6924_s30 + $0xd8] sm:$0xff]  ;;  %v201_v42 = vld [vmem:[%s6926_s26] sm:$0xf] }
  0x2b   :  { %v344_v60 = vld [vmem:[%s6924_s30 + $0xf8] sm:$0xff]  ;;  %v5268_v62 = vpack.c.bf16 %v335_v57, %v331_v56  ;;  %v339_v1 = vld [vmem:[%s6924_s30 + $0xd0] sm:$0xff]  ;;  %v206_v50 = vrot.slane %v201_v42, %v5376_v41  ;;  %v5384_v56 = vsub.s32 2, %v204_v39  ;;  %v210_v57 = vrot.slane %v201_v42, %v5381_v47 }
  0x2c   :  { %v5271_v63 = vpack.c.bf16 %v344_v60, %v340_v59  ;;  %v343_v3 = vld [vmem:[%s6924_s30 + $0xf0] sm:$0xff]  ;;  %v348_v5 = vld [vmem:[%s6924_s30 + $0x118] sm:$0xff]  ;;  %v217_v60 = vsub.s32 3, %v204_v39 }
  0x2d   :  { %v352_v6 = vld [vmem:[%s6924_s30 + $0x138] sm:$0xff]  ;;  %v5286_v8 = vpack.c.bf16 %v343_v3, %v339_v1  ;;  %v347_v11 = vld [vmem:[%s6924_s30 + $0x110] sm:$0xff]  ;;  %6928 = vst [vmem:[#allocation9_spill] sm:$0xff] %v5384_v56 }
  0x2e   :  { %v5289_v9 = vpack.c.bf16 %v352_v6, %v348_v5  ;;  %v351_v12 = vld [vmem:[%s6924_s30 + $0x130] sm:$0xff]  ;;  %v356_v14 = vld [vmem:[%s6924_s30 + $0x158] sm:$0xff]  ;;  %v214_v5 = vrot.slane %v201_v42, %v5384_v56  ;;  %v218_v6 = vrot.slane %v201_v42, %v217_v60 }
  0x2f   :  { %v360_v15 = vld [vmem:[%s6924_s30 + $0x178] sm:$0xff]  ;;  %v5304_v17 = vpack.c.bf16 %v351_v12, %v347_v11  ;;  %v371_v34 = vld [vmem:[%s6924_s30 + $0x1d0] sm:$0xff] }
  0x30   :  { %v5307_v18 = vpack.c.bf16 %v360_v15, %v356_v14  ;;  %v376_v31 = vld [vmem:[%s6924_s30 + $0x1f8] sm:$0xff]  ;;  %v375_v35 = vld [vmem:[%s6924_s30 + $0x1f0] sm:$0xff] }
  0x31   :  { %v5352_v38 = vpack.c.bf16 %v375_v35, %v371_v34 }
  0x8d   :  { %v73_v24 = vpop.permute.xlu0 %72 }
  0x8e   :  { %vm77_vm2 = vcmp.eq.s32.totalorder %v73_v24, %v70_v23  ;;  %v192_v24 = vld [vmem:[%s6923_s25 + $0x78] sm:$0xff] }
  0x8f   :  { %v4179_v26 = vsel %vm77_vm2, 1.0, %v6894_v25  ;;  %vm1121_vm2 = vcmask 518402  }
  0x90   :  { %4363 = vmatprep.mubr.msk.f32.mxu0 %vm90_vm1, %v4179_v26 }
  0x91   :  { %v76_v27 = vpop.permute.xlu0 %75 }
  0x92   :  { %vm78_vm3 = vcmp.eq.s32.totalorder %v76_v27, %v70_v23  ;;  %v188_v23 = vld [vmem:[%s6923_s25 + $0x58] sm:$0xff] }
  0x93   :  { %v4180_v28 = vsel %vm78_vm3, 1.0, %v6894_v25  ;;  %v200_v30 = vpack.c.bf16 %v192_v24, %v188_v23  ;;  %v364_v23 = vld [vmem:[%s6924_s30 + $0x198] sm:$0xff]  ;;  %vm6909_vm3 = vcmask 519427  }
  0x94   :  { %4364 = vmatmul.mubr.msk.f32.vlgmr.msra.gmra.mrb[0].mxu0 %vm90_vm1, %v4180_v28  ;;  %v195_v28 = vpack.c.bf16 %v183_v21, %v179_v20  ;;  %v355_v20 = vld [vmem:[%s6924_s30 + $0x150] sm:$0xff]  ;;  %v368_v24 = vld [vmem:[%s6924_s30 + $0x1b8] sm:$0xff]  ;;  %vm6907_vm1 = vcmask 259077  }
  0x95   :  { %689 = vmatprep.mubr.bf16.mxu0 %v6896_v2  ;;  %658 = vmatpush1.bf16.msra.mxu0 %v5041_v40  ;;  %v359_v21 = vld [vmem:[%s6924_s30 + $0x170] sm:$0xff] }
  0x96   :  { %659 = vmatprep.subr.bf16.mxu0 %v5051_v43 }
  0x99   :  { %660 = vmatpush1.bf16.msra.mxu0 %v5059_v46 }
  0x9a   :  { %661 = vmatprep.subr.bf16.mxu0 %v5069_v49 }
  0x9d   :  { %662 = vmatpush1.bf16.msra.mxu0 %v5077_v52 }
  0x9e   :  { %663 = vmatprep.subr.bf16.mxu0 %v5087_v55 }
  0xa1   :  { %664 = vmatpush1.bf16.msra.mxu0 %v5095_v58 }
  0xa2   :  { %665 = vmatprep.subr.bf16.mxu0 %v5105_v61 }
  0xa5   :  { %666 = vmatpush1.bf16.msra.mxu0 %v5113_v0 }
  0xa6   :  { %667 = vmatprep.subr.bf16.mxu0 %v5123_v4 }
  0xa9   :  { %668 = vmatpush1.bf16.msra.mxu0 %v5131_v7 }
  0xaa   :  { %669 = vmatprep.subr.bf16.mxu0 %v5141_v10 }
  0xad   :  { %670 = vmatpush1.bf16.msra.mxu0 %v5149_v13 }
  0xae   :  { %671 = vmatprep.subr.bf16.mxu0 %v5159_v16 }
  0xb1   :  { %672 = vmatpush1.bf16.msra.mxu0 %v5167_v19 }
  0xb2   :  { %903 = vmatprep.subr.bf16.mxu0 %v5033_v37 }
 0x167   :  { %v4365_v26 = vpop.f32.mrb[0].mxu0 }
 0x168   :  { %v167_v27 = vpop.f32.mrb[1].mxu0 }
 0x169   :  { %v176_v29 = vpack.c.bf16 %v4365_v26, %v167_v27  ;;  %v5322_v26 = vpack.c.bf16 %v359_v21, %v355_v20  ;;  %v5325_v27 = vpack.c.bf16 %v368_v24, %v364_v23  ;;  %v409_v23 = vld [vmem:[%s6874_s5] sm:$0xf]  ;;  %s4852_s5 = smov 96  }
 0x16a   :  { %v5400_v24 = vrot.slane %v409_v23, %v5381_v47 }
 0x16b   :  { %4184 = vmatmul.mubr.msk.bf16.vlgmr.msra.gmra.mrb[0].mxu1 %vm223_vm4, %v176_v29 }
 0x16c   :  { %271 = vmatpush1.bf16.msra.mxu1 %v195_v28  ;;  %302 = vmatprep.mubr.bf16.mxu1 %v6896_v2  ;;  %v363_v28 = vld [vmem:[%s6924_s30 + $0x190] sm:$0xff] }
 0x16d   :  { %272 = vmatprep.subr.bf16.mxu1 %v200_v30  ;;  %v372_v30 = vld [vmem:[%s6924_s30 + $0x1d8] sm:$0xff] }
 0x170   :  { %273 = vmatpush1.bf16.msra.mxu1 %v199_v33  ;;  %v5343_v33 = vpack.c.bf16 %v376_v31, %v372_v30 }
 0x171   :  { %431 = vmatprep.subr.bf16.mxu1 %v5033_v37 }
 0x173   :  { %4185 = vmatmul.mubr.msk.bf16.vlgmr.msra.gmra.mrb[4].mxu1 %vm223_vm4, %v176_v29  ;;  %v367_v29 = vld [vmem:[%s6924_s30 + $0x1b0] sm:$0xff] }
 0x174   :  { %432 = vmatpush1.bf16.msra.mxu1 %v5041_v40  ;;  %463 = vmatprep.mubr.bf16.mxu1 %v6896_v2  ;;  %v5340_v32 = vpack.c.bf16 %v367_v29, %v363_v28 }
 0x175   :  { %433 = vmatprep.subr.bf16.mxu1 %v5051_v43 }
 0x178   :  { %434 = vmatpush1.bf16.msra.mxu1 %v5059_v46 }
 0x179   :  { %435 = vmatprep.subr.bf16.mxu1 %v5069_v49 }
 0x17c   :  { %436 = vmatpush1.bf16.msra.mxu1 %v5077_v52 }
 0x17d   :  { %437 = vmatprep.subr.bf16.mxu1 %v5087_v55 }
 0x180   :  { %438 = vmatpush1.bf16.msra.mxu1 %v5095_v58 }
 0x181   :  { %439 = vmatprep.subr.bf16.mxu1 %v5105_v61 }
 0x184   :  { %440 = vmatpush1.bf16.msra.mxu1 %v5113_v0 }
 0x185   :  { %441 = vmatprep.subr.bf16.mxu1 %v5123_v4 }
 0x188   :  { %442 = vmatpush1.bf16.msra.mxu1 %v5131_v7 }
 0x189   :  { %443 = vmatprep.subr.bf16.mxu1 %v5141_v10 }
 0x18c   :  { %444 = vmatpush1.bf16.msra.mxu1 %v5149_v13 }
 0x18d   :  { %445 = vmatprep.subr.bf16.mxu1 %v5159_v16 }
 0x190   :  { %446 = vmatpush1.bf16.msra.mxu1 %v5167_v19 }
 0x191   :  { %472 = vmatprep.subr.bf16.mxu1 %v5215_v36 }
 0x193   :  { %464 = vmatmul.mubr.bf16.vlgmr.msra.gmra.mrb[8].mxu1 %v6896_v2 }
 0x194   :  { %473 = vmatpush1.bf16.msra.mxu1 %v5230_v44  ;;  %504 = vmatprep.mubr.bf16.mxu1 %v6896_v2 }
 0x195   :  { %474 = vmatprep.subr.bf16.mxu1 %v5233_v45 }
 0x198   :  { %475 = vmatpush1.bf16.msra.mxu1 %v5249_v53 }
 0x199   :  { %476 = vmatprep.subr.bf16.mxu1 %v5253_v54 }
 0x19c   :  { %477 = vmatpush1.bf16.msra.mxu1 %v5268_v62 }
 0x19d   :  { %478 = vmatprep.subr.bf16.mxu1 %v5271_v63 }
 0x1a0   :  { %479 = vmatpush1.bf16.msra.mxu1 %v5286_v8 }
 0x1a1   :  { %480 = vmatprep.subr.bf16.mxu1 %v5289_v9 }
 0x1a4   :  { %481 = vmatpush1.bf16.msra.mxu1 %v5304_v17 }
 0x1a5   :  { %482 = vmatprep.subr.bf16.mxu1 %v5307_v18 }
 0x1a8   :  { %483 = vmatpush1.bf16.msra.mxu1 %v5322_v26 }
 0x1a9   :  { %484 = vmatprep.subr.bf16.mxu1 %v5325_v27 }
 0x1ac   :  { %485 = vmatpush1.bf16.msra.mxu1 %v5340_v32 }
 0x1ad   :  { %486 = vmatprep.subr.bf16.mxu1 %v5343_v33 }
 0x1b0   :  { %487 = vmatpush1.bf16.msra.mxu1 %v5352_v38 }
 0x1b1   :  { %698 = vmatprep.subr.bf16.mxu1 %v5215_v36 }
 0x1b3   :  { %505 = vmatmul.mubr.bf16.vlgmr.msra.gmra.mrb[12].mxu1 %v6896_v2 }
 0x1b4   :  { %699 = vmatpush1.bf16.msra.mxu1 %v5230_v44  ;;  %730 = vmatprep.mubr.bf16.mxu1 %v6896_v2 }
 0x1b5   :  { %700 = vmatprep.subr.bf16.mxu1 %v5233_v45 }
 0x1b8   :  { %701 = vmatpush1.bf16.msra.mxu1 %v5249_v53 }
 0x1b9   :  { %702 = vmatprep.subr.bf16.mxu1 %v5253_v54 }
 0x1bc   :  { %703 = vmatpush1.bf16.msra.mxu1 %v5268_v62 }
 0x1bd   :  { %704 = vmatprep.subr.bf16.mxu1 %v5271_v63 }
 0x1c0   :  { %705 = vmatpush1.bf16.msra.mxu1 %v5286_v8 }
 0x1c1   :  { %706 = vmatprep.subr.bf16.mxu1 %v5289_v9 }
 0x1c4   :  { %707 = vmatpush1.bf16.msra.mxu1 %v5304_v17 }
 0x1c5   :  { %708 = vmatprep.subr.bf16.mxu1 %v5307_v18 }
 0x1c8   :  { %709 = vmatpush1.bf16.msra.mxu1 %v5322_v26 }
 0x1c9   :  { %710 = vmatprep.subr.bf16.mxu1 %v5325_v27 }
 0x1cc   :  { %711 = vmatpush1.bf16.msra.mxu1 %v5340_v32 }
 0x1cd   :  { %712 = vmatprep.subr.bf16.mxu1 %v5343_v33 }
 0x1d0   :  { %713 = vmatpush1.bf16.msra.mxu1 %v5352_v38 }
 0x1d1   :  { %944 = vmatprep.subr.bf16.mxu1 %v5215_v36 }
 0x23e   :  { %v261_v48 = vpop.f32.mrb[0].mxu1 }
 0x23f   :  { %v263_v51 = vpop.f32.mrb[1].mxu1  ;;  %v5423_v2 = vadd.f32 %v261_v48, %v206_v50 }
 0x240   :  { %v265_v59 = vpop.f32.mrb[2].mxu1  ;;  %v5402_v30 = vadd.f32 %v263_v51, %v210_v57 }
 0x241   :  { %v5387_v1 = vadd.f32 %v265_v59, %v206_v50  ;;  %v267_v22 = vpop.f32.mrb[3].mxu1  ;;  %v5411_v59 = vrot.slane %v409_v23, %v217_v60  ;;  %v5420_v60 = vrot.slane %v409_v23, %v5376_v41 }
 0x242   :  { %v5389_v3 = vadd.f32 %v267_v22, %v210_v57 }
 0x243   :  { %6929 = vst [vmem:[#allocation10_spill] sm:$0xff] %v5387_v1 }
 0x246   :  { %v304_v11 = vpop.f32.mrb[4].mxu1 }
 0x247   :  { %v5392_v12 = vadd.f32 %v304_v11, %v214_v5  ;;  %v306_v14 = vpop.f32.mrb[5].mxu1 }
 0x248   :  { %v5394_v15 = vadd.f32 %v306_v14, %v218_v6  ;;  %v308_v20 = vpop.f32.mrb[6].mxu1 }
 0x249   :  { %6930 = vst [vmem:[#allocation11_spill] sm:$0xff] %v5392_v12  ;;  %v310_v21 = vpop.f32.mrb[7].mxu1 }
 0x266   :  { %v465_v28 = vpop.f32.mrb[8].mxu1 }
 0x267   :  { %v467_v29 = vpop.f32.mrb[9].mxu1 }
 0x268   :  { %v468_v31 = vadd.f32 %v467_v29, %v5400_v24  ;;  %v469_v34 = vpop.f32.mrb[10].mxu1  ;;  %v5414_v29 = vadd.f32 %v310_v21, %v218_v6 }
 0x269   :  { %v470_v35 = vpop.f32.mrb[11].mxu1 }
 0x26a   :  { %v5406_v39 = vadd.f32 %v468_v31, %v5402_v30  ;;  %529 = vrot.lane.b32.xlu1 %v468_v31, %s4851_s28 }
 0x26c   :  { %4559 = vtanh.f32 %v5406_v39 }
 0x276   :  { %v4560_v42 = vpop.eup %4559 }
 0x277   :  { %541 = vrot.lane.b32.xlu1 %v4560_v42, %s4852_s5  ;;  %v466_v42 = vadd.f32 %v465_v28, %v5420_v60 }
 0x286   :  { %v506_v51 = vpop.f32.mrb[12].mxu1 }
 0x287   :  { %v508_v57 = vpop.f32.mrb[13].mxu1 }
 0x288   :  { %v509_v22 = vadd.f32 %v508_v57, %v5411_v59  ;;  %v510_v11 = vpop.f32.mrb[14].mxu1  ;;  %v513_v57 = vadd.f32 %v466_v42, %v5423_v2 }
 0x289   :  { %v511_v14 = vpop.f32.mrb[15].mxu1  ;;  %v5427_v11 = vrot.slane %v409_v23, %v5384_v56 }
 0x28a   :  { %v578_v34 = vrot.slane %v509_v22, 2  ;;  %v4186_v6 = vmul.f32 -1.442695, %v513_v57  ;;  %v576_v57 = vrot.slane %v468_v31, 2 }
 0x28b   :  { %v507_v14 = vadd.f32 %v506_v51, %v5427_v11 }
 0x28c   :  { %v584_v35 = vadd.f32 %v578_v34, %v5414_v29  ;;  %598 = vrot.lane.b32.xlu0 %v578_v34, %s4851_s28  ;;  %v5430_v34 = vadd.f32 %v308_v20, %v214_v5  ;;  %v582_v23 = vadd.f32 %v576_v57, %v5389_v3 }
 0x28e   :  { %4561 = vtanh.f32 %v584_v35 }
 0x28f   :  { %4563 = vpow2.f32 %v4186_v6 }
 0x298   :  { %v4562_v25 = vpop.eup %4561 }
 0x299   :  { %610 = vrot.lane.b32.xlu1 %v4562_v25, %s4852_s5  ;;  %v4564_v21 = vpop.eup %4563  ;;  %v577_v25 = vrot.slane %v507_v14, 2 }
 0x29a   :  { %v521_v22 = vadd.f32 1.0, %v4564_v21  ;;  %v4188_v21 = vmul.f32 -1.442695, %v582_v23 }
 0x29b   :  { %v583_v35 = vadd.f32 %v577_v25, %v5430_v34 }
 0x29c   :  { %4565 = vrcp.f32 %v521_v22 }
 0x29d   :  { %v4189_v42 = vmul.f32 -1.442695, %v583_v35 }
 0x29f   :  { %4567 = vpow2.f32 %v4189_v42 }
 0x2a0   :  { %4569 = vpow2.f32 %v4188_v21 }
 0x2a6   :  { %v5433_v28 = vpop.eup %4565 }
 0x2a9   :  { %v4568_v5 = vpop.eup %4567 }
 0x2aa   :  { %v592_v20 = vadd.f32 1.0, %v4568_v5  ;;  %v4570_v22 = vpop.eup %4569 }
 0x2ab   :  { %v591_v14 = vadd.f32 1.0, %v4570_v22 }
 0x2ac   :  { %4571 = vrcp.f32 %v592_v20 }
 0x2ad   :  { %4573 = vrcp.f32 %v591_v14 }
 0x2b6   :  { %v4572_v25 = vpop.eup %4571 }
 0x2b7   :  { %v4574_v31 = vpop.eup %4573 }
 0x2dc   :  { %v530_v48 = vpop.permute.xlu1 %529 }
 0x2dd   :  { %v532_v50 = vmul.f32 %v5433_v28, %v530_v48 }
 0x2df   :  { %534 = vrot.lane.b32.xlu0 %v532_v50, %s4852_s5 }
 0x2e9   :  { %v542_v6 = vpop.permute.xlu1 %541 }
 0x2ea   :  { %v544_v51 = vmul.f32 %v5433_v28, %v542_v6  ;;  %v539_v6 = vmul.f32 0.0, %v5433_v28 }
 0x2ec   :  { %546 = vrot.lane.b32.xlu1 %v544_v51, %s4851_s28 }
 0x2fe   :  { %v599_v35 = vpop.permute.xlu0 %598 }
 0x2ff   :  { %v601_v48 = vmul.f32 %v4572_v25, %v599_v35  ;;  %v608_v35 = vmul.f32 0.0, %v4572_v25 }
 0x301   :  { %603 = vrot.lane.b32.xlu0 %v601_v48, %s4852_s5 }
 0x30b   :  { %v611_v50 = vpop.permute.xlu1 %610 }
 0x30c   :  { %v613_v42 = vmul.f32 %v4574_v31, %v611_v50 }
 0x30e   :  { %615 = vrot.lane.b32.xlu1 %v613_v42, %s4851_s28 }
 0x351   :  { %v535_v57 = vpop.permute.xlu0 %534 }
 0x352   :  { %v537_v23 = vadd.f32 %v535_v57, %v5402_v30  ;;  %v4187_v57 = vmul.f32 -1.442695, %v5406_v39 }
 0x354   :  { %4575 = vtanh.f32 %v537_v23 }
 0x35e   :  { %v4576_v51 = vpop.eup %4575  ;;  %v547_v21 = vpop.permute.xlu1 %546 }
 0x35f   :  { %v5444_v5 = vadd.f32 %v547_v21, %v539_v6  ;;  %558 = vrot.lane.b32.xlu0 %v4576_v51, %s4853_s4 }
 0x361   :  { %4577 = vtanh.f32 %v5444_v5 }
 0x36b   :  { %v4578_v20 = vpop.eup %4577 }
 0x36c   :  { %552 = vrot.lane.b32.xlu1 %v4578_v20, %s4851_s28 }
 0x373   :  { %v604_v22 = vpop.permute.xlu0 %603 }
 0x374   :  { %v606_v14 = vadd.f32 %v604_v22, %v5414_v29 }
 0x376   :  { %4579 = vtanh.f32 %v606_v14 }
 0x380   :  { %v4580_v48 = vpop.eup %4579  ;;  %v616_v31 = vpop.permute.xlu1 %615 }
 0x381   :  { %v5450_v50 = vadd.f32 %v616_v31, %v608_v35  ;;  %627 = vrot.lane.b32.xlu1 %v4580_v48, %s4853_s4 }
 0x383   :  { %4581 = vtanh.f32 %v5450_v50 }
 0x384   :  { %4583 = vpow2.f32 %v4187_v57 }
 0x38d   :  { %v4582_v42 = vpop.eup %4581 }
 0x38e   :  { %621 = vrot.lane.b32.xlu0 %v4582_v42, %s4851_s28  ;;  %v4584_v23 = vpop.eup %4583 }
 0x38f   :  { %v522_v6 = vadd.f32 1.0, %v4584_v23 }
 0x391   :  { %4585 = vrcp.f32 %v522_v6  ;;  %v625_v6 = vsub.f32 1.0, %v4572_v25 }
 0x39b   :  { %v4586_v51 = vpop.eup %4585 }
 0x39c   :  { %v556_v21 = vsub.f32 1.0, %v4586_v51  ;;  %v562_v22 = vmul.f32 0.0, %v4586_v51 }
 0x3d1   :  { %v559_v20 = vpop.permute.xlu0 %558 }
 0x3d2   :  { %v561_v14 = vmul.f32 %v559_v20, %v556_v21 }
 0x3d4   :  { %v563_v31 = vadd.f32 %v562_v22, %v561_v14 }
 0x3d6   :  { %646 = vrot.lane.b32.xlu1 %v563_v31, %s4853_s4  ;;  %570 = vst.msk [vmem:[#allocation3] sm:$0x1] %vm568_vm5, %v563_v31 }
 0x3d7   :  { %573 = vst.msk [vmem:[#allocation3 + $0x7] sm:$0x2] %vm571_vm6, %v563_v31 }
 0x3de   :  { %v553_v48 = vpop.permute.xlu1 %552 }
 0x3df   :  { %v555_v39 = vmul.f32 %v5433_v28, %v553_v48 }
 0x3e1   :  { %565 = vrot.lane.b32.xlu0 %v555_v39, %s4853_s4  ;;  %v6932_v39 = vmov 0  }
 0x3f3   :  { %v628_v23 = vpop.permute.xlu1 %627 }
 0x3f4   :  { %v630_v51 = vmul.f32 %v628_v23, %v625_v6 }
 0x3f6   :  { %v5463_v21 = vadd.f32 %v630_v51, %v608_v35 }
 0x3f8   :  { %6931 = vst [vmem:[#allocation12_spill] sm:$0xff] %v5463_v21  ;;  %v649_v28 = vrot.slane %v5463_v21, 6 }
 0x400   :  { %v622_v42 = vpop.permute.xlu0 %621 }
 0x401   :  { %v624_v57 = vmul.f32 %v4572_v25, %v622_v42 }
 0x403   :  { %633 = vst.msk [vmem:[#allocation2 + $0x1] sm:$0x40] %vm632_vm7, %v624_v57  ;;  %v643_v20 = vrot.slane %v624_v57, 6 }
 0x404   :  { %640 = vst.msk [vmem:[#allocation2 + $0x8] sm:$0x80] %vm639_vm8, %v624_v57 }
 0x448   :  { %v647_v14 = vpop.permute.xlu1 %646 }
 0x453   :  { %v566_v22 = vpop.permute.xlu0 %565 }
 0x454   :  { %569 = vst.msk [vmem:[#allocation2] sm:$0x1] %vm568_vm5, %v566_v22  ;;  %v651_v31 = vsel %vm223_vm4, %v566_v22, %v643_v20 }
 0x455   :  { %572 = vst.msk [vmem:[#allocation2 + $0x7] sm:$0x2] %vm571_vm6, %v566_v22  ;;  %v653_v48 = vsel %vm652_vm9, %v651_v31, %v647_v14 }
 0x456   :  { %v5471_v25 = vsel %vm654_vm10, %v653_v48, %v649_v28 }
 0x457   :  { %v656_v35 = vpack.c.bf16 %v5471_v25, %v5471_v25 }
 0x459   :  { %690 = vmatmul.mubr.bf16.vlgmr.msra.gmra.mrb[4].mxu0 %v656_v35  ;;  %731 = vmatmul.mubr.bf16.vlgmr.msra.gmra.mrb[16].mxu1 %v656_v35 }
 0x45a   :  { %904 = vmatpush1.bf16.msra.mxu0 %v5041_v40  ;;  %945 = vmatpush1.bf16.msra.mxu1 %v5230_v44 }
 0x45b   :  { %905 = vmatprep.subr.bf16.mxu0 %v5051_v43  ;;  %946 = vmatprep.subr.bf16.mxu1 %v5233_v45 }
 0x45c   :  { %935 = vmatprep.mubr.bf16.mxu0 %v6932_v39  ;;  %976 = vmatprep.mubr.bf16.mxu1 %v6932_v39 }
 0x45e   :  { %906 = vmatpush1.bf16.msra.mxu0 %v5059_v46  ;;  %947 = vmatpush1.bf16.msra.mxu1 %v5249_v53 }
 0x45f   :  { %907 = vmatprep.subr.bf16.mxu0 %v5069_v49  ;;  %948 = vmatprep.subr.bf16.mxu1 %v5253_v54 }
 0x462   :  { %908 = vmatpush1.bf16.msra.mxu0 %v5077_v52  ;;  %949 = vmatpush1.bf16.msra.mxu1 %v5268_v62 }
 0x463   :  { %909 = vmatprep.subr.bf16.mxu0 %v5087_v55  ;;  %950 = vmatprep.subr.bf16.mxu1 %v5271_v63 }
 0x466   :  { %910 = vmatpush1.bf16.msra.mxu0 %v5095_v58  ;;  %951 = vmatpush1.bf16.msra.mxu1 %v5286_v8 }
 0x467   :  { %911 = vmatprep.subr.bf16.mxu0 %v5105_v61  ;;  %952 = vmatprep.subr.bf16.mxu1 %v5289_v9 }
 0x46a   :  { %912 = vmatpush1.bf16.msra.mxu0 %v5113_v0  ;;  %953 = vmatpush1.bf16.msra.mxu1 %v5304_v17 }
 0x46b   :  { %913 = vmatprep.subr.bf16.mxu0 %v5123_v4  ;;  %954 = vmatprep.subr.bf16.mxu1 %v5307_v18 }
 0x46e   :  { %914 = vmatpush1.bf16.msra.mxu0 %v5131_v7  ;;  %955 = vmatpush1.bf16.msra.mxu1 %v5322_v26 }
 0x46f   :  { %915 = vmatprep.subr.bf16.mxu0 %v5141_v10  ;;  %956 = vmatprep.subr.bf16.mxu1 %v5325_v27 }
 0x472   :  { %916 = vmatpush1.bf16.msra.mxu0 %v5149_v13  ;;  %957 = vmatpush1.bf16.msra.mxu1 %v5340_v32 }
 0x473   :  { %917 = vmatprep.subr.bf16.mxu0 %v5159_v16  ;;  %958 = vmatprep.subr.bf16.mxu1 %v5343_v33 }
 0x476   :  { %918 = vmatpush1.bf16.msra.mxu0 %v5167_v19  ;;  %959 = vmatpush1.bf16.msra.mxu1 %v5352_v38 }
 0x477   :  { %1147 = vmatprep.subr.bf16.mxu0 %v5033_v37  ;;  %1188 = vmatprep.subr.bf16.mxu1 %v5215_v36 }
 0x52c   :  { %v691_v42 = vpop.f32.mrb[4].mxu0  ;;  %v732_v57 = vpop.f32.mrb[16].mxu1 }
 0x52d   :  { %v693_v23 = vpop.f32.mrb[5].mxu0  ;;  %v734_v6 = vpop.f32.mrb[17].mxu1 }
 0x52e   :  { %v694_v51 = vadd.f32 %v693_v23, %v5400_v24  ;;  %v735_v20 = vadd.f32 %v734_v6, %v5411_v59  ;;  %v695_v22 = vpop.f32.mrb[6].mxu0  ;;  %v736_v28 = vpop.f32.mrb[18].mxu1 }
 0x52f   :  { %v696_v14 = vpop.f32.mrb[7].mxu0  ;;  %v737_v31 = vpop.f32.mrb[19].mxu1  ;;  %v733_v28 = vadd.f32 %v732_v57, %v5427_v11 }
 0x530   :  { %v742_v48 = vrot.slane %v694_v51, 6  ;;  %v817_v35 = vrot.slane %v735_v20, 4  ;;  %v692_v20 = vadd.f32 %v691_v42, %v5420_v60 }
 0x531   :  { %v816_v31 = vrot.slane %v733_v28, 4 }
 0x532   :  { %v5512_v56 = vadd.f32 %v742_v48, %v5402_v30  ;;  %760 = vrot.lane.b32.xlu0 %v742_v48, %s4851_s28  ;;  %v823_v47 = vadd.f32 %v817_v35, %v5414_v29  ;;  %v741_v22 = vrot.slane %v692_v20, 6 }
 0x533   :  { %v822_v41 = vadd.f32 %v816_v31, %v5430_v34 }
 0x534   :  { %4587 = vtanh.f32 %v5512_v56  ;;  %v745_v14 = vadd.f32 %v741_v22, %v5423_v2 }
 0x535   :  { %4589 = vtanh.f32 %v823_v47  ;;  %v815_v47 = vrot.slane %v694_v51, 4 }
 0x536   :  { %837 = vrot.lane.b32.xlu0 %v817_v35, %s4851_s28  ;;  %v4190_v48 = vmul.f32 -1.442695, %v745_v14  ;;  %v4193_v35 = vmul.f32 -1.442695, %v822_v41 }
 0x538   :  { %4591 = vpow2.f32 %v4190_v48 }
 0x539   :  { %4593 = vpow2.f32 %v4193_v35 }
 0x53e   :  { %v4588_v23 = vpop.eup %4587 }
 0x53f   :  { %775 = vrot.lane.b32.xlu1 %v4588_v23, %s4852_s5  ;;  %v4590_v6 = vpop.eup %4589  ;;  %v821_v23 = vadd.f32 %v815_v47, %v5389_v3  ;;  %v797_v47 = vrot.slane %v5471_v25, 6 }
 0x541   :  { %v4192_v1 = vmul.f32 -1.442695, %v821_v23 }
 0x542   :  { %v4592_v21 = vpop.eup %4591 }
 0x543   :  { %852 = vrot.lane.b32.xlu1 %v4590_v6, %s4852_s5  ;;  %v753_v12 = vadd.f32 1.0, %v4592_v21  ;;  %v4594_v6 = vpop.eup %4593 }
 0x544   :  { %v831_v42 = vadd.f32 1.0, %v4594_v6 }
 0x545   :  { %4595 = vrcp.f32 %v753_v12 }
 0x546   :  { %4597 = vpow2.f32 %v4192_v1 }
 0x547   :  { %4599 = vrcp.f32 %v831_v42  ;;  %v771_v42 = vrot.slane %v5444_v5, 6 }
 0x54f   :  { %v4596_v57 = vpop.eup %4595 }
 0x550   :  { %v4598_v22 = vpop.eup %4597 }
 0x551   :  { %v5526_v14 = vpop.eup %4599  ;;  %v830_v41 = vadd.f32 1.0, %v4598_v22 }
 0x553   :  { %4601 = vrcp.f32 %v830_v41 }
 0x55d   :  { %v4602_v1 = vpop.eup %4601 }
 0x5a4   :  { %v761_v20 = vpop.permute.xlu0 %760 }
 0x5a5   :  { %v763_v28 = vmul.f32 %v4596_v57, %v761_v20  ;;  %v773_v20 = vmul.f32 %v4596_v57, %v771_v42 }
 0x5a7   :  { %765 = vrot.lane.b32.xlu0 %v763_v28, %s4852_s5 }
 0x5a8   :  { %v838_v51 = vpop.permute.xlu0 %837 }
 0x5a9   :  { %v840_v31 = vmul.f32 %v5526_v14, %v838_v51 }
 0x5ab   :  { %842 = vrot.lane.b32.xlu0 %v840_v31, %s4852_s5  ;;  %v848_v31 = vrot.slane %v5450_v50, 2  ;;  %v4191_v50 = vmul.f32 -1.442695, %v5512_v56 }
 0x5b1   :  { %v776_v21 = vpop.permute.xlu1 %775 }
 0x5b2   :  { %v778_v12 = vmul.f32 %v4596_v57, %v776_v21 }
 0x5b4   :  { %780 = vrot.lane.b32.xlu1 %v778_v12, %s4851_s28  ;;  %v850_v12 = vmul.f32 %v5526_v14, %v848_v31 }
 0x5b5   :  { %v853_v48 = vpop.permute.xlu1 %852 }
 0x5b6   :  { %v855_v35 = vmul.f32 %v4602_v1, %v853_v48 }
 0x5b8   :  { %857 = vrot.lane.b32.xlu1 %v855_v35, %s4851_s28 }
 0x5bc   :  { %798 = vrot.lane.b32.xlu1 %v797_v47, %s4853_s4 }
 0x619   :  { %v766_v23 = vpop.permute.xlu0 %765 }
 0x61a   :  { %v768_v6 = vadd.f32 %v766_v23, %v5402_v30 }
 0x61c   :  { %4603 = vtanh.f32 %v768_v6 }
 0x61d   :  { %v843_v28 = vpop.permute.xlu0 %842 }
 0x61e   :  { %v845_v21 = vadd.f32 %v843_v28, %v5414_v29 }
 0x626   :  { %v4604_v22 = vpop.eup %4603  ;;  %v781_v41 = vpop.permute.xlu1 %780 }
 0x627   :  { %v5536_v51 = vadd.f32 %v781_v41, %v773_v20  ;;  %792 = vrot.lane.b32.xlu0 %v4604_v22, %s4853_s4 }
 0x629   :  { %4605 = vtanh.f32 %v5536_v51 }
 0x62a   :  { %v858_v1 = vpop.permute.xlu1 %857  ;;  %4607 = vtanh.f32 %v845_v21 }
 0x62b   :  { %v5543_v48 = vadd.f32 %v858_v1, %v850_v12 }
 0x62d   :  { %4609 = vtanh.f32 %v5543_v48 }
 0x62e   :  { %4611 = vpow2.f32 %v4191_v50  ;;  %v799_v20 = vpop.permute.xlu1 %798  ;;  %v873_v50 = vrot.slane %v5471_v25, 4 }
 0x633   :  { %v4606_v5 = vpop.eup %4605 }
 0x634   :  { %786 = vrot.lane.b32.xlu0 %v4606_v5, %s4851_s28  ;;  %v4608_v35 = vpop.eup %4607 }
 0x637   :  { %v4610_v47 = vpop.eup %4609 }
 0x638   :  { %869 = vrot.lane.b32.xlu0 %v4608_v35, %s4853_s4  ;;  %863 = vrot.lane.b32.xlu1 %v4610_v47, %s4851_s28  ;;  %v4612_v23 = vpop.eup %4611  ;;  %v867_v47 = vsub.f32 1.0, %v5526_v14 }
 0x639   :  { %v754_v6 = vadd.f32 1.0, %v4612_v23 }
 0x63b   :  { %4613 = vrcp.f32 %v754_v6  ;;  %v875_v6 = vmul.f32 %v5526_v14, %v873_v50 }
 0x645   :  { %v4614_v42 = vpop.eup %4613 }
 0x646   :  { %v790_v22 = vsub.f32 1.0, %v4614_v42  ;;  %v801_v41 = vmul.f32 %v4614_v42, %v799_v20 }
 0x699   :  { %v793_v28 = vpop.permute.xlu0 %792 }
 0x69a   :  { %v795_v31 = vmul.f32 %v793_v28, %v790_v22 }
 0x69c   :  { %v802_v21 = vadd.f32 %v801_v41, %v795_v31 }
 0x69e   :  { %891 = vrot.lane.b32.xlu0 %v802_v21, %s4853_s4  ;;  %809 = vst.msk [vmem:[#allocation3 - $0x1] sm:$0x4] %vm6913_vm11, %v802_v21 }
 0x69f   :  { %812 = vst.msk [vmem:[#allocation3 + $0x6] sm:$0x8] %vm6912_vm12, %v802_v21 }
 0x6a6   :  { %v787_v56 = vpop.permute.xlu0 %786 }
 0x6a7   :  { %v789_v12 = vmul.f32 %v4596_v57, %v787_v56 }
 0x6a9   :  { %804 = vrot.lane.b32.xlu1 %v789_v12, %s4853_s4 }
 0x6aa   :  { %v864_v1 = vpop.permute.xlu1 %863  ;;  %v870_v35 = vpop.permute.xlu0 %869 }
 0x6ab   :  { %v866_v5 = vmul.f32 %v5526_v14, %v864_v1  ;;  %v872_v23 = vmul.f32 %v870_v35, %v867_v47 }
 0x6ad   :  { %878 = vst.msk [vmem:[#allocation2 + $0x2] sm:$0x10] %vm877_vm13, %v866_v5  ;;  %v5560_v57 = vadd.f32 %v875_v6, %v872_v23  ;;  %v888_v42 = vrot.slane %v866_v5, 2 }
 0x6ae   :  { %885 = vst.msk [vmem:[#allocation2 + $0x9] sm:$0x20] %vm884_vm14, %v866_v5 }
 0x6af   :  { %6933 = vst [vmem:[#allocation13_spill] sm:$0xff] %v5560_v57  ;;  %v894_v22 = vrot.slane %v5560_v57, 2 }
 0x710   :  { %v892_v28 = vpop.permute.xlu0 %891 }
 0x71b   :  { %v805_v20 = vpop.permute.xlu1 %804 }
 0x71c   :  { %808 = vst.msk [vmem:[#allocation2 - $0x1] sm:$0x4] %vm6913_vm11, %v805_v20  ;;  %v896_v41 = vsel %vm223_vm4, %v805_v20, %v888_v42 }
 0x71d   :  { %811 = vst.msk [vmem:[#allocation2 + $0x6] sm:$0x8] %vm6912_vm12, %v805_v20  ;;  %v897_v31 = vsel %vm652_vm9, %v896_v41, %v892_v28 }
 0x71e   :  { %v5568_v25 = vsel %vm654_vm10, %v897_v31, %v894_v22 }
 0x71f   :  { %v899_v14 = vpack.c.bf16 %v5568_v25, %v5568_v25 }
 0x721   :  { %v901_v21 = vrot.slane %v899_v14, 1 }
 0x723   :  { %936 = vmatmul.mubr.bf16.vlgmr.msra.gmra.mrb[8].mxu0 %v901_v21  ;;  %977 = vmatmul.mubr.bf16.vlgmr.msra.gmra.mrb[20].mxu1 %v901_v21 }
 0x724   :  { %1148 = vmatpush1.bf16.msra.mxu0 %v5041_v40  ;;  %1189 = vmatpush1.bf16.msra.mxu1 %v5230_v44 }
 0x725   :  { %1149 = vmatprep.subr.bf16.mxu0 %v5051_v43  ;;  %1190 = vmatprep.subr.bf16.mxu1 %v5233_v45 }
 0x726   :  { %1179 = vmatprep.mubr.bf16.mxu0 %v6932_v39  ;;  %1220 = vmatprep.mubr.bf16.mxu1 %v6932_v39 }
 0x728   :  { %1150 = vmatpush1.bf16.msra.mxu0 %v5059_v46  ;;  %1191 = vmatpush1.bf16.msra.mxu1 %v5249_v53 }
 0x729   :  { %1151 = vmatprep.subr.bf16.mxu0 %v5069_v49  ;;  %1192 = vmatprep.subr.bf16.mxu1 %v5253_v54 }
 0x72c   :  { %1152 = vmatpush1.bf16.msra.mxu0 %v5077_v52  ;;  %1193 = vmatpush1.bf16.msra.mxu1 %v5268_v62 }
 0x72d   :  { %1153 = vmatprep.subr.bf16.mxu0 %v5087_v55  ;;  %1194 = vmatprep.subr.bf16.mxu1 %v5271_v63 }
 0x730   :  { %1154 = vmatpush1.bf16.msra.mxu0 %v5095_v58  ;;  %1195 = vmatpush1.bf16.msra.mxu1 %v5286_v8 }
 0x731   :  { %1155 = vmatprep.subr.bf16.mxu0 %v5105_v61  ;;  %1196 = vmatprep.subr.bf16.mxu1 %v5289_v9 }
 0x734   :  { %1156 = vmatpush1.bf16.msra.mxu0 %v5113_v0  ;;  %1197 = vmatpush1.bf16.msra.mxu1 %v5304_v17 }
 0x735   :  { %1157 = vmatprep.subr.bf16.mxu0 %v5123_v4  ;;  %1198 = vmatprep.subr.bf16.mxu1 %v5307_v18 }
 0x738   :  { %1158 = vmatpush1.bf16.msra.mxu0 %v5131_v7  ;;  %1199 = vmatpush1.bf16.msra.mxu1 %v5322_v26 }
 0x739   :  { %1159 = vmatprep.subr.bf16.mxu0 %v5141_v10  ;;  %1200 = vmatprep.subr.bf16.mxu1 %v5325_v27 }
 0x73c   :  { %1160 = vmatpush1.bf16.msra.mxu0 %v5149_v13  ;;  %1201 = vmatpush1.bf16.msra.mxu1 %v5340_v32 }
 0x73d   :  { %1161 = vmatprep.subr.bf16.mxu0 %v5159_v16  ;;  %1202 = vmatprep.subr.bf16.mxu1 %v5343_v33 }
 0x740   :  { %1162 = vmatpush1.bf16.msra.mxu0 %v5167_v19  ;;  %1203 = vmatpush1.bf16.msra.mxu1 %v5352_v38 }
 0x741   :  { %1386 = vmatprep.subr.bf16.mxu0 %v5033_v37  ;;  %1427 = vmatprep.subr.bf16.mxu1 %v5215_v36 }
 0x7f6   :  { %v937_v56 = vpop.f32.mrb[8].mxu0  ;;  %v978_v12 = vpop.f32.mrb[20].mxu1 }
 0x7f7   :  { %v939_v1 = vpop.f32.mrb[9].mxu0  ;;  %v980_v5 = vpop.f32.mrb[21].mxu1  ;;  %v938_v21 = vadd.f32 %v937_v56, %v5420_v60 }
 0x7f8   :  { %v940_v35 = vadd.f32 %v939_v1, %v5400_v24  ;;  %v981_v47 = vadd.f32 %v980_v5, %v5411_v59  ;;  %v941_v50 = vpop.f32.mrb[10].mxu0  ;;  %v982_v23 = vpop.f32.mrb[22].mxu1  ;;  %v979_v5 = vadd.f32 %v978_v12, %v5427_v11 }
 0x7f9   :  { %v942_v6 = vpop.f32.mrb[11].mxu0  ;;  %v983_v42 = vpop.f32.mrb[23].mxu1  ;;  %v987_v1 = vrot.slane %v938_v21, 4 }
 0x7fa   :  { %v988_v20 = vrot.slane %v940_v35, 4  ;;  %v1063_v22 = vrot.slane %v981_v47, 6  ;;  %v1062_v50 = vrot.slane %v979_v5, 6 }
 0x7fb   :  { %v991_v47 = vadd.f32 %v987_v1, %v5423_v2 }
 0x7fc   :  { %v5609_v28 = vadd.f32 %v988_v20, %v5402_v30  ;;  %1006 = vrot.lane.b32.xlu1 %v988_v20, %s4851_s28  ;;  %v1069_v41 = vadd.f32 %v1063_v22, %v5414_v29  ;;  %v1068_v6 = vadd.f32 %v1062_v50, %v5430_v34  ;;  %v1061_v20 = vrot.slane %v940_v35, 6 }
 0x7fd   :  { %v4194_v23 = vmul.f32 -1.442695, %v991_v47 }
 0x7fe   :  { %4615 = vtanh.f32 %v5609_v28  ;;  %v4197_v42 = vmul.f32 -1.442695, %v1068_v6 }
 0x7ff   :  { %4617 = vtanh.f32 %v1069_v41  ;;  %v1067_v41 = vadd.f32 %v1061_v20, %v5389_v3 }
 0x800   :  { %1083 = vrot.lane.b32.xlu1 %v1063_v22, %s4851_s28  ;;  %4619 = vpow2.f32 %v4194_v23 }
 0x801   :  { %4621 = vpow2.f32 %v4197_v42  ;;  %v4196_v57 = vmul.f32 -1.442695, %v1067_v41  ;;  %v1043_v41 = vrot.slane %v5568_v25, 6 }
 0x808   :  { %v4616_v31 = vpop.eup %4615 }
 0x809   :  { %1021 = vrot.lane.b32.xlu0 %v4616_v31, %s4852_s5  ;;  %v4618_v14 = vpop.eup %4617 }
 0x80a   :  { %v4620_v22 = vpop.eup %4619 }
 0x80b   :  { %v999_v31 = vadd.f32 1.0, %v4620_v22 }
 0x80d   :  { %1098 = vrot.lane.b32.xlu0 %v4618_v14, %s4852_s5  ;;  %v4622_v14 = vpop.eup %4621  ;;  %4623 = vrcp.f32 %v999_v31 }
 0x80e   :  { %v1077_v56 = vadd.f32 1.0, %v4622_v14  ;;  %4625 = vpow2.f32 %v4196_v57 }
 0x810   :  { %4627 = vrcp.f32 %v1077_v56  ;;  %v1017_v56 = vrot.slane %v5536_v51, 6 }
 0x817   :  { %v4624_v12 = vpop.eup %4623 }
 0x818   :  { %v4626_v1 = vpop.eup %4625 }
 0x819   :  { %v1076_v50 = vadd.f32 1.0, %v4626_v1 }
 0x81a   :  { %v5623_v47 = vpop.eup %4627 }
 0x81b   :  { %4629 = vrcp.f32 %v1076_v50 }
 0x825   :  { %v4630_v57 = vpop.eup %4629 }
 0x86e   :  { %v1007_v21 = vpop.permute.xlu1 %1006 }
 0x86f   :  { %v1009_v5 = vmul.f32 %v4624_v12, %v1007_v21  ;;  %v1019_v21 = vmul.f32 %v4624_v12, %v1017_v56 }
 0x871   :  { %1011 = vrot.lane.b32.xlu1 %v1009_v5, %s4852_s5 }
 0x872   :  { %v1084_v35 = vpop.permute.xlu1 %1083 }
 0x873   :  { %v1086_v23 = vmul.f32 %v5623_v47, %v1084_v35 }
 0x875   :  { %1088 = vrot.lane.b32.xlu1 %v1086_v23, %s4852_s5  ;;  %v1094_v23 = vrot.slane %v5543_v48, 2  ;;  %v4195_v48 = vmul.f32 -1.442695, %v5609_v28 }
 0x87b   :  { %v1022_v6 = vpop.permute.xlu0 %1021 }
 0x87c   :  { %v1024_v42 = vmul.f32 %v4624_v12, %v1022_v6 }
 0x87e   :  { %1026 = vrot.lane.b32.xlu0 %v1024_v42, %s4851_s28  ;;  %v1096_v42 = vmul.f32 %v5623_v47, %v1094_v23 }
 0x87f   :  { %v1099_v20 = vpop.permute.xlu0 %1098 }
 0x880   :  { %v1101_v22 = vmul.f32 %v4630_v57, %v1099_v20 }
 0x882   :  { %1103 = vrot.lane.b32.xlu0 %v1101_v22, %s4851_s28 }
 0x886   :  { %1044 = vrot.lane.b32.xlu0 %v1043_v41, %s4853_s4 }
 0x8e3   :  { %v1012_v31 = vpop.permute.xlu1 %1011 }
 0x8e4   :  { %v1014_v14 = vadd.f32 %v1012_v31, %v5402_v30 }
 0x8e6   :  { %4631 = vtanh.f32 %v1014_v14 }
 0x8e7   :  { %v1089_v5 = vpop.permute.xlu1 %1088 }
 0x8e8   :  { %v1091_v6 = vadd.f32 %v1089_v5, %v5414_v29 }
 0x8f0   :  { %v4632_v1 = vpop.eup %4631  ;;  %v1027_v50 = vpop.permute.xlu0 %1026 }
 0x8f1   :  { %v5633_v35 = vadd.f32 %v1027_v50, %v1019_v21  ;;  %1038 = vrot.lane.b32.xlu1 %v4632_v1, %s4853_s4 }
 0x8f3   :  { %4633 = vtanh.f32 %v5633_v35 }
 0x8f4   :  { %v1104_v57 = vpop.permute.xlu0 %1103  ;;  %4635 = vtanh.f32 %v1091_v6 }
 0x8f5   :  { %v5640_v20 = vadd.f32 %v1104_v57, %v1096_v42 }
 0x8f7   :  { %4637 = vtanh.f32 %v5640_v20 }
 0x8f8   :  { %4639 = vpow2.f32 %v4195_v48  ;;  %v1045_v21 = vpop.permute.xlu0 %1044 }
 0x8fd   :  { %v4634_v51 = vpop.eup %4633 }
 0x8fe   :  { %1032 = vrot.lane.b32.xlu1 %v4634_v51, %s4851_s28  ;;  %v4636_v22 = vpop.eup %4635 }
 0x901   :  { %v4638_v41 = vpop.eup %4637 }
 0x902   :  { %1115 = vrot.lane.b32.xlu1 %v4636_v22, %s4853_s4  ;;  %1109 = vrot.lane.b32.xlu0 %v4638_v41, %s4851_s28  ;;  %v4640_v31 = vpop.eup %4639  ;;  %v1113_v41 = vsub.f32 1.0, %v5623_v47 }
 0x903   :  { %v1000_v14 = vadd.f32 1.0, %v4640_v31  ;;  %v1119_v31 = vmul.f32 %v5623_v47, %v5568_v25 }
 0x905   :  { %4641 = vrcp.f32 %v1000_v14 }
 0x90f   :  { %v4642_v56 = vpop.eup %4641 }
 0x910   :  { %v1036_v1 = vsub.f32 1.0, %v4642_v56  ;;  %v1047_v50 = vmul.f32 %v4642_v56, %v1045_v21 }
 0x963   :  { %v1039_v5 = vpop.permute.xlu1 %1038 }
 0x964   :  { %v1041_v23 = vmul.f32 %v1039_v5, %v1036_v1 }
 0x966   :  { %v1048_v6 = vadd.f32 %v1047_v50, %v1041_v23 }
 0x968   :  { %1135 = vrot.lane.b32.xlu1 %v1048_v6, %s4853_s4  ;;  %1055 = vst.msk [vmem:[#allocation3 - $0x2] sm:$0x10] %vm6908_vm15, %v1048_v6 }
 0x969   :  { %1058 = vst.msk [vmem:[#allocation3 + $0x5] sm:$0x20] %vm6907_vm1, %v1048_v6 }
 0x970   :  { %v1033_v28 = vpop.permute.xlu1 %1032 }
 0x971   :  { %v1035_v42 = vmul.f32 %v4624_v12, %v1033_v28 }
 0x973   :  { %1050 = vrot.lane.b32.xlu0 %v1035_v42, %s4853_s4 }
 0x974   :  { %v1110_v57 = vpop.permute.xlu0 %1109  ;;  %v1116_v22 = vpop.permute.xlu1 %1115 }
 0x975   :  { %v1112_v51 = vmul.f32 %v5623_v47, %v1110_v57  ;;  %v1118_v48 = vmul.f32 %v1116_v22, %v1113_v41 }
 0x977   :  { %1122 = vst.msk [vmem:[#allocation2 + $0x3] sm:$0x4] %vm1121_vm2, %v1112_v51  ;;  %v5657_v14 = vadd.f32 %v1119_v31, %v1118_v48  ;;  %v1132_v12 = vrot.slane %v1112_v51, 6 }
 0x978   :  { %1129 = vst.msk [vmem:[#allocation2 + $0xa] sm:$0x8] %vm6909_vm3, %v1112_v51  ;;  %vm1367_vm3 = vcmask 517377  }
 0x979   :  { %v1138_v21 = vrot.slane %v5657_v14, 6 }
 0x9da   :  { %v1136_v1 = vpop.permute.xlu1 %1135 }
 0x9e5   :  { %v1051_v56 = vpop.permute.xlu0 %1050 }
 0x9e6   :  { %1054 = vst.msk [vmem:[#allocation2 - $0x2] sm:$0x10] %vm6908_vm15, %v1051_v56  ;;  %v1140_v5 = vsel %vm223_vm4, %v1051_v56, %v1132_v12  ;;  %vm1360_vm15 = vcmask 516352  }
 0x9e7   :  { %1057 = vst.msk [vmem:[#allocation2 + $0x5] sm:$0x20] %vm6907_vm1, %v1051_v56  ;;  %v1141_v50 = vsel %vm652_vm9, %v1140_v5, %v1136_v1  ;;  %vm6914_vm1 = vcmask 261127  }
 0x9e8   :  { %v5665_v23 = vsel %vm654_vm10, %v1141_v50, %v1138_v21 }
 0x9e9   :  { %v1143_v25 = vpack.c.bf16 %v5665_v23, %v5665_v23 }
 0x9eb   :  { %v1145_v47 = vrot.slane %v1143_v25, 2 }
 0x9ed   :  { %1180 = vmatmul.mubr.bf16.vlgmr.msra.gmra.mrb[12].mxu0 %v1145_v47  ;;  %1221 = vmatmul.mubr.bf16.vlgmr.msra.gmra.mrb[24].mxu1 %v1145_v47 }
 0x9ee   :  { %1387 = vmatpush1.bf16.msra.mxu0 %v5041_v40  ;;  %1428 = vmatpush1.bf16.msra.mxu1 %v5230_v44 }
 0x9ef   :  { %1388 = vmatprep.subr.bf16.mxu0 %v5051_v43  ;;  %1429 = vmatprep.subr.bf16.mxu1 %v5233_v45 }
 0x9f0   :  { %1418 = vmatprep.mubr.bf16.mxu0 %v6932_v39  ;;  %1459 = vmatprep.mubr.bf16.mxu1 %v6932_v39 }
 0x9f2   :  { %1389 = vmatpush1.bf16.msra.mxu0 %v5059_v46  ;;  %1430 = vmatpush1.bf16.msra.mxu1 %v5249_v53 }
 0x9f3   :  { %1390 = vmatprep.subr.bf16.mxu0 %v5069_v49  ;;  %1431 = vmatprep.subr.bf16.mxu1 %v5253_v54 }
 0x9f6   :  { %1391 = vmatpush1.bf16.msra.mxu0 %v5077_v52  ;;  %1432 = vmatpush1.bf16.msra.mxu1 %v5268_v62 }
 0x9f7   :  { %1392 = vmatprep.subr.bf16.mxu0 %v5087_v55  ;;  %1433 = vmatprep.subr.bf16.mxu1 %v5271_v63 }
 0x9fa   :  { %1393 = vmatpush1.bf16.msra.mxu0 %v5095_v58  ;;  %1434 = vmatpush1.bf16.msra.mxu1 %v5286_v8 }
 0x9fb   :  { %1394 = vmatprep.subr.bf16.mxu0 %v5105_v61  ;;  %1435 = vmatprep.subr.bf16.mxu1 %v5289_v9 }
 0x9fe   :  { %1395 = vmatpush1.bf16.msra.mxu0 %v5113_v0  ;;  %1436 = vmatpush1.bf16.msra.mxu1 %v5304_v17 }
 0x9ff   :  { %1396 = vmatprep.subr.bf16.mxu0 %v5123_v4  ;;  %1437 = vmatprep.subr.bf16.mxu1 %v5307_v18 }
 0xa02   :  { %1397 = vmatpush1.bf16.msra.mxu0 %v5131_v7  ;;  %1438 = vmatpush1.bf16.msra.mxu1 %v5322_v26 }
 0xa03   :  { %1398 = vmatprep.subr.bf16.mxu0 %v5141_v10  ;;  %1439 = vmatprep.subr.bf16.mxu1 %v5325_v27 }
 0xa06   :  { %1399 = vmatpush1.bf16.msra.mxu0 %v5149_v13  ;;  %1440 = vmatpush1.bf16.msra.mxu1 %v5340_v32 }
 0xa07   :  { %1400 = vmatprep.subr.bf16.mxu0 %v5159_v16  ;;  %1441 = vmatprep.subr.bf16.mxu1 %v5343_v33 }
 0xa0a   :  { %1401 = vmatpush1.bf16.msra.mxu0 %v5167_v19  ;;  %1442 = vmatpush1.bf16.msra.mxu1 %v5352_v38 }
 0xa0b   :  { %1618 = vmatprep.subr.bf16.mxu0 %v5033_v37  ;;  %1659 = vmatprep.subr.bf16.mxu1 %v5215_v36 }
 0xac0   :  { %v1181_v6 = vpop.f32.mrb[12].mxu0  ;;  %v1222_v28 = vpop.f32.mrb[24].mxu1 }
 0xac1   :  { %v1183_v42 = vpop.f32.mrb[13].mxu0  ;;  %v1224_v57 = vpop.f32.mrb[25].mxu1  ;;  %v1182_v25 = vadd.f32 %v1181_v6, %v5420_v60 }
 0xac2   :  { %v1184_v51 = vadd.f32 %v1183_v42, %v5400_v24  ;;  %v1185_v22 = vpop.f32.mrb[14].mxu0  ;;  %v1226_v41 = vpop.f32.mrb[26].mxu1  ;;  %v1225_v56 = vadd.f32 %v1224_v57, %v5411_v59  ;;  %v1223_v57 = vadd.f32 %v1222_v28, %v5427_v11 }
 0xac3   :  { %v1186_v48 = vpop.f32.mrb[15].mxu0  ;;  %v1227_v31 = vpop.f32.mrb[27].mxu1  ;;  %v1231_v47 = vrot.slane %v1182_v25, 2 }
 0xac4   :  { %v1232_v12 = vrot.slane %v1184_v51, 2  ;;  %v1305_v1 = vadd.f32 %v1225_v56, %v5414_v29  ;;  %v1304_v41 = vadd.f32 %v1223_v57, %v5430_v34  ;;  %v1303_v31 = vadd.f32 %v1184_v51, %v5389_v3 }
 0xac5   :  { %v1235_v42 = vadd.f32 %v1231_v47, %v5423_v2 }
 0xac6   :  { %v5706_v21 = vadd.f32 %v1232_v12, %v5402_v30  ;;  %1250 = vrot.lane.b32.xlu0 %v1232_v12, %s4851_s28  ;;  %v4201_v48 = vmul.f32 -1.442695, %v1304_v41 }
 0xac7   :  { %v4198_v22 = vmul.f32 -1.442695, %v1235_v42 }
 0xac8   :  { %4643 = vtanh.f32 %v5706_v21 }
 0xac9   :  { %4645 = vtanh.f32 %v1305_v1 }
 0xaca   :  { %1320 = vrot.lane.b32.xlu0 %v1225_v56, %s4851_s28  ;;  %4647 = vpow2.f32 %v4198_v22  ;;  %v4200_v56 = vmul.f32 -1.442695, %v1303_v31 }
 0xacb   :  { %4649 = vpow2.f32 %v4201_v48 }
 0xacc   :  { %4651 = vpow2.f32 %v4200_v56 }
 0xad2   :  { %v4644_v5 = vpop.eup %4643 }
 0xad3   :  { %1265 = vrot.lane.b32.xlu1 %v4644_v5, %s4852_s5  ;;  %v4646_v50 = vpop.eup %4645 }
 0xad4   :  { %v4648_v12 = vpop.eup %4647 }
 0xad5   :  { %v1243_v1 = vadd.f32 1.0, %v4648_v12  ;;  %v4650_v5 = vpop.eup %4649  ;;  %v1287_v12 = vrot.slane %v5665_v23, 6 }
 0xad6   :  { %v1313_v6 = vadd.f32 1.0, %v4650_v5  ;;  %v1261_v5 = vrot.slane %v5633_v35, 6 }
 0xad7   :  { %1335 = vrot.lane.b32.xlu1 %v4646_v50, %s4852_s5  ;;  %4653 = vrcp.f32 %v1243_v1  ;;  %v4652_v50 = vpop.eup %4651 }
 0xad8   :  { %4655 = vrcp.f32 %v1313_v6  ;;  %v1312_v47 = vadd.f32 1.0, %v4652_v50 }
 0xada   :  { %4657 = vrcp.f32 %v1312_v47  ;;  %v1331_v47 = vrot.slane %v5640_v20, 2 }
 0xae1   :  { %v4654_v2 = vpop.eup %4653 }
 0xae2   :  { %v5720_v34 = vpop.eup %4655  ;;  %v1263_v50 = vmul.f32 %v4654_v2, %v1261_v5 }
 0xae4   :  { %v4658_v41 = vpop.eup %4657 }
 0xb38   :  { %v1251_v25 = vpop.permute.xlu0 %1250 }
 0xb39   :  { %v1253_v28 = vmul.f32 %v4654_v2, %v1251_v25 }
 0xb3b   :  { %1255 = vrot.lane.b32.xlu0 %v1253_v28, %s4852_s5 }
 0xb3c   :  { %v1321_v42 = vpop.permute.xlu0 %1320 }
 0xb3d   :  { %v1323_v51 = vmul.f32 %v5720_v34, %v1321_v42 }
 0xb3f   :  { %1325 = vrot.lane.b32.xlu0 %v1323_v51, %s4852_s5 }
 0xb45   :  { %v1266_v57 = vpop.permute.xlu1 %1265 }
 0xb46   :  { %v1268_v22 = vmul.f32 %v4654_v2, %v1266_v57  ;;  %v1333_v57 = vmul.f32 %v5720_v34, %v1331_v47 }
 0xb48   :  { %1270 = vrot.lane.b32.xlu1 %v1268_v22, %s4851_s28 }
 0xb49   :  { %v1336_v48 = vpop.permute.xlu1 %1335 }
 0xb4a   :  { %v1338_v31 = vmul.f32 %v4658_v41, %v1336_v48 }
 0xb4c   :  { %1340 = vrot.lane.b32.xlu1 %v1338_v31, %s4851_s28 }
 0xb50   :  { %1288 = vrot.lane.b32.xlu1 %v1287_v12, %s4853_s4 }
 0xbad   :  { %v1256_v56 = vpop.permute.xlu0 %1255 }
 0xbae   :  { %v1258_v1 = vadd.f32 %v1256_v56, %v5402_v30 }
 0xbb0   :  { %4659 = vtanh.f32 %v1258_v1 }
 0xbb1   :  { %v1326_v6 = vpop.permute.xlu0 %1325 }
 0xbb2   :  { %v1328_v51 = vadd.f32 %v1326_v6, %v5414_v29  ;;  %v4199_v29 = vmul.f32 -1.442695, %v5706_v21 }
 0xbba   :  { %v4660_v25 = vpop.eup %4659  ;;  %v1271_v28 = vpop.permute.xlu1 %1270 }
 0xbbb   :  { %v5731_v42 = vadd.f32 %v1271_v28, %v1263_v50  ;;  %1282 = vrot.lane.b32.xlu0 %v4660_v25, %s4853_s4 }
 0xbbd   :  { %4661 = vtanh.f32 %v5731_v42 }
 0xbbe   :  { %v1341_v22 = vpop.permute.xlu1 %1340  ;;  %4663 = vtanh.f32 %v1328_v51 }
 0xbbf   :  { %v5737_v41 = vadd.f32 %v1341_v22, %v1333_v57 }
 0xbc1   :  { %4665 = vtanh.f32 %v5737_v41 }
 0xbc2   :  { %4667 = vpow2.f32 %v4199_v29  ;;  %v1289_v1 = vpop.permute.xlu1 %1288 }
 0xbc7   :  { %v4662_v35 = vpop.eup %4661 }
 0xbc8   :  { %1276 = vrot.lane.b32.xlu0 %v4662_v35, %s4851_s28  ;;  %v4664_v20 = vpop.eup %4663  ;;  %v1350_v35 = vsub.f32 1.0, %v5720_v34 }
 0xbcb   :  { %v4666_v48 = vpop.eup %4665 }
 0xbcc   :  { %1346 = vrot.lane.b32.xlu1 %v4666_v48, %s4851_s28  ;;  %1352 = vrot.lane.b32.xlu0 %v4664_v20, %s4853_s4  ;;  %v4668_v31 = vpop.eup %4667  ;;  %v1356_v20 = vrot.slane %v5665_v23, 4 }
 0xbcd   :  { %v1244_v12 = vadd.f32 1.0, %v4668_v31 }
 0xbce   :  { %v1358_v29 = vmul.f32 %v5720_v34, %v1356_v20 }
 0xbcf   :  { %4669 = vrcp.f32 %v1244_v12 }
 0xbd9   :  { %v4670_v56 = vpop.eup %4669 }
 0xbda   :  { %v1280_v5 = vsub.f32 1.0, %v4670_v56  ;;  %v1291_v50 = vmul.f32 %v4670_v56, %v1289_v1 }
 0xc2d   :  { %v1283_v6 = vpop.permute.xlu0 %1282 }
 0xc2e   :  { %v1285_v25 = vmul.f32 %v1283_v6, %v1280_v5 }
 0xc30   :  { %v1292_v28 = vadd.f32 %v1291_v50, %v1285_v25 }
 0xc32   :  { %1374 = vrot.lane.b32.xlu0 %v1292_v28, %s4853_s4  ;;  %1299 = vst.msk [vmem:[#allocation3 - $0x3] sm:$0x40] %vm1297_vm0, %v1292_v28 }
 0xc33   :  { %1302 = vst.msk [vmem:[#allocation3 + $0x4] sm:$0x80] %vm6914_vm1, %v1292_v28 }
 0xc3a   :  { %v1277_v21 = vpop.permute.xlu0 %1276 }
 0xc3b   :  { %v1279_v47 = vmul.f32 %v4654_v2, %v1277_v21 }
 0xc3d   :  { %1294 = vrot.lane.b32.xlu1 %v1279_v47, %s4853_s4 }
 0xc3e   :  { %v1347_v51 = vpop.permute.xlu1 %1346  ;;  %v1353_v22 = vpop.permute.xlu0 %1352 }
 0xc3f   :  { %v1349_v57 = vmul.f32 %v5720_v34, %v1347_v51  ;;  %v1355_v48 = vmul.f32 %v1353_v22, %v1350_v35 }
 0xc41   :  { %1361 = vst.msk [vmem:[#allocation2 + $0x4] sm:$0x1] %vm1360_vm15, %v1349_v57  ;;  %v5754_v2 = vadd.f32 %v1358_v29, %v1355_v48  ;;  %v1371_v31 = vrot.slane %v1349_v57, 2 }
 0xc42   :  { %1368 = vst.msk [vmem:[#allocation2 + $0xb] sm:$0x2] %vm1367_vm3, %v1349_v57 }
 0xc43   :  { %v1377_v56 = vrot.slane %v5754_v2, 2 }
 0xca4   :  { %v1375_v1 = vpop.permute.xlu0 %1374 }
 0xcaf   :  { %v1295_v12 = vpop.permute.xlu1 %1294 }
 0xcb0   :  { %1298 = vst.msk [vmem:[#allocation2 - $0x3] sm:$0x40] %vm1297_vm0, %v1295_v12  ;;  %v1379_v5 = vsel %vm223_vm4, %v1295_v12, %v1371_v31 }
 0xcb1   :  { %1301 = vst.msk [vmem:[#allocation2 + $0x4] sm:$0x80] %vm6914_vm1, %v1295_v12  ;;  %v1380_v6 = vsel %vm652_vm9, %v1379_v5, %v1375_v1  ;;  %vm6939_vm1 = vcmask 259077  }
 0xcb2   :  { %v5762_v23 = vsel %vm654_vm10, %v1380_v6, %v1377_v56 }
 0xcb3   :  { %v1382_v34 = vpack.c.bf16 %v5762_v23, %v5762_v23 }
 0xcb5   :  { %v1384_v50 = vrot.slane %v1382_v34, 3  ;;  %v6934_v34 = vld [vmem:[#allocation10_spill] sm:$0xff] }
 0xcb7   :  { %1419 = vmatmul.mubr.bf16.vlgmr.msra.gmra.mrb[16].mxu0 %v1384_v50  ;;  %1460 = vmatmul.mubr.bf16.vlgmr.msra.gmra.mrb[28].mxu1 %v1384_v50 }
 0xcb8   :  { %1619 = vmatpush1.bf16.msra.mxu0 %v5041_v40  ;;  %1660 = vmatpush1.bf16.msra.mxu1 %v5230_v44 }
 0xcb9   :  { %1620 = vmatprep.subr.bf16.mxu0 %v5051_v43  ;;  %1661 = vmatprep.subr.bf16.mxu1 %v5233_v45 }
 0xcba   :  { %1650 = vmatprep.mubr.bf16.mxu0 %v6932_v39  ;;  %1691 = vmatprep.mubr.bf16.mxu1 %v6932_v39 }
 0xcbc   :  { %1621 = vmatpush1.bf16.msra.mxu0 %v5059_v46  ;;  %1662 = vmatpush1.bf16.msra.mxu1 %v5249_v53 }
 0xcbd   :  { %1622 = vmatprep.subr.bf16.mxu0 %v5069_v49  ;;  %1663 = vmatprep.subr.bf16.mxu1 %v5253_v54 }
 0xcc0   :  { %1623 = vmatpush1.bf16.msra.mxu0 %v5077_v52  ;;  %1664 = vmatpush1.bf16.msra.mxu1 %v5268_v62 }
 0xcc1   :  { %1624 = vmatprep.subr.bf16.mxu0 %v5087_v55  ;;  %1665 = vmatprep.subr.bf16.mxu1 %v5271_v63 }
 0xcc4   :  { %1625 = vmatpush1.bf16.msra.mxu0 %v5095_v58  ;;  %1666 = vmatpush1.bf16.msra.mxu1 %v5286_v8 }
 0xcc5   :  { %1626 = vmatprep.subr.bf16.mxu0 %v5105_v61  ;;  %1667 = vmatprep.subr.bf16.mxu1 %v5289_v9 }
 0xcc8   :  { %1627 = vmatpush1.bf16.msra.mxu0 %v5113_v0  ;;  %1668 = vmatpush1.bf16.msra.mxu1 %v5304_v17 }
 0xcc9   :  { %1628 = vmatprep.subr.bf16.mxu0 %v5123_v4  ;;  %1669 = vmatprep.subr.bf16.mxu1 %v5307_v18 }
 0xccc   :  { %1629 = vmatpush1.bf16.msra.mxu0 %v5131_v7  ;;  %1670 = vmatpush1.bf16.msra.mxu1 %v5322_v26 }
 0xccd   :  { %1630 = vmatprep.subr.bf16.mxu0 %v5141_v10  ;;  %1671 = vmatprep.subr.bf16.mxu1 %v5325_v27 }
 0xcd0   :  { %1631 = vmatpush1.bf16.msra.mxu0 %v5149_v13  ;;  %1672 = vmatpush1.bf16.msra.mxu1 %v5340_v32 }
 0xcd1   :  { %1632 = vmatprep.subr.bf16.mxu0 %v5159_v16  ;;  %1673 = vmatprep.subr.bf16.mxu1 %v5343_v33 }
 0xcd4   :  { %1633 = vmatpush1.bf16.msra.mxu0 %v5167_v19  ;;  %1674 = vmatpush1.bf16.msra.mxu1 %v5352_v38 }
 0xcd5   :  { %1860 = vmatprep.subr.bf16.mxu0 %v5033_v37  ;;  %1901 = vmatprep.subr.bf16.mxu1 %v5215_v36 }
 0xd8a   :  { %v1420_v25 = vpop.f32.mrb[16].mxu0  ;;  %v1461_v28 = vpop.f32.mrb[28].mxu1 }
 0xd8b   :  { %v1422_v21 = vpop.f32.mrb[17].mxu0  ;;  %v1463_v47 = vpop.f32.mrb[29].mxu1  ;;  %v1421_v5 = vadd.f32 %v1420_v25, %v5420_v60  ;;  %v1462_v6 = vadd.f32 %v1461_v28, %v5427_v11 }
 0xd8c   :  { %v1423_v51 = vadd.f32 %v1422_v21, %v5400_v24  ;;  %v1464_v57 = vadd.f32 %v1463_v47, %v5411_v59  ;;  %v1424_v22 = vpop.f32.mrb[18].mxu0  ;;  %v1465_v35 = vpop.f32.mrb[30].mxu1 }
 0xd8d   :  { %v1425_v20 = vpop.f32.mrb[19].mxu0  ;;  %v1466_v48 = vpop.f32.mrb[31].mxu1  ;;  %v1468_v50 = vadd.f32 %v1421_v5, %v6934_v34  ;;  %v1538_v21 = vrot.slane %v1462_v6, 2 }
 0xd8e   :  { %v5803_v29 = vadd.f32 %v1423_v51, %v5389_v3  ;;  %v1539_v31 = vrot.slane %v1464_v57, 2  ;;  %1484 = vrot.lane.b32.xlu1 %v1423_v51, %s4851_s28  ;;  %v6935_v57 = vld [vmem:[#allocation11_spill] sm:$0xff]  ;;  %v1537_v20 = vrot.slane %v1423_v51, 2 }
 0xd8f   :  { %v4202_v47 = vmul.f32 -1.442695, %v1468_v50  ;;  %v1544_v22 = vadd.f32 %v1538_v21, %v6935_v57 }
 0xd90   :  { %4671 = vtanh.f32 %v5803_v29  ;;  %v1545_v12 = vadd.f32 %v1539_v31, %v5394_v15 }
 0xd91   :  { %v4205_v35 = vmul.f32 -1.442695, %v1544_v22 }
 0xd92   :  { %1559 = vrot.lane.b32.xlu1 %v1539_v31, %s4851_s28  ;;  %4673 = vtanh.f32 %v1545_v12  ;;  %v1543_v31 = vadd.f32 %v1537_v20, %v5402_v30 }
 0xd93   :  { %4675 = vpow2.f32 %v4202_v47 }
 0xd94   :  { %4677 = vpow2.f32 %v4205_v35 }
 0xd9a   :  { %v4672_v56 = vpop.eup %4671 }
 0xd9b   :  { %1499 = vrot.lane.b32.xlu0 %v4672_v56, %s4852_s5 }
 0xd9c   :  { %v4674_v1 = vpop.eup %4673 }
 0xd9d   :  { %v4676_v48 = vpop.eup %4675 }
 0xd9e   :  { %v1476_v12 = vadd.f32 1.0, %v4676_v48  ;;  %v4678_v56 = vpop.eup %4677 }
 0xd9f   :  { %1574 = vrot.lane.b32.xlu0 %v4674_v1, %s4852_s5  ;;  %v4204_v1 = vmul.f32 -1.442695, %v1543_v31  ;;  %v1553_v25 = vadd.f32 1.0, %v4678_v56  ;;  %v1521_v56 = vrot.slane %v5762_v23, 6 }
 0xda0   :  { %4679 = vrcp.f32 %v1476_v12 }
 0xda1   :  { %4681 = vpow2.f32 %v4204_v1 }
 0xda2   :  { %4683 = vrcp.f32 %v1553_v25 }
 0xdaa   :  { %v4680_v28 = vpop.eup %4679 }
 0xdab   :  { %v4682_v6 = vpop.eup %4681 }
 0xdac   :  { %v4684_v21 = vpop.eup %4683  ;;  %v1552_v47 = vadd.f32 1.0, %v4682_v6 }
 0xdae   :  { %4685 = vrcp.f32 %v1552_v47 }
 0xdb8   :  { %v4686_v48 = vpop.eup %4685 }
 0xe00   :  { %v1485_v5 = vpop.permute.xlu1 %1484 }
 0xe01   :  { %v1487_v50 = vmul.f32 %v4680_v28, %v1485_v5  ;;  %v1495_v5 = vrot.slane %v5731_v42, 6 }
 0xe03   :  { %1489 = vrot.lane.b32.xlu1 %v1487_v50, %s4852_s5  ;;  %v1497_v6 = vmul.f32 %v4680_v28, %v1495_v5 }
 0xe04   :  { %v1560_v22 = vpop.permute.xlu1 %1559 }
 0xe05   :  { %v1562_v51 = vmul.f32 %v4684_v21, %v1560_v22 }
 0xe07   :  { %1564 = vrot.lane.b32.xlu1 %v1562_v51, %s4852_s5 }
 0xe0d   :  { %v1500_v35 = vpop.permute.xlu0 %1499 }
 0xe0e   :  { %v1502_v20 = vmul.f32 %v4680_v28, %v1500_v35  ;;  %v1570_v35 = vrot.slane %v5737_v41, 2  ;;  %v4203_v41 = vmul.f32 -1.442695, %v5803_v29 }
 0xe10   :  { %1504 = vrot.lane.b32.xlu0 %v1502_v20, %s4851_s28 }
 0xe11   :  { %v1575_v31 = vpop.permute.xlu0 %1574 }
 0xe12   :  { %v1577_v12 = vmul.f32 %v4686_v48, %v1575_v31  ;;  %v1572_v48 = vmul.f32 %v4684_v21, %v1570_v35 }
 0xe14   :  { %1579 = vrot.lane.b32.xlu0 %v1577_v12, %s4851_s28 }
 0xe18   :  { %1522 = vrot.lane.b32.xlu0 %v1521_v56, %s4853_s4 }
 0xe75   :  { %v1490_v1 = vpop.permute.xlu1 %1489 }
 0xe76   :  { %v1492_v25 = vadd.f32 %v1490_v1, %v5389_v3 }
 0xe78   :  { %4687 = vtanh.f32 %v1492_v25 }
 0xe79   :  { %v1565_v47 = vpop.permute.xlu1 %1564 }
 0xe7a   :  { %v1567_v20 = vadd.f32 %v1565_v47, %v5394_v15 }
 0xe82   :  { %v4688_v50 = vpop.eup %4687  ;;  %v1505_v22 = vpop.permute.xlu0 %1504 }
 0xe83   :  { %v5824_v51 = vadd.f32 %v1505_v22, %v1497_v6  ;;  %1516 = vrot.lane.b32.xlu1 %v4688_v50, %s4853_s4 }
 0xe85   :  { %4689 = vtanh.f32 %v5824_v51 }
 0xe86   :  { %v1580_v31 = vpop.permute.xlu0 %1579  ;;  %4691 = vtanh.f32 %v1567_v20 }
 0xe87   :  { %v5830_v12 = vadd.f32 %v1580_v31, %v1572_v48 }
 0xe89   :  { %4693 = vtanh.f32 %v5830_v12 }
 0xe8a   :  { %4695 = vpow2.f32 %v4203_v41  ;;  %v1523_v50 = vpop.permute.xlu0 %1522  ;;  %v1589_v41 = vsub.f32 1.0, %v4684_v21 }
 0xe8f   :  { %v4690_v42 = vpop.eup %4689 }
 0xe90   :  { %1510 = vrot.lane.b32.xlu1 %v4690_v42, %s4851_s28  ;;  %v4692_v56 = vpop.eup %4691 }
 0xe93   :  { %v4694_v1 = vpop.eup %4693 }
 0xe94   :  { %1591 = vrot.lane.b32.xlu1 %v4692_v56, %s4853_s4  ;;  %1585 = vrot.lane.b32.xlu0 %v4694_v1, %s4851_s28  ;;  %v4696_v25 = vpop.eup %4695 }
 0xe95   :  { %v1477_v5 = vadd.f32 1.0, %v4696_v25 }
 0xe97   :  { %4697 = vrcp.f32 %v1477_v5  ;;  %v1595_v5 = vmul.f32 %v4684_v21, %v5762_v23 }
 0xea1   :  { %v4698_v6 = vpop.eup %4697 }
 0xea2   :  { %v1514_v47 = vsub.f32 1.0, %v4698_v6  ;;  %v1525_v35 = vmul.f32 %v4698_v6, %v1523_v50 }
 0xef5   :  { %v1517_v22 = vpop.permute.xlu1 %1516 }
 0xef6   :  { %v1519_v20 = vmul.f32 %v1517_v22, %v1514_v47 }
 0xef8   :  { %v5837_v48 = vadd.f32 %v1525_v35, %v1519_v20 }
 0xefa   :  { %6936 = vst [vmem:[#allocation10_spill] sm:$0xff] %v5837_v48  ;;  %1609 = vrot.lane.b32.xlu1 %v5837_v48, %s4853_s4 }
 0xf02   :  { %v1511_v31 = vpop.permute.xlu1 %1510 }
 0xf03   :  { %v1513_v42 = vmul.f32 %v4680_v28, %v1511_v31 }
 0xf05   :  { %1528 = vrot.lane.b32.xlu0 %v1513_v42, %s4853_s4 }
 0xf06   :  { %v1586_v29 = vpop.permute.xlu0 %1585  ;;  %v1592_v1 = vpop.permute.xlu1 %1591 }
 0xf07   :  { %v1588_v56 = vmul.f32 %v4684_v21, %v1586_v29  ;;  %v1594_v25 = vmul.f32 %v1592_v1, %v1589_v41 }
 0xf09   :  { %1597 = vst.msk [vmem:[#allocation2 - $0x3] sm:$0x40] %vm632_vm7, %v1588_v56  ;;  %v5845_v6 = vadd.f32 %v1595_v5, %v1594_v25  ;;  %v1606_v50 = vrot.slane %v1588_v56, 6 }
 0xf0a   :  { %1603 = vst.msk [vmem:[#allocation2 + $0x4] sm:$0x80] %vm639_vm8, %v1588_v56 }
 0xf0b   :  { %v1612_v22 = vrot.slane %v5845_v6, 6 }
 0xf6c   :  { %v1610_v28 = vpop.permute.xlu1 %1609 }
 0xf77   :  { %v1529_v47 = vpop.permute.xlu0 %1528 }
 0xf78   :  { %1531 = vst.msk [vmem:[#allocation2 + $0x4] sm:$0x1] %vm568_vm5, %v1529_v47  ;;  %v1614_v35 = vsel %vm223_vm4, %v1529_v47, %v1606_v50 }
 0xf79   :  { %1533 = vst.msk [vmem:[#allocation2 + $0xb] sm:$0x2] %vm571_vm6, %v1529_v47  ;;  %v1615_v20 = vsel %vm652_vm9, %v1614_v35, %v1610_v28 }
 0xf7a   :  { %v5853_v31 = vsel %vm654_vm10, %v1615_v20, %v1612_v22 }
 0xf7b   :  { %v1617_v23 = vpack.c.bf16 %v5853_v31, %v5853_v31 }
 0xf7d   :  { %1651 = vmatmul.mubr.bf16.vlgmr.msra.gmra.mrb[20].mxu0 %v1617_v23  ;;  %1692 = vmatmul.mubr.bf16.vlgmr.msra.gmra.mrb[32].mxu1 %v1617_v23 }
 0xf7e   :  { %1861 = vmatpush1.bf16.msra.mxu0 %v5041_v40  ;;  %1902 = vmatpush1.bf16.msra.mxu1 %v5230_v44 }
 0xf7f   :  { %1862 = vmatprep.subr.bf16.mxu0 %v5051_v43  ;;  %1903 = vmatprep.subr.bf16.mxu1 %v5233_v45 }
 0xf80   :  { %1892 = vmatprep.mubr.bf16.mxu0 %v6932_v39  ;;  %1933 = vmatprep.mubr.bf16.mxu1 %v6932_v39 }
 0xf82   :  { %1863 = vmatpush1.bf16.msra.mxu0 %v5059_v46  ;;  %1904 = vmatpush1.bf16.msra.mxu1 %v5249_v53 }
 0xf83   :  { %1864 = vmatprep.subr.bf16.mxu0 %v5069_v49  ;;  %1905 = vmatprep.subr.bf16.mxu1 %v5253_v54 }
 0xf86   :  { %1865 = vmatpush1.bf16.msra.mxu0 %v5077_v52  ;;  %1906 = vmatpush1.bf16.msra.mxu1 %v5268_v62 }
 0xf87   :  { %1866 = vmatprep.subr.bf16.mxu0 %v5087_v55  ;;  %1907 = vmatprep.subr.bf16.mxu1 %v5271_v63 }
 0xf8a   :  { %1867 = vmatpush1.bf16.msra.mxu0 %v5095_v58  ;;  %1908 = vmatpush1.bf16.msra.mxu1 %v5286_v8 }
 0xf8b   :  { %1868 = vmatprep.subr.bf16.mxu0 %v5105_v61  ;;  %1909 = vmatprep.subr.bf16.mxu1 %v5289_v9 }
 0xf8e   :  { %1869 = vmatpush1.bf16.msra.mxu0 %v5113_v0  ;;  %1910 = vmatpush1.bf16.msra.mxu1 %v5304_v17 }
 0xf8f   :  { %1870 = vmatprep.subr.bf16.mxu0 %v5123_v4  ;;  %1911 = vmatprep.subr.bf16.mxu1 %v5307_v18 }
 0xf92   :  { %1871 = vmatpush1.bf16.msra.mxu0 %v5131_v7  ;;  %1912 = vmatpush1.bf16.msra.mxu1 %v5322_v26 }
 0xf93   :  { %1872 = vmatprep.subr.bf16.mxu0 %v5141_v10  ;;  %1913 = vmatprep.subr.bf16.mxu1 %v5325_v27 }
 0xf96   :  { %1873 = vmatpush1.bf16.msra.mxu0 %v5149_v13  ;;  %1914 = vmatpush1.bf16.msra.mxu1 %v5340_v32 }
 0xf97   :  { %1874 = vmatprep.subr.bf16.mxu0 %v5159_v16  ;;  %1915 = vmatprep.subr.bf16.mxu1 %v5343_v33 }
 0xf9a   :  { %1875 = vmatpush1.bf16.msra.mxu0 %v5167_v19  ;;  %1916 = vmatpush1.bf16.msra.mxu1 %v5352_v38 }
 0xf9b   :  { %2100 = vmatprep.subr.bf16.mxu0 %v5033_v37  ;;  %2141 = vmatprep.subr.bf16.mxu1 %v5215_v36 }
0x1050   :  { %v1652_v21 = vpop.f32.mrb[20].mxu0  ;;  %v1693_v42 = vpop.f32.mrb[32].mxu1 }
0x1051   :  { %v1654_v29 = vpop.f32.mrb[21].mxu0  ;;  %v1695_v56 = vpop.f32.mrb[33].mxu1  ;;  %v1653_v23 = vadd.f32 %v1652_v21, %v5420_v60 }
0x1052   :  { %v1655_v1 = vadd.f32 %v1654_v29, %v5400_v24  ;;  %v1696_v41 = vadd.f32 %v1695_v56, %v5411_v59  ;;  %v1656_v25 = vpop.f32.mrb[22].mxu0  ;;  %v1697_v5 = vpop.f32.mrb[34].mxu1  ;;  %v1694_v56 = vadd.f32 %v1693_v42, %v5427_v11 }
0x1053   :  { %v1657_v50 = vpop.f32.mrb[23].mxu0  ;;  %v1698_v47 = vpop.f32.mrb[35].mxu1  ;;  %v1702_v29 = vrot.slane %v1653_v23, 6 }
0x1054   :  { %v1703_v22 = vrot.slane %v1655_v1, 6  ;;  %v1776_v28 = vrot.slane %v1696_v41, 4  ;;  %v1775_v25 = vrot.slane %v1694_v56, 4 }
0x1055   :  { %v1706_v41 = vadd.f32 %v1702_v29, %v6934_v34 }
0x1056   :  { %v5894_v35 = vadd.f32 %v1703_v22, %v5389_v3  ;;  %1721 = vrot.lane.b32.xlu0 %v1703_v22, %s4851_s28  ;;  %v1782_v37 = vadd.f32 %v1776_v28, %v5394_v15  ;;  %v1781_v50 = vadd.f32 %v1775_v25, %v6935_v57  ;;  %v1774_v22 = vrot.slane %v1655_v1, 4 }
0x1057   :  { %v4206_v5 = vmul.f32 -1.442695, %v1706_v41 }
0x1058   :  { %4699 = vtanh.f32 %v5894_v35  ;;  %v4209_v47 = vmul.f32 -1.442695, %v1781_v50 }
0x1059   :  { %4701 = vtanh.f32 %v1782_v37  ;;  %v1780_v37 = vadd.f32 %v1774_v22, %v5402_v30 }
0x105a   :  { %1796 = vrot.lane.b32.xlu0 %v1776_v28, %s4851_s28  ;;  %4703 = vpow2.f32 %v4206_v5 }
0x105b   :  { %4705 = vpow2.f32 %v4209_v47  ;;  %v4208_v48 = vmul.f32 -1.442695, %v1780_v37  ;;  %v1758_v37 = vrot.slane %v5853_v31, 6 }
0x1062   :  { %v4700_v36 = vpop.eup %4699 }
0x1063   :  { %1736 = vrot.lane.b32.xlu1 %v4700_v36, %s4852_s5  ;;  %v4702_v20 = vpop.eup %4701 }
0x1064   :  { %v4704_v28 = vpop.eup %4703 }
0x1065   :  { %v1714_v36 = vadd.f32 1.0, %v4704_v28 }
0x1067   :  { %1811 = vrot.lane.b32.xlu1 %v4702_v20, %s4852_s5  ;;  %v4706_v20 = vpop.eup %4705  ;;  %4707 = vrcp.f32 %v1714_v36 }
0x1068   :  { %v1790_v21 = vadd.f32 1.0, %v4706_v20  ;;  %4709 = vpow2.f32 %v4208_v48 }
0x106a   :  { %4711 = vrcp.f32 %v1790_v21  ;;  %v1732_v21 = vrot.slane %v5824_v51, 6 }
0x1071   :  { %v4708_v42 = vpop.eup %4707 }
0x1072   :  { %v4710_v29 = vpop.eup %4709 }
0x1073   :  { %v1789_v25 = vadd.f32 1.0, %v4710_v29 }
0x1074   :  { %v5908_v41 = vpop.eup %4711 }
0x1075   :  { %4713 = vrcp.f32 %v1789_v25 }
0x107f   :  { %v4714_v48 = vpop.eup %4713 }
0x10c8   :  { %v1722_v23 = vpop.permute.xlu0 %1721 }
0x10c9   :  { %v1724_v56 = vmul.f32 %v4708_v42, %v1722_v23  ;;  %v1734_v23 = vmul.f32 %v4708_v42, %v1732_v21 }
0x10cb   :  { %1726 = vrot.lane.b32.xlu0 %v1724_v56, %s4852_s5 }
0x10cc   :  { %v1797_v1 = vpop.permute.xlu0 %1796 }
0x10cd   :  { %v1799_v5 = vmul.f32 %v5908_v41, %v1797_v1 }
0x10cf   :  { %1801 = vrot.lane.b32.xlu0 %v1799_v5, %s4852_s5  ;;  %v1807_v5 = vrot.slane %v5830_v12, 2  ;;  %v4207_v12 = vmul.f32 -1.442695, %v5894_v35 }
0x10d5   :  { %v1737_v50 = vpop.permute.xlu1 %1736 }
0x10d6   :  { %v1739_v47 = vmul.f32 %v4708_v42, %v1737_v50 }
0x10d8   :  { %1741 = vrot.lane.b32.xlu1 %v1739_v47, %s4851_s28  ;;  %v1809_v47 = vmul.f32 %v5908_v41, %v1807_v5 }
0x10d9   :  { %v1812_v22 = vpop.permute.xlu1 %1811 }
0x10da   :  { %v1814_v28 = vmul.f32 %v4714_v48, %v1812_v22 }
0x10dc   :  { %1816 = vrot.lane.b32.xlu1 %v1814_v28, %s4851_s28 }
0x10e0   :  { %1759 = vrot.lane.b32.xlu1 %v1758_v37, %s4853_s4 }
0x113d   :  { %v1727_v36 = vpop.permute.xlu0 %1726 }
0x113e   :  { %v1729_v20 = vadd.f32 %v1727_v36, %v5389_v3 }
0x1140   :  { %4715 = vtanh.f32 %v1729_v20 }
0x1141   :  { %v1802_v56 = vpop.permute.xlu0 %1801 }
0x1142   :  { %v1804_v50 = vadd.f32 %v1802_v56, %v5394_v15 }
0x114a   :  { %v4716_v29 = vpop.eup %4715  ;;  %v1742_v25 = vpop.permute.xlu1 %1741 }
0x114b   :  { %v5918_v1 = vadd.f32 %v1742_v25, %v1734_v23  ;;  %1753 = vrot.lane.b32.xlu0 %v4716_v29, %s4853_s4 }
0x114d   :  { %4717 = vtanh.f32 %v5918_v1 }
0x114e   :  { %v1817_v48 = vpop.permute.xlu1 %1816  ;;  %4719 = vtanh.f32 %v1804_v50 }
0x114f   :  { %v5925_v22 = vadd.f32 %v1817_v48, %v1809_v47 }
0x1151   :  { %4721 = vtanh.f32 %v5925_v22 }
0x1152   :  { %4723 = vpow2.f32 %v4207_v12  ;;  %v1760_v23 = vpop.permute.xlu1 %1759  ;;  %v1832_v12 = vrot.slane %v5853_v31, 4 }
0x1157   :  { %v4718_v51 = vpop.eup %4717 }
0x1158   :  { %1747 = vrot.lane.b32.xlu0 %v4718_v51, %s4851_s28  ;;  %v4720_v28 = vpop.eup %4719 }
0x115b   :  { %v4722_v37 = vpop.eup %4721 }
0x115c   :  { %1828 = vrot.lane.b32.xlu0 %v4720_v28, %s4853_s4  ;;  %1822 = vrot.lane.b32.xlu1 %v4722_v37, %s4851_s28  ;;  %v4724_v36 = vpop.eup %4723  ;;  %v1826_v37 = vsub.f32 1.0, %v5908_v41 }
0x115d   :  { %v1715_v20 = vadd.f32 1.0, %v4724_v36 }
0x115f   :  { %4725 = vrcp.f32 %v1715_v20  ;;  %v1834_v20 = vmul.f32 %v5908_v41, %v1832_v12 }
0x1169   :  { %v4726_v21 = vpop.eup %4725 }
0x116a   :  { %v1751_v29 = vsub.f32 1.0, %v4726_v21  ;;  %v1762_v25 = vmul.f32 %v4726_v21, %v1760_v23 }
0x11bd   :  { %v1754_v56 = vpop.permute.xlu0 %1753 }
0x11be   :  { %v1756_v5 = vmul.f32 %v1754_v56, %v1751_v29 }
0x11c0   :  { %v5932_v50 = vadd.f32 %v1762_v25, %v1756_v5 }
0x11c2   :  { %1848 = vrot.lane.b32.xlu0 %v5932_v50, %s4853_s4 }
0x11ca   :  { %v1748_v47 = vpop.permute.xlu0 %1747 }
0x11cb   :  { %v1750_v48 = vmul.f32 %v4708_v42, %v1748_v47 }
0x11cd   :  { %1765 = vrot.lane.b32.xlu1 %v1750_v48, %s4853_s4 }
0x11ce   :  { %v1823_v35 = vpop.permute.xlu1 %1822  ;;  %v1829_v28 = vpop.permute.xlu0 %1828 }
0x11cf   :  { %v1825_v51 = vmul.f32 %v5908_v41, %v1823_v35  ;;  %v1831_v36 = vmul.f32 %v1829_v28, %v1826_v37 }
0x11d1   :  { %1836 = vst.msk [vmem:[#allocation2 - $0x2] sm:$0x10] %vm877_vm13, %v1825_v51  ;;  %v5943_v21 = vadd.f32 %v1834_v20, %v1831_v36  ;;  %v1845_v42 = vrot.slane %v1825_v51, 2 }
0x11d2   :  { %1842 = vst.msk [vmem:[#allocation2 + $0x5] sm:$0x20] %vm884_vm14, %v1825_v51 }
0x11d3   :  { %v1851_v29 = vrot.slane %v5943_v21, 2 }
0x1234   :  { %v1849_v56 = vpop.permute.xlu0 %1848 }
0x123f   :  { %v1766_v23 = vpop.permute.xlu1 %1765 }
0x1240   :  { %1768 = vst.msk [vmem:[#allocation2 + $0x3] sm:$0x4] %vm6913_vm11, %v1766_v23  ;;  %v1853_v25 = vsel %vm223_vm4, %v1766_v23, %v1845_v42  ;;  %vm6938_vm11 = vcmask 258052  }
0x1241   :  { %1770 = vst.msk [vmem:[#allocation2 + $0xa] sm:$0x8] %vm6912_vm12, %v1766_v23  ;;  %v1854_v5 = vsel %vm652_vm9, %v1853_v25, %v1849_v56  ;;  %vm6937_vm12 = vcmask 519427  }
0x1242   :  { %v5951_v31 = vsel %vm654_vm10, %v1854_v5, %v1851_v29 }
0x1243   :  { %v1856_v41 = vpack.c.bf16 %v5951_v31, %v5951_v31 }
0x1245   :  { %v1858_v47 = vrot.slane %v1856_v41, 1  ;;  %v2000_v41 = vrot.slane %v5951_v31, 6 }
0x1247   :  { %1893 = vmatmul.mubr.bf16.vlgmr.msra.gmra.mrb[24].mxu0 %v1858_v47  ;;  %1934 = vmatmul.mubr.bf16.vlgmr.msra.gmra.mrb[36].mxu1 %v1858_v47 }
0x1248   :  { %2101 = vmatpush1.bf16.msra.mxu0 %v5041_v40  ;;  %2142 = vmatpush1.bf16.msra.mxu1 %v5230_v44 }
0x1249   :  { %2102 = vmatprep.subr.bf16.mxu0 %v5051_v43  ;;  %2143 = vmatprep.subr.bf16.mxu1 %v5233_v45 }
0x124a   :  { %2132 = vmatprep.mubr.bf16.mxu0 %v6932_v39  ;;  %2173 = vmatprep.mubr.bf16.mxu1 %v6932_v39 }
0x124c   :  { %2103 = vmatpush1.bf16.msra.mxu0 %v5059_v46  ;;  %2144 = vmatpush1.bf16.msra.mxu1 %v5249_v53 }
0x124d   :  { %2104 = vmatprep.subr.bf16.mxu0 %v5069_v49  ;;  %2145 = vmatprep.subr.bf16.mxu1 %v5253_v54 }
0x1250   :  { %2105 = vmatpush1.bf16.msra.mxu0 %v5077_v52  ;;  %2146 = vmatpush1.bf16.msra.mxu1 %v5268_v62 }
0x1251   :  { %2106 = vmatprep.subr.bf16.mxu0 %v5087_v55  ;;  %2147 = vmatprep.subr.bf16.mxu1 %v5271_v63 }
0x1254   :  { %2107 = vmatpush1.bf16.msra.mxu0 %v5095_v58  ;;  %2148 = vmatpush1.bf16.msra.mxu1 %v5286_v8 }
0x1255   :  { %2108 = vmatprep.subr.bf16.mxu0 %v5105_v61  ;;  %2149 = vmatprep.subr.bf16.mxu1 %v5289_v9 }
0x1258   :  { %2109 = vmatpush1.bf16.msra.mxu0 %v5113_v0  ;;  %2150 = vmatpush1.bf16.msra.mxu1 %v5304_v17 }
0x1259   :  { %2110 = vmatprep.subr.bf16.mxu0 %v5123_v4  ;;  %2151 = vmatprep.subr.bf16.mxu1 %v5307_v18 }
0x125c   :  { %2111 = vmatpush1.bf16.msra.mxu0 %v5131_v7  ;;  %2152 = vmatpush1.bf16.msra.mxu1 %v5322_v26 }
0x125d   :  { %2112 = vmatprep.subr.bf16.mxu0 %v5141_v10  ;;  %2153 = vmatprep.subr.bf16.mxu1 %v5325_v27 }
0x1260   :  { %2113 = vmatpush1.bf16.msra.mxu0 %v5149_v13  ;;  %2154 = vmatpush1.bf16.msra.mxu1 %v5340_v32 }
0x1261   :  { %2114 = vmatprep.subr.bf16.mxu0 %v5159_v16  ;;  %2155 = vmatprep.subr.bf16.mxu1 %v5343_v33 }
0x1264   :  { %2115 = vmatpush1.bf16.msra.mxu0 %v5167_v19  ;;  %2156 = vmatpush1.bf16.msra.mxu1 %v5352_v38 }
0x131a   :  { %v1894_v40 = vpop.f32.mrb[24].mxu0  ;;  %v1935_v43 = vpop.f32.mrb[36].mxu1 }
0x131b   :  { %v1896_v46 = vpop.f32.mrb[25].mxu0  ;;  %v1937_v49 = vpop.f32.mrb[37].mxu1  ;;  %v1895_v45 = vadd.f32 %v1894_v40, %v5420_v60  ;;  %v1936_v54 = vadd.f32 %v1935_v43, %v5427_v11  ;;  %v1974_v43 = vrot.slane %v5918_v1, 6 }
0x131c   :  { %v1897_v52 = vadd.f32 %v1896_v46, %v5400_v24  ;;  %v1938_v55 = vadd.f32 %v1937_v49, %v5411_v59  ;;  %v1898_v58 = vpop.f32.mrb[26].mxu0  ;;  %v1939_v61 = vpop.f32.mrb[38].mxu1 }
0x131d   :  { %v1899_v0 = vpop.f32.mrb[27].mxu0  ;;  %v1940_v4 = vpop.f32.mrb[39].mxu1  ;;  %v1944_v53 = vrot.slane %v1895_v45, 4  ;;  %v2017_v63 = vrot.slane %v1936_v54, 6  ;;  %v2049_v61 = vrot.slane %v5925_v22, 2 }
0x131e   :  { %v1945_v7 = vrot.slane %v1897_v52, 4  ;;  %v2018_v10 = vrot.slane %v1938_v55, 6  ;;  %v2016_v18 = vrot.slane %v1897_v52, 6 }
0x131f   :  { %v1948_v62 = vadd.f32 %v1944_v53, %v6934_v34  ;;  %v2023_v9 = vadd.f32 %v2017_v63, %v6935_v57 }
0x1320   :  { %v5990_v13 = vadd.f32 %v1945_v7, %v5389_v3  ;;  %1963 = vrot.lane.b32.xlu1 %v1945_v7, %s4851_s28  ;;  %v2024_v16 = vadd.f32 %v2018_v10, %v5394_v15  ;;  %v2022_v27 = vadd.f32 %v2016_v18, %v5402_v30 }
0x1321   :  { %v4210_v8 = vmul.f32 -1.442695, %v1948_v62  ;;  %v4213_v17 = vmul.f32 -1.442695, %v2023_v9 }
0x1322   :  { %4727 = vtanh.f32 %v5990_v13  ;;  %v4212_v38 = vmul.f32 -1.442695, %v2022_v27  ;;  %v4211_v22 = vmul.f32 -1.442695, %v5990_v13 }
0x1323   :  { %4729 = vtanh.f32 %v2024_v16 }
0x1324   :  { %2038 = vrot.lane.b32.xlu1 %v2018_v10, %s4851_s28  ;;  %4731 = vpow2.f32 %v4210_v8 }
0x1325   :  { %4733 = vpow2.f32 %v4213_v17 }
0x132c   :  { %v4728_v19 = vpop.eup %4727 }
0x132d   :  { %1978 = vrot.lane.b32.xlu0 %v4728_v19, %s4852_s5  ;;  %v4730_v44 = vpop.eup %4729 }
0x132e   :  { %v4732_v26 = vpop.eup %4731 }
0x132f   :  { %v1956_v32 = vadd.f32 1.0, %v4732_v26  ;;  %v4734_v33 = vpop.eup %4733 }
0x1330   :  { %v2032_v48 = vadd.f32 1.0, %v4734_v33 }
0x1331   :  { %2053 = vrot.lane.b32.xlu0 %v4730_v44, %s4852_s5  ;;  %4735 = vrcp.f32 %v1956_v32 }
0x1332   :  { %4737 = vpow2.f32 %v4212_v38 }
0x1333   :  { %4739 = vrcp.f32 %v2032_v48 }
0x133b   :  { %v4736_v35 = vpop.eup %4735 }
0x133c   :  { %v4738_v28 = vpop.eup %4737  ;;  %v1976_v46 = vmul.f32 %v4736_v35, %v1974_v43 }
0x133d   :  { %v4740_v12 = vpop.eup %4739  ;;  %v2031_v36 = vadd.f32 1.0, %v4738_v28 }
0x133e   :  { %v2051_v4 = vmul.f32 %v4740_v12, %v2049_v61  ;;  %v2068_v33 = vsub.f32 1.0, %v4740_v12  ;;  %v2074_v48 = vmul.f32 %v4740_v12, %v5951_v31 }
0x133f   :  { %4741 = vrcp.f32 %v2031_v36 }
0x1349   :  { %v4742_v56 = vpop.eup %4741 }
0x1392   :  { %v1964_v51 = vpop.permute.xlu1 %1963 }
0x1393   :  { %v1966_v37 = vmul.f32 %v4736_v35, %v1964_v51 }
0x1395   :  { %1968 = vrot.lane.b32.xlu1 %v1966_v37, %s4852_s5 }
0x1396   :  { %v2039_v20 = vpop.permute.xlu1 %2038 }
0x1397   :  { %v2041_v42 = vmul.f32 %v4740_v12, %v2039_v20 }
0x1399   :  { %2043 = vrot.lane.b32.xlu1 %v2041_v42, %s4852_s5 }
0x139f   :  { %v1979_v23 = vpop.permute.xlu0 %1978 }
0x13a0   :  { %v1981_v29 = vmul.f32 %v4736_v35, %v1979_v23 }
0x13a2   :  { %1983 = vrot.lane.b32.xlu0 %v1981_v29, %s4851_s28 }
0x13a3   :  { %v2054_v25 = vpop.permute.xlu0 %2053 }
0x13a4   :  { %v2056_v5 = vmul.f32 %v4742_v56, %v2054_v25 }
0x13a6   :  { %2058 = vrot.lane.b32.xlu0 %v2056_v5, %s4851_s28 }
0x13aa   :  { %2001 = vrot.lane.b32.xlu0 %v2000_v41, %s4853_s4 }
0x1407   :  { %v1969_v47 = vpop.permute.xlu1 %1968 }
0x1408   :  { %v1971_v40 = vadd.f32 %v1969_v47, %v5389_v3 }
0x140a   :  { %4743 = vtanh.f32 %v1971_v40 }
0x140b   :  { %v2044_v52 = vpop.permute.xlu1 %2043 }
0x140c   :  { %v2046_v0 = vadd.f32 %v2044_v52, %v5394_v15 }
0x1414   :  { %v4744_v49 = vpop.eup %4743  ;;  %v1984_v55 = vpop.permute.xlu0 %1983 }
0x1415   :  { %v6011_v58 = vadd.f32 %v1984_v55, %v1976_v46  ;;  %1995 = vrot.lane.b32.xlu1 %v4744_v49, %s4853_s4 }
0x1417   :  { %4745 = vtanh.f32 %v6011_v58 }
0x1418   :  { %v2059_v7 = vpop.permute.xlu0 %2058  ;;  %4747 = vtanh.f32 %v2046_v0 }
0x1419   :  { %v6017_v10 = vadd.f32 %v2059_v7, %v2051_v4 }
0x141b   :  { %4749 = vtanh.f32 %v6017_v10 }
0x141c   :  { %4751 = vpow2.f32 %v4211_v22  ;;  %v2002_v54 = vpop.permute.xlu0 %2001 }
0x1421   :  { %v4746_v1 = vpop.eup %4745 }
0x1422   :  { %1989 = vrot.lane.b32.xlu1 %v4746_v1, %s4851_s28  ;;  %v4748_v16 = vpop.eup %4747 }
0x1425   :  { %v4750_v19 = vpop.eup %4749 }
0x1426   :  { %2070 = vrot.lane.b32.xlu1 %v4748_v16, %s4853_s4  ;;  %2064 = vrot.lane.b32.xlu0 %v4750_v19, %s4851_s28  ;;  %v4752_v44 = vpop.eup %4751 }
0x1427   :  { %v1957_v45 = vadd.f32 1.0, %v4752_v44 }
0x1429   :  { %4753 = vrcp.f32 %v1957_v45 }
0x1433   :  { %v4754_v53 = vpop.eup %4753 }
0x1434   :  { %v1993_v62 = vsub.f32 1.0, %v4754_v53  ;;  %v2004_v8 = vmul.f32 %v4754_v53, %v2002_v54 }
0x1487   :  { %v1996_v63 = vpop.permute.xlu1 %1995 }
0x1488   :  { %v1998_v9 = vmul.f32 %v1996_v63, %v1993_v62 }
0x148a   :  { %v6024_v17 = vadd.f32 %v2004_v8, %v1998_v9 }
0x148c   :  { %2088 = vrot.lane.b32.xlu1 %v6024_v17, %s4853_s4 }
0x1494   :  { %v1990_v18 = vpop.permute.xlu1 %1989 }
0x1495   :  { %v1992_v26 = vmul.f32 %v4736_v35, %v1990_v18 }
0x1497   :  { %2007 = vrot.lane.b32.xlu0 %v1992_v26, %s4853_s4 }
0x1498   :  { %v2065_v13 = vpop.permute.xlu0 %2064  ;;  %v2071_v32 = vpop.permute.xlu1 %2070 }
0x1499   :  { %v2067_v27 = vmul.f32 %v4740_v12, %v2065_v13  ;;  %v2073_v38 = vmul.f32 %v2071_v32, %v2068_v33 }
0x149b   :  { %2076 = vst.msk [vmem:[#allocation2 - $0x1] sm:$0x4] %vm1121_vm2, %v2067_v27  ;;  %v6032_v51 = vadd.f32 %v2074_v48, %v2073_v38  ;;  %v2085_v28 = vrot.slane %v2067_v27, 6 }
0x149c   :  { %2082 = vst.msk [vmem:[#allocation2 + $0x6] sm:$0x8] %vm6937_vm12, %v2067_v27  ;;  %vm6942_vm12 = vmmov %vm6939_vm1 }
0x149d   :  { %v2091_v36 = vrot.slane %v6032_v51, 6 }
0x14fe   :  { %v2089_v35 = vpop.permute.xlu1 %2088 }
0x1509   :  { %v2008_v37 = vpop.permute.xlu0 %2007 }
0x150a   :  { %2010 = vst.msk [vmem:[#allocation2 + $0x2] sm:$0x10] %vm6938_vm11, %v2008_v37  ;;  %v2093_v20 = vsel %vm223_vm4, %v2008_v37, %v2085_v28 }
0x150b   :  { %2012 = vst.msk [vmem:[#allocation2 + $0x9] sm:$0x20] %vm6939_vm1, %v2008_v37  ;;  %v2094_v42 = vsel %vm652_vm9, %v2093_v20, %v2089_v35 }
0x150c   :  { %v6040_v23 = vsel %vm654_vm10, %v2094_v42, %v2091_v36  ;;  %v2214_v36 = vrot.slane %v6011_v58, 6  ;;  %v6940_v58 = vld [vmem:[#allocation13_spill] sm:$0xff] }
0x150d   :  { %v2096_v31 = vpack.c.bf16 %v6040_v23, %v6040_v23 }
0x150f   :  { %v2098_v12 = vrot.slane %v2096_v31, 2  ;;  %v2282_v31 = vrot.slane %v6017_v10, 2 }
0x1511   :  { %2133 = vmatmul.mubr.bf16.vlgmr.msra.gmra.mrb[28].mxu0 %v2098_v12  ;;  %2174 = vmatmul.mubr.bf16.vlgmr.msra.gmra.mrb[40].mxu1 %v2098_v12 }
0x1512   :  { %2416 = vmatprep.mubr.bf16.mxu0 %v6932_v39 }
0x15e4   :  { %v2134_v29 = vpop.f32.mrb[28].mxu0  ;;  %v2175_v56 = vpop.f32.mrb[40].mxu1 }
0x15e5   :  { %v2136_v25 = vpop.f32.mrb[29].mxu0  ;;  %v2177_v5 = vpop.f32.mrb[41].mxu1  ;;  %v2135_v0 = vadd.f32 %v2134_v29, %v5420_v60  ;;  %v2176_v4 = vadd.f32 %v2175_v56, %v5427_v11 }
0x15e6   :  { %v2137_v41 = vadd.f32 %v2136_v25, %v5400_v24  ;;  %v2178_v47 = vadd.f32 %v2177_v5, %v5411_v59  ;;  %v2138_v40 = vpop.f32.mrb[30].mxu0  ;;  %v2179_v43 = vpop.f32.mrb[42].mxu1  ;;  %v2240_v5 = vrot.slane %v6040_v23, 6 }
0x15e7   :  { %v2139_v46 = vpop.f32.mrb[31].mxu0  ;;  %v2180_v49 = vpop.f32.mrb[43].mxu1  ;;  %v2184_v7 = vrot.slane %v2135_v0, 2  ;;  %v2255_v1 = vadd.f32 %v2176_v4, %v6935_v57  ;;  %v2328_v43 = vld [vmem:[%s6875_s6 + $0x18] sm:$0xff]  ;;  %v2331_v0 = vld [vmem:[%s6875_s6 + $0x30] sm:$0xff] }
0x15e8   :  { %v2185_v52 = vrot.slane %v2137_v41, 2  ;;  %2271 = vrot.lane.b32.xlu1 %v2178_v47, %s4851_s28  ;;  %v2256_v61 = vadd.f32 %v2178_v47, %v5394_v15  ;;  %v2254_v45 = vadd.f32 %v2137_v41, %v5402_v30  ;;  %v2326_v41 = vld [vmem:[%s6875_s6 + $0x8] sm:$0xff]  ;;  %v2325_v47 = vld [vmem:[%s6875_s6] sm:$0xff]  ;;  %v2332_v46 = vld [vmem:[%s6875_s6 + $0x38] sm:$0xff] }
0x15e9   :  { %v2188_v16 = vadd.f32 %v2184_v7, %v6934_v34  ;;  %v4217_v19 = vmul.f32 -1.442695, %v2255_v1  ;;  %v2335_v49 = vld [vmem:[%s6875_s6 + $0x50] sm:$0xff]  ;;  %v2334_v7 = vld [vmem:[%s6875_s6 + $0x48] sm:$0xff] }
0x15ea   :  { %v6049_v55 = vadd.f32 %v2185_v52, %v5389_v3  ;;  %v4216_v62 = vmul.f32 -1.442695, %v2254_v45  ;;  %v2352_v1 = vpack.c.bf16 %v2334_v7, %v2331_v0  ;;  %v2522_v0 = vld [vmem:[%s6877_s8 + $0x90] sm:$0xff] }
0x15eb   :  { %v4214_v22 = vmul.f32 -1.442695, %v2188_v16 }
0x15ec   :  { %4755 = vtanh.f32 %v6049_v55  ;;  %2203 = vrot.lane.b32.xlu1 %v2185_v52, %s4851_s28  ;;  %v2349_v52 = vpack.c.bf16 %v2328_v43, %v2325_v47  ;;  %v4215_v16 = vmul.f32 -1.442695, %v6049_v55  ;;  %v2336_v55 = vld [vmem:[%s6875_s6 + $0x58] sm:$0xff] }
0x15ed   :  { %4757 = vtanh.f32 %v2256_v61  ;;  %v2353_v61 = vpack.c.bf16 %v2335_v49, %v2332_v46 }
0x15ee   :  { %4759 = vpow2.f32 %v4217_v19 }
0x15ef   :  { %4761 = vpow2.f32 %v4214_v22 }
0x15f6   :  { %v4756_v24 = vpop.eup %4755 }
0x15f7   :  { %2218 = vrot.lane.b32.xlu0 %v4756_v24, %s4852_s5  ;;  %v4758_v59 = vpop.eup %4757  ;;  %v2327_v24 = vld [vmem:[%s6875_s6 + $0x10] sm:$0xff] }
0x15f8   :  { %v4760_v44 = vpop.eup %4759 }
0x15f9   :  { %v2264_v53 = vadd.f32 1.0, %v4760_v44  ;;  %v4762_v54 = vpop.eup %4761 }
0x15fa   :  { %v2196_v63 = vadd.f32 1.0, %v4762_v54  ;;  %v2337_v54 = vld [vmem:[%s6875_s6 + $0x60] sm:$0xff] }
0x15fb   :  { %2286 = vrot.lane.b32.xlu0 %v4758_v59, %s4852_s5  ;;  %4763 = vrcp.f32 %v2264_v53  ;;  %v2330_v59 = vld [vmem:[%s6875_s6 + $0x28] sm:$0xff]  ;;  %v2341_v53 = vld [vmem:[%s6875_s6 + $0x80] sm:$0xff] }
0x15fc   :  { %4765 = vpow2.f32 %v4216_v62  ;;  %v2351_v4 = vpack.c.bf16 %v2330_v59, %v2327_v24  ;;  %v2340_v62 = vld [vmem:[%s6875_s6 + $0x78] sm:$0xff]  ;;  %v2505_v59 = vld [vmem:[%s6877_s8 + $0x8] sm:$0xff] }
0x15fd   :  { %4767 = vrcp.f32 %v2196_v63 }
0x15fe   :  { %4366 = vmatprep.subr.bf16.mxu1 %v2351_v4 }
0x15ff   :  { %4367 = vmatpush3.bf16.msra.mxu1 %v2351_v4  ;;  %v2523_v4 = vld [vmem:[%s6877_s8 + $0x98] sm:$0xff] }
0x1605   :  { %v6061_v60 = vpop.eup %4763 }
0x1606   :  { %v4766_v34 = vpop.eup %4765 }
0x1607   :  { %v6065_v8 = vpop.eup %4767  ;;  %v2263_v18 = vadd.f32 1.0, %v4766_v34  ;;  %v2344_v34 = vld [vmem:[%s6875_s6 + $0x98] sm:$0xff] }
0x1608   :  { %v2216_v20 = vmul.f32 %v6065_v8, %v2214_v36  ;;  %v2521_v36 = vld [vmem:[%s6877_s8 + $0x88] sm:$0xff] }
0x1609   :  { %4769 = vrcp.f32 %v2263_v18  ;;  %v2339_v18 = vld [vmem:[%s6875_s6 + $0x70] sm:$0xff] }
0x1613   :  { %v4770_v27 = vpop.eup %4769 }
0x165a   :  { %v2272_v11 = vpop.permute.xlu1 %2271 }
0x165b   :  { %v2274_v57 = vmul.f32 %v6061_v60, %v2272_v11  ;;  %v2355_v11 = vpack.c.bf16 %v2340_v62, %v2337_v54 }
0x165d   :  { %2276 = vrot.lane.b32.xlu1 %v2274_v57, %s4852_s5 }
0x165e   :  { %v2204_v9 = vpop.permute.xlu1 %2203 }
0x165f   :  { %v2206_v30 = vmul.f32 %v6065_v8, %v2204_v9  ;;  %v2347_v9 = vld [vmem:[%s6875_s6 + $0xb0] sm:$0xff] }
0x1661   :  { %2208 = vrot.lane.b32.xlu1 %v2206_v30, %s4852_s5  ;;  %v2359_v30 = vpack.c.bf16 %v2347_v9, %v2344_v34  ;;  %v2508_v34 = vld [vmem:[%s6877_s8 + $0x20] sm:$0xff]  ;;  %v2509_v9 = vld [vmem:[%s6877_s8 + $0x28] sm:$0xff] }
0x1669   :  { %v2219_v26 = vpop.permute.xlu0 %2218 }
0x166a   :  { %v2221_v13 = vmul.f32 %v6065_v8, %v2219_v26  ;;  %v2342_v26 = vld [vmem:[%s6875_s6 + $0x88] sm:$0xff] }
0x166c   :  { %2223 = vrot.lane.b32.xlu0 %v2221_v13, %s4851_s28  ;;  %v2343_v13 = vld [vmem:[%s6875_s6 + $0x90] sm:$0xff] }
0x166d   :  { %v2287_v32 = vpop.permute.xlu0 %2286 }
0x166e   :  { %v2289_v33 = vmul.f32 %v4770_v27, %v2287_v32  ;;  %v2346_v27 = vld [vmem:[%s6875_s6 + $0xa8] sm:$0xff]  ;;  %v2357_v32 = vpack.c.bf16 %v2342_v26, %v2339_v18  ;;  %v2526_v18 = vld [vmem:[%s6877_s8 + $0xb0] sm:$0xff]  ;;  %v2540_v26 = vld [vmem:[%s6877_s8 + $0x120] sm:$0xff] }
0x1670   :  { %2291 = vrot.lane.b32.xlu0 %v2289_v33, %s4851_s28  ;;  %v2358_v33 = vpack.c.bf16 %v2346_v27, %v2343_v13  ;;  %v2541_v13 = vld [vmem:[%s6877_s8 + $0x128] sm:$0xff]  ;;  %v2550_v27 = vpack.c.bf16 %v2509_v9, %v2508_v34 }
0x16cf   :  { %v2277_v38 = vpop.permute.xlu1 %2276 }
0x16d0   :  { %v2279_v48 = vadd.f32 %v2277_v38, %v5394_v15  ;;  %v2284_v15 = vmul.f32 %v6061_v60, %v2282_v31  ;;  %v2348_v38 = vld [vmem:[%s6875_s6 + $0xb8] sm:$0xff] }
0x16d2   :  { %4771 = vtanh.f32 %v2279_v48  ;;  %v2520_v48 = vld [vmem:[%s6877_s8 + $0x80] sm:$0xff] }
0x16d3   :  { %v2209_v28 = vpop.permute.xlu1 %2208 }
0x16d4   :  { %v2211_v37 = vadd.f32 %v2209_v28, %v5389_v3 }
0x16d6   :  { %4773 = vtanh.f32 %v2211_v37 }
0x16dc   :  { %v4772_v35 = vpop.eup %4771 }
0x16dd   :  { %2303 = vrot.lane.b32.xlu1 %v4772_v35, %s4853_s4  ;;  %v2556_v35 = vpack.c.bf16 %v2521_v36, %v2520_v48  ;;  %v2528_v48 = vld [vmem:[%s6877_s8 + $0xc0] sm:$0xff]  ;;  %v2543_v36 = vld [vmem:[%s6877_s8 + $0x138] sm:$0xff] }
0x16de   :  { %v2224_v42 = vpop.permute.xlu0 %2223 }
0x16df   :  { %v2226_v12 = vadd.f32 %v2224_v42, %v2216_v20  ;;  %v2301_v20 = vsub.f32 1.0, %v6061_v60  ;;  %v6943_v42 = vld [vmem:[#allocation10_spill] sm:$0xff] }
0x16e0   :  { %v4774_v29 = vpop.eup %4773 }
0x16e1   :  { %4775 = vtanh.f32 %v2226_v12  ;;  %2235 = vrot.lane.b32.xlu1 %v4774_v29, %s4853_s4  ;;  %v2307_v12 = vrot.slane %v6040_v23, 4 }
0x16e2   :  { %v2292_v56 = vpop.permute.xlu0 %2291 }
0x16e3   :  { %v2294_v3 = vadd.f32 %v2292_v56, %v2284_v15 }
0x16e5   :  { %4777 = vtanh.f32 %v2294_v3  ;;  %880 = vrot.lane.b32.xlu1 %v6940_v58, %s4853_s4  ;;  %v2536_v3 = vld [vmem:[%s6877_s8 + $0x100] sm:$0xff]  ;;  %v2537_v58 = vld [vmem:[%s6877_s8 + $0x108] sm:$0xff] }
0x16e6   :  { %4779 = vpow2.f32 %v4215_v16  ;;  %v6204_v23 = vpack.c.bf16 %v2537_v58, %v2536_v3  ;;  %v2545_v3 = vld [vmem:[%s6877_s8 + $0x148] sm:$0xff] }
0x16e9   :  { %1363 = vrot.lane.b32.xlu1 %v5754_v2, %s4853_s4  ;;  %v2329_v2 = vld [vmem:[%s6875_s6 + $0x20] sm:$0xff] }
0x16ea   :  { %v2350_v40 = vpack.c.bf16 %v2329_v2, %v2326_v41 }
0x16eb   :  { %v4776_v25 = vpop.eup %4775 }
0x16ec   :  { %2229 = vrot.lane.b32.xlu0 %v4776_v25, %s4851_s28  ;;  %2384 = vmatprep.subr.bf16.mxu0 %v2350_v40  ;;  %v2309_v25 = vmul.f32 %v6061_v60, %v2307_v12  ;;  %v2513_v12 = vld [vmem:[%s6877_s8 + $0x48] sm:$0xff] }
0x16ed   :  { %1838 = vrot.lane.b32.xlu1 %v5943_v21, %s4853_s4  ;;  %v6941_v21 = vld [vmem:[#allocation12_spill] sm:$0xff]  ;;  %2385 = vmatpush1.bf16.msra.mxu0 %v2349_v52 }
0x16ee   :  { %2386 = vmatprep.subr.bf16.mxu0 %v2353_v61 }
0x16ef   :  { %v4778_v10 = vpop.eup %4777 }
0x16f0   :  { %2297 = vrot.lane.b32.xlu0 %v4778_v10, %s4851_s28  ;;  %v4780_v22 = vpop.eup %4779 }
0x16f1   :  { %2387 = vmatpush1.bf16.msra.mxu0 %v2352_v1  ;;  %v2197_v45 = vadd.f32 1.0, %v4780_v22  ;;  %v2557_v22 = vpack.c.bf16 %v2523_v4, %v2522_v0  ;;  %v2519_v0 = vld [vmem:[%s6877_s8 + $0x78] sm:$0xff] }
0x16f3   :  { %4781 = vrcp.f32 %v2197_v45  ;;  %v2507_v45 = vld [vmem:[%s6877_s8 + $0x18] sm:$0xff] }
0x16f4   :  { %2241 = vrot.lane.b32.xlu0 %v2240_v5, %s4853_s4 }
0x16f8   :  { %635 = vrot.lane.b32.xlu0 %v6941_v21, %s4853_s4 }
0x16fc   :  { %1124 = vrot.lane.b32.xlu0 %v5657_v14, %s4853_s4  ;;  %v2338_v14 = vld [vmem:[%s6875_s6 + $0x68] sm:$0xff] }
0x1700   :  { %1599 = vrot.lane.b32.xlu0 %v5845_v6, %s4853_s4  ;;  %v2333_v6 = vld [vmem:[%s6875_s6 + $0x40] sm:$0xff] }
0x1701   :  { %v2354_v63 = vpack.c.bf16 %v2336_v55, %v2333_v6  ;;  %v2538_v6 = vld [vmem:[%s6877_s8 + $0x110] sm:$0xff] }
0x1703   :  { %4368 = vmatprep.subr.bf16.mxu1 %v2354_v63 }
0x1704   :  { %2078 = vrot.lane.b32.xlu0 %v6032_v51, %s4853_s4  ;;  %v2356_v51 = vpack.c.bf16 %v2341_v53, %v2338_v14  ;;  %4369 = vmatpush3.bf16.msra.mxu1 %v2354_v63  ;;  %v2524_v14 = vld [vmem:[%s6877_s8 + $0xa0] sm:$0xff]  ;;  %v2525_v53 = vld [vmem:[%s6877_s8 + $0xa8] sm:$0xff] }
0x1705   :  { %4370 = vmatprep.subr.bf16.mxu1 %v2357_v32 }
0x1706   :  { %2388 = vmatprep.subr.bf16.mxu0 %v2356_v51  ;;  %v2539_v51 = vld [vmem:[%s6877_s8 + $0x118] sm:$0xff] }
0x1707   :  { %2389 = vmatpush1.bf16.msra.mxu0 %v2355_v11  ;;  %v2558_v11 = vpack.c.bf16 %v2525_v53, %v2524_v14 }
0x1708   :  { %2390 = vmatprep.subr.bf16.mxu0 %v2359_v30  ;;  %4371 = vmatpush3.bf16.msra.mxu1 %v2357_v32  ;;  %v2527_v30 = vld [vmem:[%s6877_s8 + $0xb8] sm:$0xff] }
0x1709   :  { %v2559_v32 = vpack.c.bf16 %v2527_v30, %v2526_v18 }
0x170b   :  { %2391 = vmatpush1.bf16.msra.mxu0 %v2358_v33  ;;  %v2566_v33 = vpack.c.bf16 %v2541_v13, %v2540_v26 }
0x170c   :  { %4271 = vmatprep.subr.bf16.mxu0 %v2556_v35 }
0x174f   :  { %v2304_v19 = vpop.permute.xlu1 %2303 }
0x1750   :  { %v2306_v29 = vmul.f32 %v2304_v19, %v2301_v20 }
0x1752   :  { %v2310_v5 = vadd.f32 %v2309_v25, %v2306_v29  ;;  %v2530_v29 = vld [vmem:[%s6877_s8 + $0xd0] sm:$0xff] }
0x1753   :  { %v6129_v44 = vpop.permute.xlu1 %2235 }
0x1757   :  { %v881_v57 = vpop.permute.xlu1 %880 }
0x1758   :  { %883 = vst.msk [vmem:[#allocation3 + $0x2] sm:$0x10] %vm877_vm13, %v881_v57 }
0x1759   :  { %886 = vst.msk [vmem:[#allocation3 + $0x9] sm:$0x20] %vm884_vm14, %v881_v57  ;;  %v2565_v57 = vpack.c.bf16 %v2539_v51, %v2538_v6  ;;  %v6952_v51 = vld [vmem:[#allocation9_spill] sm:$0xff] }
0x175a   :  { %2011 = vst.msk [vmem:[#allocation3 + $0x2] sm:$0x10] %vm6938_vm11, %v6024_v17 }
0x175b   :  { %2013 = vst.msk [vmem:[#allocation3 + $0x9] sm:$0x20] %vm6942_vm12, %v6024_v17  ;;  %v2345_v17 = vld [vmem:[%s6875_s6 + $0xa0] sm:$0xff]  ;;  %v1364_v28 = vpop.permute.xlu1 %1363  ;;  %vm6953_vm12 = vcmask 1041408  }
0x175c   :  { %v2360_v37 = vpack.c.bf16 %v2348_v38, %v2345_v17  ;;  %1366 = vst.msk [vmem:[#allocation3 + $0x4] sm:$0x1] %vm1360_vm15, %v1364_v28  ;;  %v2510_v17 = vld [vmem:[%s6877_s8 + $0x30] sm:$0xff]  ;;  %v2511_v38 = vld [vmem:[%s6877_s8 + $0x38] sm:$0xff] }
0x175d   :  { %1369 = vst.msk [vmem:[#allocation3 + $0xb] sm:$0x2] %vm1367_vm3, %v1364_v28  ;;  %v2529_v28 = vld [vmem:[%s6877_s8 + $0xc8] sm:$0xff]  ;;  %v2551_v35 = vpack.c.bf16 %v2511_v38, %v2510_v17 }
0x175e   :  { %1532 = vst.msk [vmem:[#allocation3 + $0x4] sm:$0x1] %vm568_vm5, %v6943_v42  ;;  %v2230_v31 = vpop.permute.xlu0 %2229  ;;  %4372 = vmatprep.subr.bf16.mxu1 %v2360_v37  ;;  %vm6944_vm5 = vcmask 261127   ;;  %v2560_v20 = vpack.c.bf16 %v2529_v28, %v2528_v48 }
0x175f   :  { %1534 = vst.msk [vmem:[#allocation3 + $0xb] sm:$0x2] %vm571_vm6, %v6943_v42  ;;  %v2232_v15 = vmul.f32 %v6065_v8, %v2230_v31  ;;  %v1839_v56 = vpop.permute.xlu1 %1838  ;;  %4373 = vmatpush3.bf16.msra.mxu1 %v2360_v37  ;;  %v4782_v8 = vpop.eup %4781  ;;  %vm6945_vm6 = vcmask 519427   ;;  %vm6949_vm11 = vmmov %vm6944_vm5  ;;  %v2542_v37 = vld [vmem:[%s6877_s8 + $0x130] sm:$0xff]  ;;  %v2512_v31 = vld [vmem:[%s6877_s8 + $0x40] sm:$0xff] }
0x1760   :  { %1841 = vst.msk [vmem:[#allocation3 - $0x2] sm:$0x10] %vm877_vm13, %v1839_v56  ;;  %4378 = vmatprep.subr.bf16.mxu1 %v6204_v23  ;;  %v2233_v2 = vsub.f32 1.0, %v4782_v8  ;;  %vm6946_vm13 = vcmask 256002   ;;  %vm6948_vm1 = vmmov %vm6945_vm6  ;;  %v2567_v42 = vpack.c.bf16 %v2543_v36, %v2542_v37  ;;  %v2552_v58 = vpack.c.bf16 %v2513_v12, %v2512_v31 }
0x1761   :  { %1843 = vst.msk [vmem:[#allocation3 + $0x5] sm:$0x20] %vm884_vm14, %v1839_v56  ;;  %2247 = vrot.lane.b32.xlu1 %v2232_v15, %s4853_s4  ;;  %vm6947_vm14 = vcmask 257027   ;;  %v2531_v15 = vld [vmem:[%s6877_s8 + $0xd8] sm:$0xff]  ;;  %v2544_v56 = vld [vmem:[%s6877_s8 + $0x140] sm:$0xff] }
0x1762   :  { %v2298_v10 = vpop.permute.xlu0 %2297  ;;  %v2238_v21 = vmul.f32 %v6129_v44, %v2233_v2  ;;  %v2506_v44 = vld [vmem:[%s6877_s8 + $0x10] sm:$0xff]  ;;  %v2561_v25 = vpack.c.bf16 %v2531_v15, %v2530_v29 }
0x1763   :  { %v2300_v41 = vmul.f32 %v6061_v60, %v2298_v10  ;;  %v2549_v62 = vpack.c.bf16 %v2507_v45, %v2506_v44  ;;  %v2515_v10 = vld [vmem:[%s6877_s8 + $0x58] sm:$0xff]  ;;  %v2546_v2 = vld [vmem:[%s6877_s8 + $0x150] sm:$0xff] }
0x1764   :  { %v6951_v44 = vld [vmem:[#allocation8_spill] sm:$0xff] }
0x1765   :  { %2311 = vst.msk [vmem:[#allocation2] sm:$0x1] %vm1360_vm15, %v2300_v41  ;;  %2313 = vrot.lane.b32.xlu1 %v2310_v5, %s4853_s4  ;;  %v2532_v5 = vld [vmem:[%s6877_s8 + $0xe0] sm:$0xff] }
0x1766   :  { %2317 = vst.msk [vmem:[#allocation2 + $0x7] sm:$0x2] %vm1367_vm3, %v2300_v41  ;;  %v2242_v47 = vpop.permute.xlu0 %2241  ;;  %v2533_v41 = vld [vmem:[%s6877_s8 + $0xe8] sm:$0xff] }
0x1767   :  { %v2244_v40 = vmul.f32 %v4782_v8, %v2242_v47  ;;  %v2514_v8 = vld [vmem:[%s6877_s8 + $0x50] sm:$0xff]  ;;  %v2547_v47 = vld [vmem:[%s6877_s8 + $0x158] sm:$0x3f] }
0x1769   :  { %v2245_v43 = vadd.f32 %v2244_v40, %v2238_v21  ;;  %v2553_v21 = vpack.c.bf16 %v2515_v10, %v2514_v8  ;;  %v2562_v40 = vpack.c.bf16 %v2533_v41, %v2532_v5 }
0x176a   :  { %v636_v46 = vpop.permute.xlu0 %635 }
0x176b   :  { %638 = vst.msk [vmem:[#allocation3 + $0x1] sm:$0x40] %vm632_vm7, %v636_v46 }
0x176c   :  { %641 = vst.msk [vmem:[#allocation3 + $0x8] sm:$0x80] %vm639_vm8, %v636_v46  ;;  %v2516_v46 = vld [vmem:[%s6877_s8 + $0x60] sm:$0xff] }
0x176d   :  { %2251 = vst.msk [vmem:[#allocation3 + $0x1] sm:$0x40] %vm1297_vm0, %v2245_v43 }
0x176e   :  { %2253 = vst.msk [vmem:[#allocation3 + $0x8] sm:$0x80] %vm6944_vm5, %v2245_v43  ;;  %v1125_v60 = vpop.permute.xlu0 %1124  ;;  %v2569_v43 = vpack.c.bf16 %v2547_v47, %v2546_v2  ;;  %vm6954_vm5 = vmmov %vm6953_vm12 }
0x176f   :  { %1127 = vst.msk [vmem:[#allocation3 + $0x3] sm:$0x4] %vm1121_vm2, %v1125_v60 }
0x1770   :  { %1130 = vst.msk [vmem:[#allocation3 + $0xa] sm:$0x8] %vm6945_vm6, %v1125_v60  ;;  %v2517_v60 = vld [vmem:[%s6877_s8 + $0x68] sm:$0xff]  ;;  %vm6956_vm6 = vmmov %vm6954_vm5 }
0x1771   :  { %1769 = vst.msk [vmem:[#allocation3 + $0x3] sm:$0x4] %vm6946_vm13, %v5932_v50  ;;  %vm6957_vm13 = vmmov %vm6954_vm5 }
0x1772   :  { %1771 = vst.msk [vmem:[#allocation3 + $0xa] sm:$0x8] %vm6947_vm14, %v5932_v50  ;;  %v1600_v49 = vpop.permute.xlu0 %1599  ;;  %v2504_v50 = vld [vmem:[%s6877_s8] sm:$0xff]  ;;  %vm3831_vm14 = vcmask 519168  }
0x1773   :  { %1602 = vst.msk [vmem:[#allocation3 - $0x3] sm:$0x40] %vm632_vm7, %v1600_v49  ;;  %v2548_v16 = vpack.c.bf16 %v2505_v59, %v2504_v50  ;;  %v2518_v59 = vld [vmem:[%s6877_s8 + $0x70] sm:$0xff]  ;;  %vm2577_vm7 = vcmask 769024  }
0x1774   :  { %1604 = vst.msk [vmem:[#allocation3 + $0x4] sm:$0x80] %vm639_vm8, %v1600_v49  ;;  %v2534_v49 = vld [vmem:[%s6877_s8 + $0xf0] sm:$0xff]  ;;  %v2555_v4 = vpack.c.bf16 %v2519_v0, %v2518_v59  ;;  %vm2686_vm8 = vcmask 244736  }
0x1776   :  { %v2079_v52 = vpop.permute.xlu0 %2078 }
0x1777   :  { %2081 = vst.msk [vmem:[#allocation3 - $0x1] sm:$0x4] %vm1121_vm2, %v2079_v52  ;;  %vm3284_vm2 = vcmask 1045504  }
0x1778   :  { %2083 = vst.msk [vmem:[#allocation3 + $0x6] sm:$0x8] %vm6948_vm1, %v2079_v52  ;;  %v2535_v52 = vld [vmem:[%s6877_s8 + $0xf8] sm:$0xff]  ;;  %vm3658_vm1 = vcmask 520192   ;;  %s4856_s8 = smov [#allocation4]  }
0x1779   :  { %v2563_v50 = vpack.c.bf16 %v2535_v52, %v2534_v49 }
0x17d3   :  { %v2248_v61 = vpop.permute.xlu1 %2247 }
0x17d4   :  { %2250 = vst.msk [vmem:[#allocation2 + $0x1] sm:$0x40] %vm1297_vm0, %v2248_v61  ;;  %vm2584_vm0 = vcmask 1046528  }
0x17d5   :  { %2252 = vst.msk [vmem:[#allocation2 + $0x8] sm:$0x80] %vm6949_vm11, %v2248_v61  ;;  %v2554_v61 = vpack.c.bf16 %v2517_v60, %v2516_v46  ;;  %vm6958_vm11 = vmmov %vm6954_vm5 }
0x17d7   :  { %v2314_v24 = vpop.permute.xlu1 %2313 }
0x17d8   :  { %2316 = vst.msk [vmem:[#allocation3] sm:$0x1] %vm1360_vm15, %v2314_v24  ;;  %vm2738_vm15 = vcmask 64512  }
0x17d9   :  { %2318 = vst.msk [vmem:[#allocation3 + $0x7] sm:$0x2] %vm1367_vm3, %v2314_v24  ;;  %v2586_v24 = vsel %vm2584_vm0, %v2569_v43, 0  ;;  %vm3301_vm3 = vcmask 1043456  }
0x17db   :  { %v6242_v7 = vld [vmem:[#allocation2] sm:$0xff] }
0x17dc   :  { %v6244_v1 = vld [vmem:[#allocation2 + $0x8] sm:$0xff] }
0x17dd   :  { %v2323_v19 = vpack.c.bf16 %v6244_v1, %v6242_v7 }
0x17df   :  { %4218 = vmatmul.mubr.msk.bf16.vlgmr.msra.gmra.mrb[32].mxu0 %vm652_vm9, %v2323_v19  ;;  %4374 = vmatprep.mubr.msk.bf16.mxu1 %vm652_vm9, %v2323_v19  ;;  %v6268_v55 = vld [vmem:[#allocation3] sm:$0xff]  ;;  %v6950_v19 = vld [vmem:[#allocation7_spill] sm:$0xff] }
0x17e0   :  { %4272 = vmatpush3.bf16.msra.mxu0 %v2548_v16  ;;  %v6270_v54 = vld [vmem:[#allocation3 + $0x8] sm:$0xff]  ;;  %2426 = vmatprep.mubr.bf16.mxu0 %v6932_v39  ;;  %v2361_v16 = vld [vmem:[%s6876_s7] sm:$0x7] }
0x17e1   :  { %4273 = vmatprep.subr.bf16.mxu0 %v2557_v22  ;;  %v2324_v63 = vpack.c.bf16 %v6270_v54, %v6268_v55  ;;  %v2366_v22 = vrot.slane %v2361_v16, %v6950_v19  ;;  %v2370_v45 = vrot.slane %v2361_v16, %v6951_v44 }
0x17e3   :  { %4375 = vmatmul.mubr.msk.bf16.vlgmr.msra.gmra.mrb[44].mxu1 %vm652_vm9, %v2324_v63 }
0x17e4   :  { %4274 = vmatpush3.bf16.msra.mxu0 %v2549_v62  ;;  %4379 = vmatpush3.bf16.msra.mxu1 %v6204_v23  ;;  %v2568_v23 = vpack.c.bf16 %v2545_v3, %v2544_v56  ;;  %v2374_v62 = vrot.slane %v2361_v16, %v6952_v51 }
0x17e5   :  { %4275 = vmatprep.subr.bf16.mxu0 %v2558_v11  ;;  %4380 = vmatprep.subr.bf16.mxu1 %v2565_v57 }
0x17e7   :  { %4219 = vmatmul.mubr.msk.bf16.gmra.mrb[36].mxu0 %vm652_vm9, %v2324_v63 }
0x17e8   :  { %4276 = vmatpush3.bf16.msra.mxu0 %v2550_v27  ;;  %4381 = vmatpush3.bf16.msra.mxu1 %v2565_v57 }
0x17e9   :  { %4277 = vmatprep.subr.bf16.mxu0 %v2559_v32  ;;  %4382 = vmatprep.subr.bf16.mxu1 %v2566_v33 }
0x17ec   :  { %4278 = vmatpush3.bf16.msra.mxu0 %v2551_v35  ;;  %4383 = vmatpush3.bf16.msra.mxu1 %v2566_v33 }
0x17ed   :  { %4279 = vmatprep.subr.bf16.mxu0 %v2560_v20  ;;  %4384 = vmatprep.subr.bf16.mxu1 %v2567_v42 }
0x17f0   :  { %4280 = vmatpush3.bf16.msra.mxu0 %v2552_v58  ;;  %4385 = vmatpush3.bf16.msra.mxu1 %v2567_v42 }
0x17f1   :  { %4281 = vmatprep.subr.bf16.mxu0 %v2561_v25  ;;  %4386 = vmatprep.subr.bf16.mxu1 %v2568_v23 }
0x17f4   :  { %4282 = vmatpush3.bf16.msra.mxu0 %v2553_v21  ;;  %4387 = vmatpush3.bf16.msra.mxu1 %v2568_v23 }
0x17f5   :  { %4283 = vmatprep.subr.bf16.mxu0 %v2562_v40  ;;  %4514 = vmatprep.subr.msk.bf16.mxu1 %vm2584_vm0, %v2569_v43 }
0x17f8   :  { %4284 = vmatpush3.bf16.msra.mxu0 %v2554_v61  ;;  %4389 = vmatpush3.bf16.msra.mxu1 %v2586_v24 }
0x17f9   :  { %4394 = vmatprep.subr.mxu1 %v6242_v7  ;;  %4285 = vmatprep.subr.bf16.mxu0 %v2563_v50 }
0x17fc   :  { %4286 = vmatpush3.bf16.msra.mxu0 %v2555_v4 }
0x17fd   :  { %4410 = vmatprep.subr.mxu0 %v6268_v55 }
0x18b2   :  { %v2418_v14 = vpop.f32.mrb[32].mxu0 }
0x18b3   :  { %v2419_v53 = vadd.f32 %v2418_v14, %v2366_v22  ;;  %v2420_v6 = vpop.f32.mrb[33].mxu0 }
0x18b4   :  { %v2421_v63 = vadd.f32 %v2420_v6, %v2370_v45  ;;  %v2422_v11 = vpop.f32.mrb[34].mxu0 }
0x18b5   :  { %4783 = vtanh.f32 %v2419_v53  ;;  %v2423_v57 = vadd.f32 %v2422_v11, %v2366_v22  ;;  %v2424_v34 = vpop.f32.mrb[35].mxu0 }
0x18b6   :  { %4785 = vtanh.f32 %v2421_v63  ;;  %v2425_v9 = vadd.f32 %v2424_v34, %v2370_v45  ;;  %v4376_v18 = vpop.f32.mrb[44].mxu1 }
0x18b7   :  { %4787 = vtanh.f32 %v2423_v57  ;;  %v2480_v30 = vadd.f32 %v4376_v18, %v2374_v62  ;;  %v2471_v26 = vpop.f32.mrb[45].mxu1 }
0x18b8   :  { %4789 = vtanh.f32 %v2425_v9  ;;  %v2472_v13 = vadd.f32 %v2471_v26, %v2374_v62  ;;  %v4377_v27 = vpop.f32.mrb[46].mxu1 }
0x18b9   :  { %4791 = vtanh.f32 %v2480_v30  ;;  %v2483_v32 = vadd.f32 %v4377_v27, %v2374_v62  ;;  %v2474_v33 = vpop.f32.mrb[47].mxu1 }
0x18ba   :  { %4793 = vtanh.f32 %v2472_v13  ;;  %v2475_v17 = vadd.f32 %v2474_v33, %v2374_v62  ;;  %v2428_v38 = vpop.f32.mrb[36].mxu0 }
0x18bb   :  { %4795 = vtanh.f32 %v2483_v32  ;;  %v2429_v48 = vadd.f32 %v2428_v38, %v2366_v22  ;;  %v2430_v28 = vpop.f32.mrb[37].mxu0 }
0x18bc   :  { %4797 = vtanh.f32 %v2475_v17  ;;  %v2431_v37 = vadd.f32 %v2430_v28, %v2370_v45  ;;  %v2432_v36 = vpop.f32.mrb[38].mxu0 }
0x18bd   :  { %4799 = vtanh.f32 %v2429_v48  ;;  %v2433_v35 = vadd.f32 %v2432_v36, %v2366_v22  ;;  %v2434_v20 = vpop.f32.mrb[39].mxu0 }
0x18be   :  { %4801 = vtanh.f32 %v2431_v37  ;;  %v2435_v42 = vadd.f32 %v2434_v20, %v2370_v45 }
0x18bf   :  { %v4784_v31 = vpop.eup %4783  ;;  %4803 = vtanh.f32 %v2433_v35 }
0x18c0   :  { %v4786_v12 = vpop.eup %4785  ;;  %4805 = vtanh.f32 %v2435_v42 }
0x18c1   :  { %v4788_v29 = vpop.eup %4787 }
0x18c2   :  { %v4790_v15 = vpop.eup %4789  ;;  %v2498_v56 = vpack.c.bf16 %v4788_v29, %v4784_v31 }
0x18c3   :  { %v4792_v3 = vpop.eup %4791  ;;  %v2499_v58 = vpack.c.bf16 %v4790_v15, %v4786_v12 }
0x18c4   :  { %v4794_v25 = vpop.eup %4793 }
0x18c5   :  { %v4796_v23 = vpop.eup %4795  ;;  %2620 = vmatprep.mubr.bf16.mxu0 %v2499_v58 }
0x18c6   :  { %v4798_v8 = vpop.eup %4797  ;;  %2621 = vmatmul.mubr.bf16.vlgmr.msra.gmra.mrb[40].mxu0 %v2498_v56  ;;  %v2503_v10 = vpack.c.bf16 %v4796_v23, %v4792_v3 }
0x18c7   :  { %v4800_v5 = vpop.eup %4799  ;;  %4411 = vmatpush3.msra.mxu0 %v6268_v55  ;;  %v2500_v41 = vpack.c.bf16 %v4798_v8, %v4794_v25  ;;  %v4222_v55 = vld [vmem:[%s6878_s9] ss:$0 sm:$0xff]  ;;  %s4171_s9 = sshll.u32 %s4856_s8, 4  ;;  %s4172_s9 = int_to_ptr.vmem [resolvable:$true] %s4171_s9 }
0x18c8   :  { %v4802_v2 = vpop.eup %4801  ;;  %3559 = vmatprep.subr.bf16.mxu0 %v6932_v39  ;;  %p4830_p1 = scmp.lt.s32.totalorder %s4172_s9, %s4172_s9 }
0x18c9   :  { %v4804_v47 = vpop.eup %4803  ;;  %4390 = vmatprep.mubr.msk.bf16.mxu1 %vm2577_vm7, %v2500_v41 }
0x18ca   :  { %v4806_v21 = vpop.eup %4805  ;;  %4391 = vmatmul.mubr.msk.bf16.vlgmr.msra.gmra.mrb[48].mxu1 %vm2577_vm7, %v2503_v10  ;;  %v2501_v40 = vpack.c.bf16 %v4804_v47, %v4800_v5  ;;  %vm3683_vm7 = vcmask 523270  }
0x18cb   :  { %4395 = vmatpush3.msra.mxu1 %v6242_v7  ;;  %v2502_v43 = vpack.c.bf16 %v4806_v21, %v4802_v2 }
0x18cc   :  { %4402 = vmatprep.subr.mxu1 %v6244_v1 }
0x18cd   :  { %2628 = vmatprep.mubr.bf16.mxu0 %v2502_v43 }
0x18ce   :  { %2629 = vmatmul.mubr.bf16.gmra.mrb[44].mxu0 %v2501_v40 }
0x1999   :  { %v4287_v46 = vpop.f32.mrb[40].mxu0 }
0x199a   :  { %v4288_v60 = vpop.f32.mrb[41].mxu0 }
0x199b   :  { %v4289_v49 = vadd.f32 %v4288_v60, %v4287_v46  ;;  %v4290_v52 = vpop.f32.mrb[42].mxu0 }
0x199c   :  { %v4291_v61 = vpop.f32.mrb[43].mxu0 }
0x199d   :  { %v4292_v24 = vadd.f32 %v4291_v61, %v4290_v52  ;;  %v4392_v50 = vpop.f32.mrb[48].mxu1  ;;  %v2623_v59 = vadd.f32 %v4289_v49, %v4222_v55 }
0x199e   :  { %v2671_v0 = vpop.f32.mrb[49].mxu1 }
0x199f   :  { %v2672_v7 = vadd.f32 %v2671_v0, %v2623_v59  ;;  %v4393_v4 = vpop.f32.mrb[50].mxu1  ;;  %v2626_v16 = vadd.f32 %v4292_v24, %v4222_v55 }
0x19a0   :  { %v2674_v22 = vpop.f32.mrb[51].mxu1 }
0x19a1   :  { %v2687_v44 = vsel %vm2686_vm8, %v2672_v7, -inf  ;;  %v2675_v45 = vadd.f32 %v2674_v22, %v2626_v16  ;;  %v4293_v14 = vpop.f32.mrb[44].mxu0 }
0x19a2   :  { %v2688_v53 = vrot.slane %v2687_v44, 4  ;;  %v4294_v6 = vpop.f32.mrb[45].mxu0 }
0x19a3   :  { %v2836_v51 = vsel %vm2686_vm8, %v2675_v45, -inf  ;;  %v4295_v62 = vadd.f32 %v4294_v6, %v4293_v14  ;;  %v4296_v63 = vpop.f32.mrb[46].mxu0 }
0x19a4   :  { %v2689_v11 = vmax.f32 %v2687_v44, %v2688_v53  ;;  %v2837_v57 = vrot.slane %v2836_v51, 4  ;;  %v4297_v34 = vpop.f32.mrb[47].mxu0 }
0x19a5   :  { %v2631_v9 = vadd.f32 %v4295_v62, %v4222_v55  ;;  %v4298_v18 = vadd.f32 %v4297_v34, %v4296_v63 }
0x19a6   :  { %v2690_v30 = vrot.slane %v2689_v11, 2  ;;  %v2838_v26 = vmax.f32 %v2836_v51, %v2837_v57 }
0x19a7   :  { %v2680_v13 = vadd.f32 %v4392_v50, %v2631_v9  ;;  %v2634_v27 = vadd.f32 %v4298_v18, %v4222_v55 }
0x19a8   :  { %v2691_v32 = vmax.f32 %v2689_v11, %v2690_v30  ;;  %v2839_v33 = vrot.slane %v2838_v26, 2 }
0x19a9   :  { %v2984_v17 = vsel %vm2686_vm8, %v2680_v13, -inf  ;;  %v2683_v38 = vadd.f32 %v4393_v4, %v2634_v27 }
0x19aa   :  { %v2692_v48 = vrot.slane %v2691_v32, 1  ;;  %v2840_v28 = vmax.f32 %v2838_v26, %v2839_v33  ;;  %v2985_v37 = vrot.slane %v2984_v17, 4 }
0x19ab   :  { %v3132_v36 = vsel %vm2686_vm8, %v2683_v38, -inf }
0x19ac   :  { %v2693_v35 = vmax.f32 %v2691_v32, %v2692_v48  ;;  %v2841_v20 = vrot.slane %v2840_v28, 1  ;;  %v2986_v42 = vmax.f32 %v2984_v17, %v2985_v37  ;;  %v3133_v31 = vrot.slane %v3132_v36, 4 }
0x19ae   :  { %v2694_v12 = vsub.f32 %v2672_v7, %v2693_v35  ;;  %v2842_v29 = vmax.f32 %v2840_v28, %v2841_v20  ;;  %v2987_v15 = vrot.slane %v2986_v42, 2  ;;  %v3134_v56 = vmax.f32 %v3132_v36, %v3133_v31 }
0x19b0   :  { %v2695_v3 = vmul.f32 1.442695, %v2694_v12  ;;  %v2843_v58 = vsub.f32 %v2675_v45, %v2842_v29  ;;  %v2988_v25 = vmax.f32 %v2986_v42, %v2987_v15  ;;  %v3135_v23 = vrot.slane %v3134_v56, 2 }
0x19b2   :  { %4807 = vpow2.f32 %v2695_v3  ;;  %v2844_v8 = vmul.f32 1.442695, %v2843_v58  ;;  %v2989_v10 = vrot.slane %v2988_v25, 1  ;;  %v3136_v5 = vmax.f32 %v3134_v56, %v3135_v23 }
0x19b4   :  { %4809 = vpow2.f32 %v2844_v8  ;;  %v2990_v41 = vmax.f32 %v2988_v25, %v2989_v10  ;;  %v3137_v2 = vrot.slane %v3136_v5, 1 }
0x19b6   :  { %v2991_v47 = vsub.f32 %v2680_v13, %v2990_v41  ;;  %v3138_v21 = vmax.f32 %v3136_v5, %v3137_v2  ;;  %v3492_v2 = vld [vmem:[%s6879_s10] sm:$0xff] }
0x19b8   :  { %v2992_v40 = vmul.f32 1.442695, %v2991_v47  ;;  %v3139_v43 = vsub.f32 %v2683_v38, %v3138_v21  ;;  %v3493_v47 = vld [vmem:[%s6879_s10 + $0x8] sm:$0xff]  ;;  %v3494_v21 = vld [vmem:[%s6879_s10 + $0x10] sm:$0xff] }
0x19ba   :  { %4811 = vpow2.f32 %v2992_v40  ;;  %v3140_v46 = vmul.f32 1.442695, %v3139_v43  ;;  %v3516_v40 = vpack.c.bf16 %v3493_v47, %v3492_v2  ;;  %v3495_v43 = vld [vmem:[%s6879_s10 + $0x18] sm:$0xff] }
0x19bc   :  { %v4808_v60 = vpop.eup %4807  ;;  %4813 = vpow2.f32 %v3140_v46  ;;  %v3517_v46 = vpack.c.bf16 %v3495_v43, %v3494_v21 }
0x19bd   :  { %v2697_v55 = vsel %vm2686_vm8, %v4808_v60, 0.0 }
0x19be   :  { %v4810_v49 = vpop.eup %4809  ;;  %v2698_v52 = vrot.slane %v2697_v55, 4 }
0x19bf   :  { %v2846_v61 = vsel %vm2686_vm8, %v4810_v49, 0.0 }
0x19c0   :  { %v2699_v24 = vadd.f32 %v2698_v52, %v2697_v55  ;;  %v2847_v50 = vrot.slane %v2846_v61, 4  ;;  %v3497_v55 = vld [vmem:[%s6879_s10 + $0x28] sm:$0xff]  ;;  %v3498_v52 = vld [vmem:[%s6879_s10 + $0x30] sm:$0xff] }
0x19c2   :  { %v2700_v59 = vrot.slane %v2699_v24, 2  ;;  %v2848_v0 = vadd.f32 %v2847_v50, %v2846_v61  ;;  %v3499_v61 = vld [vmem:[%s6879_s10 + $0x38] sm:$0xff]  ;;  %v3500_v50 = vld [vmem:[%s6879_s10 + $0x40] sm:$0xff] }
0x19c4   :  { %v4812_v7 = vpop.eup %4811  ;;  %v2701_v4 = vadd.f32 %v2700_v59, %v2699_v24  ;;  %v2849_v16 = vrot.slane %v2848_v0, 2  ;;  %v3519_v24 = vpack.c.bf16 %v3499_v61, %v3498_v52  ;;  %v3501_v59 = vld [vmem:[%s6879_s10 + $0x48] sm:$0xff] }
0x19c5   :  { %v2994_v22 = vsel %vm2686_vm8, %v4812_v7, 0.0 }
0x19c6   :  { %v4814_v44 = vpop.eup %4813  ;;  %v2702_v45 = vrot.slane %v2701_v4, 1  ;;  %v2995_v14 = vrot.slane %v2994_v22, 4  ;;  %v2850_v53 = vadd.f32 %v2849_v16, %v2848_v0  ;;  %v3520_v0 = vpack.c.bf16 %v3501_v59, %v3500_v50 }
0x19c7   :  { %v3142_v6 = vsel %vm2686_vm8, %v4814_v44, 0.0  ;;  %vm3688_vm8 = vcmask 518144  }
0x19c8   :  { %v2996_v51 = vadd.f32 %v2995_v14, %v2994_v22  ;;  %v3143_v62 = vrot.slane %v3142_v6, 4  ;;  %v2703_v63 = vadd.f32 %v2702_v45, %v2701_v4  ;;  %v2851_v11 = vrot.slane %v2850_v53, 1  ;;  %v3503_v4 = vld [vmem:[%s6879_s10 + $0x58] sm:$0xff]  ;;  %v3504_v22 = vld [vmem:[%s6879_s10 + $0x60] sm:$0xff]  ;;  %v3506_v14 = vld [vmem:[%s6879_s10 + $0x70] sm:$0xff] }
0x19ca   :  { %v2997_v57 = vrot.slane %v2996_v51, 2  ;;  %4815 = vrcp.f32 %v2703_v63  ;;  %v2852_v34 = vadd.f32 %v2851_v11, %v2850_v53  ;;  %v3144_v9 = vadd.f32 %v3143_v62, %v3142_v6  ;;  %v3507_v53 = vld [vmem:[%s6879_s10 + $0x78] sm:$0xff]  ;;  %v3509_v62 = vld [vmem:[%s6879_s10 + $0x88] sm:$0xff]  ;;  %v3510_v11 = vld [vmem:[%s6879_s10 + $0x90] sm:$0xff] }
0x19cb   :  { %v3523_v6 = vpack.c.bf16 %v3507_v53, %v3506_v14 }
0x19cc   :  { %4817 = vrcp.f32 %v2852_v34  ;;  %v2998_v18 = vadd.f32 %v2997_v57, %v2996_v51  ;;  %v3145_v30 = vrot.slane %v3144_v9, 2  ;;  %v3508_v51 = vld [vmem:[%s6879_s10 + $0x80] sm:$0xff]  ;;  %v3511_v57 = vld [vmem:[%s6879_s10 + $0x98] sm:$0xff] }
0x19cd   :  { %v3524_v63 = vpack.c.bf16 %v3509_v62, %v3508_v51  ;;  %v3525_v34 = vpack.c.bf16 %v3511_v57, %v3510_v11 }
0x19ce   :  { %v2999_v26 = vrot.slane %v2998_v18, 1  ;;  %v3146_v13 = vadd.f32 %v3145_v30, %v3144_v9  ;;  %v3512_v9 = vld [vmem:[%s6879_s10 + $0xa0] sm:$0xff] }
0x19d0   :  { %v3147_v27 = vrot.slane %v3146_v13, 1  ;;  %v3000_v32 = vadd.f32 %v2999_v26, %v2998_v18  ;;  %v3513_v18 = vld [vmem:[%s6879_s10 + $0xa8] sm:$0xff] }
0x19d1   :  { %v3526_v30 = vpack.c.bf16 %v3513_v18, %v3512_v9 }
0x19d2   :  { %v3148_v33 = vadd.f32 %v3147_v27, %v3146_v13  ;;  %4819 = vrcp.f32 %v3000_v32 }
0x19d4   :  { %v4816_v17 = vpop.eup %4815  ;;  %4821 = vrcp.f32 %v3148_v33 }
0x19d5   :  { %v2705_v38 = vmul.f32 %v4816_v17, %v4808_v60  ;;  %v3496_v60 = vld [vmem:[%s6879_s10 + $0x20] sm:$0xff] }
0x19d6   :  { %v4818_v48 = vpop.eup %4817 }
0x19d7   :  { %2706 = vxpose.xlu0.b32.start.end [1/1] (short) (narrow) %v2705_v38, 32  ;;  %v2854_v28 = vmul.f32 %v4818_v48, %v4810_v49  ;;  %v3518_v49 = vpack.c.bf16 %v3497_v55, %v3496_v60 }
0x19d9   :  { %2855 = vxpose.xlu1.b32.start.end [1/1] (short) (narrow) %v2854_v28, 32  ;;  %v3515_v28 = vld [vmem:[%s6879_s10 + $0xb8] sm:$0xff] }
0x19dc   :  { %v4820_v37 = vpop.eup %4819 }
0x19dd   :  { %v3002_v35 = vmul.f32 %v4820_v37, %v4812_v7  ;;  %v3502_v7 = vld [vmem:[%s6879_s10 + $0x50] sm:$0xff] }
0x19de   :  { %v4822_v36 = vpop.eup %4821  ;;  %v3521_v16 = vpack.c.bf16 %v3503_v4, %v3502_v7 }
0x19df   :  { %v3150_v20 = vmul.f32 %v4822_v36, %v4814_v44  ;;  %v3505_v44 = vld [vmem:[%s6879_s10 + $0x68] sm:$0xff] }
0x19e0   :  { %v3522_v45 = vpack.c.bf16 %v3505_v44, %v3504_v22 }
0x19e4   :  { %3003 = vxpose.xlu0.b32.start.end [1/1] (short) (narrow) %v3002_v35, 32 }
0x19e6   :  { %3151 = vxpose.xlu1.b32.start.end [1/1] (short) (narrow) %v3150_v20, 32 }
0x1a57   :  { %v2722_v42 = vpop.trf.xlu0 }
0x1a58   :  { %4396 = vmatprep.mubr.msk.f32.mxu1 %vm2738_vm15, %v2722_v42 }
0x1a59   :  { %v2871_v31 = vpop.trf.xlu1 }
0x1a5b   :  { %v2723_v12 = vpop.trf.xlu0 }
0x1a5c   :  { %4397 = vmatmul.mubr.msk.f32.vlgmr.msra.gmra.mrb[52].mxu1 %vm2738_vm15, %v2723_v12 }
0x1a5d   :  { %4403 = vmatpush3.msra.mxu1 %v6244_v1  ;;  %v2872_v29 = vpop.trf.xlu1 }
0x1a5e   :  { %4418 = vmatprep.subr.mxu1 %v6270_v54 }
0x1a5f   :  { %v2724_v15 = vpop.trf.xlu0 }
0x1a60   :  { %4399 = vmatprep.mubr.msk.f32.mxu1 %vm2738_vm15, %v2724_v15 }
0x1a61   :  { %v2873_v56 = vpop.trf.xlu1 }
0x1a63   :  { %v2725_v3 = vpop.trf.xlu0 }
0x1a64   :  { %4400 = vmatmul.mubr.msk.f32.gmra.mrb[54].mxu1 %vm2738_vm15, %v2725_v3 }
0x1a65   :  { %4404 = vmatprep.mubr.msk.f32.mxu1 %vm2738_vm15, %v2871_v31  ;;  %v2874_v58 = vpop.trf.xlu1 }
0x1a67   :  { %v3019_v25 = vpop.trf.xlu0 }
0x1a68   :  { %4405 = vmatmul.mubr.msk.f32.vlgmr.msra.gmra.mrb[56].mxu1 %vm2738_vm15, %v2872_v29  ;;  %4412 = vmatprep.mubr.msk.f32.mxu0 %vm2738_vm15, %v3019_v25 }
0x1a69   :  { %4419 = vmatpush3.msra.mxu1 %v6270_v54  ;;  %v3167_v1 = vpop.trf.xlu1  ;;  %4407 = vmatprep.mubr.msk.f32.mxu1 %vm2738_vm15, %v2873_v56 }
0x1a6b   :  { %v3020_v23 = vpop.trf.xlu0 }
0x1a6c   :  { %4408 = vmatmul.mubr.msk.f32.gmra.mrb[58].mxu1 %vm2738_vm15, %v2874_v58  ;;  %4413 = vmatmul.mubr.msk.f32.vlgmr.msra.gmra.mrb[2].mxu0 %vm2738_vm15, %v3020_v23 }
0x1a6d   :  { %v3168_v8 = vpop.trf.xlu1  ;;  %4420 = vmatprep.mubr.msk.f32.mxu1 %vm2738_vm15, %v3167_v1  ;;  %3560 = vmatpush1.bf16.msra.mxu0 %v3516_v40 }
0x1a6e   :  { %3561 = vmatprep.subr.bf16.mxu0 %v6932_v39 }
0x1a6f   :  { %v3021_v10 = vpop.trf.xlu0 }
0x1a70   :  { %4415 = vmatprep.mubr.msk.f32.mxu0 %vm2738_vm15, %v3021_v10  ;;  %4421 = vmatmul.mubr.msk.f32.vlgmr.msra.gmra.mrb[60].mxu1 %vm2738_vm15, %v3168_v8 }
0x1a71   :  { %v3169_v5 = vpop.trf.xlu1  ;;  %3562 = vmatpush1.bf16.msra.mxu0 %v3517_v46 }
0x1a72   :  { %4423 = vmatprep.mubr.msk.f32.mxu1 %vm2738_vm15, %v3169_v5  ;;  %3563 = vmatprep.subr.bf16.mxu0 %v6932_v39 }
0x1a73   :  { %v3022_v54 = vpop.trf.xlu0 }
0x1a74   :  { %4416 = vmatmul.mubr.msk.f32.gmra.mrb[48].mxu0 %vm2738_vm15, %v3022_v54 }
0x1a75   :  { %v3170_v41 = vpop.trf.xlu1  ;;  %3564 = vmatpush1.bf16.msra.mxu0 %v3518_v49 }
0x1a76   :  { %4424 = vmatmul.mubr.msk.f32.gmra.mrb[62].mxu1 %vm2738_vm15, %v3170_v41  ;;  %3565 = vmatprep.subr.bf16.mxu0 %v6932_v39  ;;  %vm3850_vm15 = vcmask 517120  }
0x1a79   :  { %3566 = vmatpush1.bf16.msra.mxu0 %v3519_v24 }
0x1a7a   :  { %3567 = vmatprep.subr.bf16.mxu0 %v6932_v39 }
0x1a7d   :  { %3568 = vmatpush1.bf16.msra.mxu0 %v3520_v0 }
0x1a7e   :  { %3569 = vmatprep.subr.bf16.mxu0 %v6932_v39 }
0x1a81   :  { %3570 = vmatpush1.bf16.msra.mxu0 %v3521_v16 }
0x1a82   :  { %3571 = vmatprep.subr.bf16.mxu0 %v6932_v39 }
0x1a85   :  { %3572 = vmatpush1.bf16.msra.mxu0 %v3522_v45 }
0x1a86   :  { %3573 = vmatprep.subr.bf16.mxu0 %v6932_v39 }
0x1a89   :  { %3574 = vmatpush1.bf16.msra.mxu0 %v3523_v6 }
0x1a8a   :  { %3575 = vmatprep.subr.bf16.mxu0 %v6932_v39 }
0x1a8d   :  { %3576 = vmatpush1.bf16.msra.mxu0 %v3524_v63 }
0x1a8e   :  { %3577 = vmatprep.subr.bf16.mxu0 %v6932_v39 }
0x1a91   :  { %3578 = vmatpush1.bf16.msra.mxu0 %v3525_v34 }
0x1a92   :  { %3579 = vmatprep.subr.bf16.mxu0 %v6932_v39 }
0x1a95   :  { %3580 = vmatpush1.bf16.msra.mxu0 %v3526_v30 }
0x1a96   :  { %3581 = vmatprep.subr.bf16.mxu0 %v6932_v39  ;;  %v3514_v39 = vld [vmem:[%s6879_s10 + $0xb0] sm:$0xff] }
0x1a97   :  { %v3527_v37 = vpack.c.bf16 %v3515_v28, %v3514_v39 }
0x1a99   :  { %3582 = vmatpush1.bf16.msra.mxu0 %v3527_v37 }
0x1b2f   :  { %v6489_v26 = vpop.f32.mrb[52].mxu1 }
0x1b30   :  { %v3340_v13 = vrot.slane %v6489_v26, 1  ;;  %v3416_v27 = vrot.slane %v6489_v26, 2  ;;  %v6493_v32 = vpop.f32.mrb[53].mxu1 }
0x1b31   :  { %v3339_v33 = vrot.slane %v6493_v32, 1  ;;  %v3415_v17 = vrot.slane %v6493_v32, 2 }
0x1b33   :  { %v3341_v38 = vsel %vm2584_vm0, %v3339_v33, %v3340_v13  ;;  %v3417_v48 = vsel %vm3284_vm2, %v3415_v17, %v3416_v27 }
0x1b37   :  { %v4401_v36 = vpop.f32.mrb[54].mxu1 }
0x1b38   :  { %v6505_v35 = vpop.f32.mrb[55].mxu1 }
0x1b39   :  { %v3342_v20 = vrot.slane %v6505_v35, 1  ;;  %v3418_v42 = vrot.slane %v6505_v35, 2 }
0x1b3b   :  { %v3343_v31 = vsel %vm2584_vm0, %v3340_v13, %v3342_v20  ;;  %v3419_v12 = vsel %vm3284_vm2, %v3416_v27, %v3418_v42  ;;  %v4406_v29 = vpop.f32.mrb[56].mxu1 }
0x1b3c   :  { %v3286_v15 = vrot.slane %v4406_v29, 2  ;;  %v2965_v56 = vpop.f32.mrb[57].mxu1  ;;  %v4524_v3 = vpack.i.bf16 %v3343_v31, %v3341_v38  ;;  %v3477_v58 = vpack.c.bf16 %v3419_v12, %v3417_v48  ;;  %v6955_v29 = vmov 0.0  }
0x1b3d   :  { %v3285_v25 = vrot.slane %v2965_v56, 2 }
0x1b3e   :  { %4525 = vrot.lane.b32.xlu0 %v4524_v3, %s4853_s4  ;;  %4242 = vmatprep.mubr.msk.bf16.mxu0 %vm652_vm9, %v3477_v58 }
0x1b3f   :  { %v6516_v1 = vsel %vm3284_vm2, %v3285_v25, %v3286_v15  ;;  %v6519_v23 = vsel %vm3284_vm2, %v4401_v36, %v3285_v25  ;;  %v4409_v8 = vpop.f32.mrb[58].mxu1  ;;  %v4414_v10 = vpop.f32.mrb[2].mxu0 }
0x1b40   :  { %v3344_v5 = vrot.slane %v6519_v23, 1  ;;  %v3346_v54 = vrot.slane %v6516_v1, 1  ;;  %v2975_v41 = vpop.f32.mrb[59].mxu1  ;;  %v3113_v2 = vpop.f32.mrb[3].mxu0  ;;  %v3290_v47 = vrot.slane %v4409_v8, 2  ;;  %v3303_v21 = vrot.slane %v4414_v10, 4 }
0x1b41   :  { %v3288_v40 = vrot.slane %v2975_v41, 2  ;;  %v3302_v43 = vrot.slane %v3113_v2, 4 }
0x1b42   :  { %v3345_v46 = vsel %vm2584_vm0, %v3342_v20, %v3344_v5  ;;  %v3347_v60 = vsel %vm2584_vm0, %v3344_v5, %v3346_v54 }
0x1b43   :  { %v6526_v55 = vsel %vm3284_vm2, %v3286_v15, %v3288_v40  ;;  %v6529_v49 = vsel %vm3284_vm2, %v3288_v40, %v3290_v47  ;;  %v6532_v52 = vsel %vm3301_vm3, %v3302_v43, %v3303_v21  ;;  %v6535_v61 = vsel %vm3301_vm3, %v3290_v47, %v3302_v43  ;;  %v4422_v24 = vpop.f32.mrb[60].mxu1 }
0x1b44   :  { %v3348_v50 = vrot.slane %v6526_v55, 1  ;;  %v3350_v59 = vrot.slane %v6529_v49, 1  ;;  %v3261_v0 = vpop.f32.mrb[61].mxu1  ;;  %v3352_v7 = vrot.slane %v6535_v61, 1  ;;  %v3354_v4 = vrot.slane %v6532_v52, 1 }
0x1b45   :  { %v4529_v16 = vpack.i.bf16 %v3347_v60, %v3345_v46  ;;  %v3319_v22 = vrot.slane %v4422_v24, 6  ;;  %v3318_v44 = vrot.slane %v3261_v0, 6  ;;  %v3368_v15 = vrot.slane %v6955_v29, 1 }
0x1b46   :  { %v3349_v45 = vsel %vm2584_vm0, %v3346_v54, %v3348_v50  ;;  %v3351_v53 = vsel %vm2584_vm0, %v3348_v50, %v3350_v59  ;;  %v3353_v6 = vsel %vm2584_vm0, %v3350_v59, %v3352_v7  ;;  %v3355_v51 = vsel %vm2584_vm0, %v3352_v7, %v3354_v4 }
0x1b47   :  { %v4417_v14 = vpop.f32.mrb[48].mxu0  ;;  %4530 = vrot.lane.b32.xlu1 %v4529_v16, %s4853_s4  ;;  %v6547_v11 = vsel %vm6953_vm12, %v3318_v44, %v3319_v22  ;;  %v4534_v57 = vpack.i.bf16 %v3351_v53, %v3349_v45  ;;  %v4539_v34 = vpack.i.bf16 %v3355_v51, %v3353_v6  ;;  %v3420_v47 = vrot.slane %v6519_v23, 2 }
0x1b48   :  { %v3307_v62 = vrot.slane %v4417_v14, 4  ;;  %v3123_v63 = vpop.f32.mrb[49].mxu0  ;;  %v3362_v18 = vrot.slane %v6547_v11, 1  ;;  %v3426_v16 = vrot.slane %v6529_v49, 2  ;;  %vm3732_vm12 = vcmask 523268  }
0x1b49   :  { %v3305_v9 = vrot.slane %v3123_v63, 4  ;;  %v4425_v30 = vpop.f32.mrb[62].mxu1  ;;  %4535 = vrot.lane.b32.xlu0 %v4534_v57, %s4853_s4  ;;  %v3421_v60 = vsel %vm3284_vm2, %v3418_v42, %v3420_v47  ;;  %v3428_v57 = vrot.slane %v6535_v61, 2 }
0x1b4a   :  { %v6551_v13 = vsel %vm6954_vm5, %v3307_v62, %v3318_v44  ;;  %v3271_v27 = vpop.f32.mrb[63].mxu1  ;;  %v3323_v48 = vrot.slane %v4425_v30, 6 }
0x1b4b   :  { %v6555_v33 = vsel %vm3301_vm3, %v3303_v21, %v3305_v9  ;;  %v6558_v17 = vsel %vm3301_vm3, %v3305_v9, %v3307_v62  ;;  %v3360_v38 = vrot.slane %v6551_v13, 1  ;;  %4540 = vrot.lane.b32.xlu1 %v4539_v34, %s4853_s4  ;;  %v3321_v37 = vrot.slane %v3271_v27, 6 }
0x1b4c   :  { %v3356_v39 = vrot.slane %v6555_v33, 1  ;;  %v3358_v28 = vrot.slane %v6558_v17, 1  ;;  %v3422_v21 = vrot.slane %v6516_v1, 2  ;;  %v3430_v34 = vrot.slane %v6532_v52, 2 }
0x1b4d   :  { %v3363_v36 = vsel %vm2584_vm0, %v3360_v38, %v3362_v18  ;;  %v6570_v56 = vsel %vm6956_vm6, %v3319_v22, %v3321_v37  ;;  %v6573_v3 = vsel %vm6957_vm13, %v3321_v37, %v3323_v48  ;;  %v3434_v37 = vrot.slane %v6558_v17, 2 }
0x1b4e   :  { %v3361_v20 = vsel %vm2584_vm0, %v3358_v28, %v3360_v38  ;;  %v3357_v31 = vsel %vm2584_vm0, %v3354_v4, %v3356_v39  ;;  %v3359_v12 = vsel %vm2584_vm0, %v3356_v39, %v3358_v28  ;;  %v3364_v8 = vrot.slane %v6570_v56, 1 }
0x1b4f   :  { %v4549_v58 = vpack.i.bf16 %v3363_v36, %v3361_v20  ;;  %v4544_v25 = vpack.i.bf16 %v3359_v12, %v3357_v31  ;;  %v3366_v10 = vrot.slane %v6573_v3, 1  ;;  %v3423_v24 = vsel %vm3284_vm2, %v3420_v47, %v3422_v21 }
0x1b50   :  { %v3365_v54 = vsel %vm2584_vm0, %v3362_v18, %v3364_v8  ;;  %v3479_v7 = vpack.c.bf16 %v3423_v24, %v3421_v60  ;;  %v3424_v4 = vrot.slane %v6526_v55, 2  ;;  %v3431_v30 = vsel %vm3284_vm2, %v3428_v57, %v3430_v34 }
0x1b51   :  { %4550 = vrot.lane.b32.xlu1 %v4549_v58, %s4853_s4  ;;  %4545 = vrot.lane.b32.xlu0 %v4544_v25, %s4853_s4  ;;  %v3369_v5 = vsel %vm2584_vm0, %v3366_v10, %v3368_v15  ;;  %v3367_v41 = vsel %vm2584_vm0, %v3364_v8, %v3366_v10  ;;  %v3432_v28 = vrot.slane %v6555_v33, 2  ;;  %v3436_v8 = vrot.slane %v6551_v13, 2  ;;  %vm6959_vm0 = vmmov %vm6954_vm5 }
0x1b52   :  { %v4554_v2 = vpack.i.bf16 %v3367_v41, %v3365_v54  ;;  %v3425_v14 = vsel %vm3284_vm2, %v3422_v21, %v3424_v4  ;;  %v3438_v10 = vrot.slane %v6547_v11, 2  ;;  %vm6960_vm5 = vmmov %vm6959_vm0  ;;  %vm3737_vm13 = vcmask 516096  }
0x1b53   :  { %v3433_v20 = vsel %vm3284_vm2, %v3430_v34, %v3432_v28  ;;  %v3435_v31 = vsel %vm3284_vm2, %v3432_v28, %v3434_v37  ;;  %v3437_v54 = vsel %vm3284_vm2, %v3434_v37, %v3436_v8  ;;  %vm6961_vm6 = vmmov %vm6959_vm0 }
0x1b54   :  { %v3485_v25 = vpack.c.bf16 %v3435_v31, %v3433_v20  ;;  %v3439_v41 = vsel %vm3284_vm2, %v3436_v8, %v3438_v10 }
0x1b55   :  { %3398 = vrot.lane.b32.xlu1 %v3369_v5, %s4853_s4  ;;  %4555 = vrot.lane.b32.xlu0 %v4554_v2, %s4853_s4 }
0x1bb0   :  { %v4526_v40 = vpop.permute.xlu0 %4525 }
0x1bb1   :  { %v4528_v43 = vunpack.i.h.bf16 %v4526_v40  ;;  %v4527_v46 = vunpack.i.l.bf16 %v4526_v40  ;;  %v3487_v40 = vpack.c.bf16 %v3439_v41, %v3437_v54 }
0x1bb3   :  { %v3462_v50 = vsel %vm652_vm9, %v6489_v26, %v4528_v43  ;;  %v3461_v59 = vsel %vm652_vm9, %v6493_v32, %v4527_v46  ;;  %v3427_v26 = vsel %vm3284_vm2, %v3424_v4, %v3426_v16  ;;  %v3440_v43 = vrot.slane %v6570_v56, 2 }
0x1bb4   :  { %v3476_v0 = vpack.c.bf16 %v3462_v50, %v3461_v59  ;;  %v3481_v63 = vpack.c.bf16 %v3427_v26, %v3425_v14  ;;  %v3442_v46 = vrot.slane %v6573_v3, 2 }
0x1bb5   :  { %v3441_v24 = vsel %vm3284_vm2, %v3438_v10, %v3440_v43 }
0x1bb6   :  { %3592 = vmatmul.mubr.bf16.vlgmr.msra.gmra.mrb[52].mxu0 %v3476_v0  ;;  %v3443_v50 = vsel %vm3284_vm2, %v3440_v43, %v3442_v46 }
0x1bb7   :  { %4243 = vmatprep.mubr.msk.bf16.mxu0 %vm652_vm9, %v3479_v7  ;;  %v3489_v4 = vpack.c.bf16 %v3443_v50, %v3441_v24 }
0x1bb9   :  { %v4531_v22 = vpop.permute.xlu1 %4530 }
0x1bba   :  { %v4533_v44 = vunpack.i.h.bf16 %v4531_v22  ;;  %v4532_v42 = vunpack.i.l.bf16 %v4531_v22 }
0x1bbb   :  { %v4536_v45 = vpop.permute.xlu0 %4535 }
0x1bbc   :  { %v3463_v32 = vsel %vm652_vm9, %v6505_v35, %v4532_v42  ;;  %v3464_v53 = vsel %vm652_vm9, %v6519_v23, %v4533_v44  ;;  %v4538_v51 = vunpack.i.h.bf16 %v4536_v45  ;;  %v4537_v62 = vunpack.i.l.bf16 %v4536_v45 }
0x1bbd   :  { %v3478_v6 = vpack.c.bf16 %v3464_v53, %v3463_v32  ;;  %v4541_v18 = vpop.permute.xlu1 %4540  ;;  %v3429_v23 = vsel %vm3284_vm2, %v3426_v16, %v3428_v57  ;;  %v3444_v16 = vrot.slane %v6955_v29, 2 }
0x1bbe   :  { %v3465_v9 = vsel %vm652_vm9, %v6516_v1, %v4537_v62  ;;  %v3466_v35 = vsel %vm652_vm9, %v6526_v55, %v4538_v51  ;;  %v4543_v38 = vunpack.i.h.bf16 %v4541_v18  ;;  %v4542_v48 = vunpack.i.l.bf16 %v4541_v18 }
0x1bbf   :  { %3600 = vmatmul.mubr.bf16.gmra.mrb[56].mxu0 %v3478_v6  ;;  %v3480_v27 = vpack.c.bf16 %v3466_v35, %v3465_v9  ;;  %v3483_v39 = vpack.c.bf16 %v3431_v30, %v3429_v23  ;;  %v3445_v22 = vsel %vm3284_vm2, %v3442_v46, %v3444_v16 }
0x1bc0   :  { %4244 = vmatprep.mubr.msk.bf16.mxu0 %vm652_vm9, %v3481_v63  ;;  %v3467_v1 = vsel %vm652_vm9, %v6529_v49, %v4542_v48  ;;  %v3468_v55 = vsel %vm652_vm9, %v6535_v61, %v4543_v38  ;;  %v3491_v42 = vpack.c.bf16 %v3445_v22, %v3445_v22 }
0x1bc1   :  { %v3482_v12 = vpack.c.bf16 %v3468_v55, %v3467_v1 }
0x1bc3   :  { %v4546_v36 = vpop.permute.xlu0 %4545  ;;  %v4551_v5 = vpop.permute.xlu1 %4550 }
0x1bc4   :  { %v4548_v15 = vunpack.i.h.bf16 %v4546_v36  ;;  %v4547_v58 = vunpack.i.l.bf16 %v4546_v36  ;;  %v4553_v47 = vunpack.i.h.bf16 %v4551_v5  ;;  %v4552_v21 = vunpack.i.l.bf16 %v4551_v5 }
0x1bc6   :  { %v3469_v49 = vsel %vm652_vm9, %v6532_v52, %v4547_v58  ;;  %v3470_v61 = vsel %vm652_vm9, %v6555_v33, %v4548_v15  ;;  %v3471_v52 = vsel %vm652_vm9, %v6558_v17, %v4552_v21  ;;  %v3472_v33 = vsel %vm652_vm9, %v6551_v13, %v4553_v47 }
0x1bc7   :  { %3608 = vmatmul.mubr.bf16.gmra.mrb[60].mxu0 %v3480_v27  ;;  %v3484_v2 = vpack.c.bf16 %v3470_v61, %v3469_v49  ;;  %v4556_v60 = vpop.permute.xlu0 %4555  ;;  %v3486_v59 = vpack.c.bf16 %v3472_v33, %v3471_v52  ;;  %v3399_v45 = vpop.permute.xlu1 %3398 }
0x1bc8   :  { %4245 = vmatprep.mubr.msk.bf16.mxu0 %vm652_vm9, %v3483_v39  ;;  %v4558_v0 = vunpack.i.h.bf16 %v4556_v60  ;;  %v4557_v7 = vunpack.i.l.bf16 %v4556_v60  ;;  %v3475_v14 = vsel %vm652_vm9, %v6573_v3, %v3399_v45 }
0x1bc9   :  { %v3490_v26 = vpack.c.bf16 %v3475_v14, %v3475_v14 }
0x1bca   :  { %v3473_v17 = vsel %vm652_vm9, %v6547_v11, %v4557_v7  ;;  %v3474_v13 = vsel %vm652_vm9, %v6570_v56, %v4558_v0  ;;  %v6652_v11 = vld [vmem:[%s6880_s11] ss:$0 sm:$0xff] }
0x1bcb   :  { %v3488_v44 = vpack.c.bf16 %v3474_v13, %v3473_v17 }
0x1bcf   :  { %3616 = vmatmul.mubr.bf16.gmra.mrb[64].mxu0 %v3482_v12 }
0x1bd0   :  { %4246 = vmatprep.mubr.msk.bf16.mxu0 %vm652_vm9, %v3485_v25 }
0x1bd7   :  { %3624 = vmatmul.mubr.bf16.gmra.mrb[68].mxu0 %v3484_v2 }
0x1bd8   :  { %4247 = vmatprep.mubr.msk.bf16.mxu0 %vm652_vm9, %v3487_v40 }
0x1bdf   :  { %3632 = vmatmul.mubr.bf16.gmra.mrb[72].mxu0 %v3486_v59 }
0x1be0   :  { %4248 = vmatprep.mubr.msk.bf16.mxu0 %vm652_vm9, %v3489_v4 }
0x1be7   :  { %3640 = vmatmul.mubr.bf16.gmra.mrb[76].mxu0 %v3488_v44 }
0x1be8   :  { %4249 = vmatprep.mubr.msk.bf16.mxu0 %vm652_vm9, %v3491_v42 }
0x1bef   :  { %3648 = vmatmul.mubr.bf16.gmra.mrb[80].mxu0 %v3490_v26 }
0x1c89   :  { %v3593_v32 = vpop.f32.mrb[52].mxu0 }
0x1c8a   :  { %v3594_v56 = vadd.f32 %v6652_v11, %v3593_v32  ;;  %v3595_v53 = vpop.f32.mrb[53].mxu0 }
0x1c8b   :  { %v3596_v6 = vpop.f32.mrb[54].mxu0 }
0x1c8c   :  { %v3597_v51 = vadd.f32 %v6652_v11, %v3596_v6  ;;  %v3598_v62 = vpop.f32.mrb[55].mxu0  ;;  %v3655_v63 = vsel %vm652_vm9, %v3594_v56, -inf  ;;  %v3669_v57 = vsel %vm652_vm9, %v3594_v56, 0.0 }
0x1c8e   :  { %v3656_v3 = vsel %vm652_vm9, %v3597_v51, -inf  ;;  %v3670_v34 = vsel %vm652_vm9, %v3597_v51, 0.0 }
0x1c8f   :  { %v3660_v9 = vmax.f32 %v3655_v63, %v3656_v3  ;;  %v3671_v35 = vadd.f32 %v3670_v34, %v3669_v57 }
0x1c92   :  { %v3601_v18 = vpop.f32.mrb[56].mxu0 }
0x1c93   :  { %v3602_v23 = vadd.f32 %v6652_v11, %v3601_v18  ;;  %v3603_v30 = vpop.f32.mrb[57].mxu0 }
0x1c94   :  { %v3604_v27 = vpop.f32.mrb[58].mxu0 }
0x1c95   :  { %v3672_v38 = vsel %vm652_vm9, %v3602_v23, 0.0  ;;  %v3605_v48 = vadd.f32 %v6652_v11, %v3604_v27  ;;  %v3606_v39 = vpop.f32.mrb[59].mxu0  ;;  %v3657_v37 = vsel %vm652_vm9, %v3602_v23, -inf }
0x1c96   :  { %v3673_v28 = vadd.f32 %v3672_v38, %v3671_v35 }
0x1c97   :  { %v3832_v1 = vsel %vm3831_vm14, %v3605_v48, -inf  ;;  %v3841_v55 = vsel %vm3831_vm14, %v3605_v48, 0.0  ;;  %v3659_v20 = vsel %vm3658_vm1, %v3605_v48, -inf  ;;  %v3674_v12 = vsel %vm3658_vm1, %v3605_v48, 0.0 }
0x1c98   :  { %v3833_v36 = vmax.f32 %v3657_v37, %v3832_v1  ;;  %v3842_v31 = vadd.f32 %v3841_v55, %v3673_v28  ;;  %v3661_v15 = vmax.f32 %v3657_v37, %v3659_v20  ;;  %v3675_v58 = vadd.f32 %v3674_v12, %v3673_v28 }
0x1c99   :  { %v3705_v21 = vrot.slane %v3605_v48, 6 }
0x1c9a   :  { %v3609_v25 = vpop.f32.mrb[60].mxu0  ;;  %v3834_v8 = vmax.f32 %v3660_v9, %v3833_v36  ;;  %v3843_v10 = vrot.slane %v3842_v31, 4  ;;  %v3662_v5 = vmax.f32 %v3660_v9, %v3661_v15  ;;  %v3676_v54 = vrot.slane %v3675_v58, 4 }
0x1c9b   :  { %v3610_v49 = vadd.f32 %v6652_v11, %v3609_v25  ;;  %v3611_v61 = vpop.f32.mrb[61].mxu0  ;;  %v3684_v9 = vsel %vm3683_vm7, %v3605_v48, -inf  ;;  %vm3784_vm7 = vcmask 522240  }
0x1c9c   :  { %v3612_v41 = vpop.f32.mrb[62].mxu0  ;;  %v3835_v2 = vrot.slane %v3834_v8, 4  ;;  %v3844_v47 = vadd.f32 %v3843_v10, %v3842_v31  ;;  %v3663_v52 = vrot.slane %v3662_v5, 4  ;;  %v3677_v24 = vadd.f32 %v3676_v54, %v3675_v58 }
0x1c9d   :  { %v3706_v40 = vrot.slane %v3610_v49, 6  ;;  %v3613_v43 = vadd.f32 %v6652_v11, %v3612_v41  ;;  %v3614_v46 = vpop.f32.mrb[63].mxu0  ;;  %v3685_v3 = vsel %vm652_vm9, %v3610_v49, -inf }
0x1c9e   :  { %v3836_v33 = vmax.f32 %v3834_v8, %v3835_v2  ;;  %v3845_v60 = vrot.slane %v3844_v47, 2  ;;  %v3664_v7 = vmax.f32 %v3662_v5, %v3663_v52  ;;  %v3678_v44 = vrot.slane %v3677_v24, 2 }
0x1c9f   :  { %v3707_v50 = vsel %vm6958_vm11, %v3705_v21, %v3706_v40  ;;  %v3708_v59 = vrot.slane %v3613_v43, 6  ;;  %v3686_v26 = vsel %vm652_vm9, %v3613_v43, -inf  ;;  %vm3780_vm11 = vcmask 523266  }
0x1ca0   :  { %v3837_v0 = vrot.slane %v3836_v33, 2  ;;  %v3846_v16 = vadd.f32 %v3845_v60, %v3844_v47  ;;  %v3718_v17 = vsel %vm652_vm9, %v3707_v50, 0.0  ;;  %v3665_v53 = vrot.slane %v3664_v7, 2 }
0x1ca1   :  { %v3709_v4 = vsel %vm6959_vm0, %v3706_v40, %v3708_v59  ;;  %v6680_v35 = vadd.f32 %v3678_v44, %v3677_v24  ;;  %vm3823_vm0 = vcmask 1040384  }
0x1ca2   :  { %v3719_v13 = vsel %vm652_vm9, %v3709_v4, 0.0  ;;  %v3617_v22 = vpop.f32.mrb[64].mxu0  ;;  %v3838_v56 = vmax.f32 %v3836_v33, %v3837_v0  ;;  %v3847_v57 = vrot.slane %v3846_v16, 1  ;;  %v3666_v37 = vmax.f32 %v3664_v7, %v3665_v53 }
0x1ca3   :  { %v3720_v42 = vadd.f32 %v3719_v13, %v3718_v17  ;;  %v3618_v45 = vadd.f32 %v6652_v11, %v3617_v22  ;;  %v3619_v14 = vpop.f32.mrb[65].mxu0  ;;  %v3680_v58 = vrot.slane %v6680_v35, 1 }
0x1ca4   :  { %v3620_v32 = vpop.f32.mrb[66].mxu0  ;;  %v3839_v36 = vrot.slane %v3838_v56, 1  ;;  %v3848_v20 = vadd.f32 %v3847_v57, %v3846_v16  ;;  %v3667_v7 = vrot.slane %v3666_v37, 1 }
0x1ca5   :  { %v3687_v6 = vsel %vm652_vm9, %v3618_v45, -inf  ;;  %v3710_v51 = vrot.slane %v3618_v45, 6  ;;  %v3621_v62 = vadd.f32 %v6652_v11, %v3620_v32  ;;  %v3622_v63 = vpop.f32.mrb[67].mxu0 }
0x1ca6   :  { %v3692_v34 = vmax.f32 %v3686_v26, %v3687_v6  ;;  %v3840_v16 = vmax.f32 %v3838_v56, %v3839_v36  ;;  %v6700_v45 = vmul.f32 0.035714287, %v3848_v20  ;;  %v3668_v57 = vmax.f32 %v3666_v37, %v3667_v7 }
0x1ca7   :  { %v3711_v18 = vsel %vm6960_vm5, %v3708_v59, %v3710_v51  ;;  %v3689_v23 = vsel %vm3688_vm8, %v3621_v62, -inf  ;;  %v3712_v30 = vrot.slane %v3621_v62, 6  ;;  %v3851_v27 = vsel %vm3850_vm15, %v3621_v62, -inf  ;;  %vm6962_vm8 = vmmov %vm6960_vm5 }
0x1ca8   :  { %v3721_v38 = vsel %vm652_vm9, %v3711_v18, 0.0  ;;  %v3690_v39 = vmax.f32 %v3684_v9, %v3689_v23  ;;  %v3852_v28 = vmax.f32 %v3684_v9, %v3851_v27  ;;  %v6691_v8 = vsel %vm3732_vm12, %v3621_v62, -inf }
0x1ca9   :  { %v3722_v1 = vadd.f32 %v3721_v38, %v3720_v42  ;;  %v3713_v55 = vsel %vm6961_vm6, %v3710_v51, %v3712_v30  ;;  %v3753_v41 = vrot.slane %v3621_v62, 4  ;;  %vm3913_vm12 = vcmask 130048  }
0x1caa   :  { %v3691_v48 = vmax.f32 %v3690_v39, %v3685_v3  ;;  %v3853_v31 = vmax.f32 %v3852_v28, %v3685_v3  ;;  %v3625_v12 = vpop.f32.mrb[68].mxu0  ;;  %v3861_v15 = vsel %vm3831_vm14, %v3713_v55, 0.0  ;;  %v3723_v61 = vsel %vm3658_vm1, %v3713_v55, 0.0 }
0x1cab   :  { %v3626_v25 = vadd.f32 %v6652_v11, %v3625_v12  ;;  %v3627_v10 = vpop.f32.mrb[69].mxu0  ;;  %v3862_v49 = vadd.f32 %v3861_v15, %v3722_v1  ;;  %v3724_v47 = vadd.f32 %v3723_v61, %v3722_v1 }
0x1cac   :  { %v3693_v5 = vmax.f32 %v3691_v48, %v3692_v34  ;;  %v3854_v54 = vmax.f32 %v3853_v31, %v3692_v34  ;;  %v3628_v2 = vpop.f32.mrb[70].mxu0 }
0x1cad   :  { %v3734_v21 = vsel %vm652_vm9, %v3626_v25, -inf  ;;  %v3754_v40 = vrot.slane %v3626_v25, 4  ;;  %v3629_v43 = vadd.f32 %v6652_v11, %v3628_v2  ;;  %v3630_v46 = vpop.f32.mrb[71].mxu0  ;;  %v3863_v52 = vrot.slane %v3862_v49, 4 }
0x1cae   :  { %v3870_v33 = vmax.f32 %v6691_v8, %v3734_v21  ;;  %v3855_v60 = vrot.slane %v3854_v54, 4  ;;  %v3694_v24 = vrot.slane %v3693_v5, 4  ;;  %v3725_v50 = vrot.slane %v3724_v47, 4 }
0x1caf   :  { %v3755_v59 = vsel %vm3301_vm3, %v3753_v41, %v3754_v40  ;;  %v3756_v0 = vrot.slane %v3629_v43, 4  ;;  %v3864_v4 = vadd.f32 %v3863_v52, %v3862_v49  ;;  %v3735_v34 = vsel %vm652_vm9, %v3629_v43, -inf }
0x1cb0   :  { %v3856_v17 = vmax.f32 %v3854_v54, %v3855_v60  ;;  %v3695_v13 = vmax.f32 %v3693_v5, %v3694_v24  ;;  %v3726_v22 = vadd.f32 %v3725_v50, %v3724_v47  ;;  %v3766_v44 = vsel %vm652_vm9, %v3755_v59, 0.0 }
0x1cb1   :  { %v3757_v42 = vsel %vm3301_vm3, %v3754_v40, %v3756_v0  ;;  %v3865_v14 = vrot.slane %v3864_v4, 2 }
0x1cb2   :  { %v3767_v26 = vsel %vm652_vm9, %v3757_v42, 0.0  ;;  %v3633_v32 = vpop.f32.mrb[72].mxu0  ;;  %v3857_v53 = vrot.slane %v3856_v17, 2  ;;  %v3696_v6 = vrot.slane %v3695_v13, 2  ;;  %v3727_v51 = vrot.slane %v3726_v22, 2 }
0x1cb3   :  { %v3768_v62 = vadd.f32 %v3767_v26, %v3766_v44  ;;  %v3634_v63 = vadd.f32 %v6652_v11, %v3633_v32  ;;  %v3635_v56 = vpop.f32.mrb[73].mxu0  ;;  %v3866_v3 = vadd.f32 %v3865_v14, %v3864_v4 }
0x1cb4   :  { %v3636_v9 = vpop.f32.mrb[74].mxu0  ;;  %v3858_v18 = vmax.f32 %v3856_v17, %v3857_v53  ;;  %v3697_v23 = vmax.f32 %v3695_v13, %v3696_v6  ;;  %v3728_v30 = vadd.f32 %v3727_v51, %v3726_v22 }
0x1cb5   :  { %v3736_v27 = vsel %vm652_vm9, %v3634_v63, -inf  ;;  %v3758_v38 = vrot.slane %v3634_v63, 4  ;;  %v3637_v39 = vadd.f32 %v6652_v11, %v3636_v9  ;;  %v3638_v28 = vpop.f32.mrb[75].mxu0  ;;  %v3867_v1 = vrot.slane %v3866_v3, 1 }
0x1cb6   :  { %v3741_v55 = vmax.f32 %v3735_v34, %v3736_v27  ;;  %v3859_v36 = vrot.slane %v3858_v18, 1  ;;  %v3698_v20 = vrot.slane %v3697_v23, 1  ;;  %v3729_v48 = vrot.slane %v3728_v30, 1 }
0x1cb7   :  { %v3759_v37 = vsel %vm3301_vm3, %v3756_v0, %v3758_v38  ;;  %v3879_v31 = vsel %vm3831_vm14, %v3758_v38, 0.0  ;;  %v3738_v12 = vsel %vm3737_vm13, %v3637_v39, -inf  ;;  %v3760_v15 = vrot.slane %v3637_v39, 4 }
0x1cb8   :  { %v3769_v25 = vsel %vm652_vm9, %v3759_v37, 0.0  ;;  %v3871_v10 = vmax.f32 %v3870_v33, %v3741_v55  ;;  %v3739_v49 = vmax.f32 %v6691_v8, %v3738_v12  ;;  %v3798_v61 = vrot.slane %v3637_v39, 2 }
0x1cb9   :  { %v3770_v5 = vadd.f32 %v3769_v25, %v3768_v62  ;;  %v3761_v54 = vsel %vm3301_vm3, %v3758_v38, %v3760_v15  ;;  %v3781_v41 = vsel %vm3780_vm11, %v3637_v39, -inf  ;;  %v3860_v2 = vmax.f32 %v3858_v18, %v3859_v36 }
0x1cba   :  { %v3872_v47 = vrot.slane %v3871_v10, 4  ;;  %v3740_v40 = vmax.f32 %v3739_v49, %v3734_v21  ;;  %v3771_v43 = vsel %vm3658_vm1, %v3761_v54, 0.0  ;;  %v3641_v46 = vpop.f32.mrb[76].mxu0  ;;  %v3699_v52 = vmax.f32 %v3697_v23, %v3698_v20 }
0x1cbb   :  { %v3880_v60 = vadd.f32 %v3879_v31, %v3770_v5  ;;  %v3772_v24 = vadd.f32 %v3771_v43, %v3770_v5  ;;  %v3642_v33 = vadd.f32 %v6652_v11, %v3641_v46  ;;  %v3643_v50 = vpop.f32.mrb[77].mxu0  ;;  %v3907_v8 = vsel %vm3823_vm0, %v3840_v16, %v3860_v2 }
0x1cbc   :  { %v3873_v59 = vmax.f32 %v3871_v10, %v3872_v47  ;;  %v3742_v0 = vmax.f32 %v3740_v40, %v3741_v55  ;;  %v3644_v7 = vpop.f32.mrb[78].mxu0  ;;  %v6718_v4 = vsel %vm3823_vm0, %v3668_v57, %v3699_v52  ;;  %v3868_v17 = vadd.f32 %v3867_v1, %v3866_v3 }
0x1cbd   :  { %v3881_v21 = vrot.slane %v3880_v60, 4  ;;  %v3782_v13 = vsel %vm652_vm9, %v3642_v33, -inf  ;;  %v3799_v22 = vrot.slane %v3642_v33, 2  ;;  %v3645_v44 = vadd.f32 %v6652_v11, %v3644_v7  ;;  %v3646_v42 = vpop.f32.mrb[79].mxu0 }
0x1cbe   :  { %v3874_v14 = vrot.slane %v3873_v59, 2  ;;  %v3743_v26 = vrot.slane %v3742_v0, 4  ;;  %v3786_v32 = vmax.f32 %v3781_v41, %v3782_v13  ;;  %v3869_v53 = vmul.f32 0.035714287, %v3868_v17 }
0x1cbf   :  { %v3882_v6 = vadd.f32 %v3881_v21, %v3880_v60  ;;  %v3800_v16 = vsel %vm3284_vm2, %v3798_v61, %v3799_v22  ;;  %v3801_v51 = vrot.slane %v3645_v44, 2  ;;  %vm3888_vm3 = vcmask 521216  }
0x1cc0   :  { %v3875_v62 = vmax.f32 %v3873_v59, %v3874_v14  ;;  %v3744_v63 = vmax.f32 %v3742_v0, %v3743_v26  ;;  %v3910_v56 = vsel %vm3823_vm0, %v6700_v45, %v3869_v53  ;;  %v3681_v57 = vadd.f32 %v3680_v58, %v6680_v35 }
0x1cc1   :  { %v3883_v3 = vrot.slane %v3882_v6, 2  ;;  %v3802_v34 = vsel %vm3284_vm2, %v3799_v22, %v3801_v51  ;;  %v3730_v9 = vadd.f32 %v3729_v48, %v3728_v30  ;;  %v3773_v18 = vrot.slane %v3772_v24, 4 }
0x1cc2   :  { %v3876_v23 = vrot.slane %v3875_v62, 1  ;;  %v3809_v27 = vsel %vm652_vm9, %v3800_v16, 0.0  ;;  %v3810_v38 = vsel %vm652_vm9, %v3802_v34, 0.0  ;;  %v3649_v39 = vpop.f32.mrb[80].mxu0  ;;  %v3745_v28 = vrot.slane %v3744_v63, 2 }
0x1cc3   :  { %v3884_v1 = vadd.f32 %v3883_v3, %v3882_v6  ;;  %v3783_v55 = vsel %vm652_vm9, %v3645_v44, -inf  ;;  %v3811_v45 = vadd.f32 %v3810_v38, %v3809_v27  ;;  %v3650_v36 = vadd.f32 %v6652_v11, %v3649_v39  ;;  %v3651_v20 = vpop.f32.mrb[81].mxu0  ;;  %v3986_v38 = vld [vmem:[%s6885_s16] sm:$0xff]  ;;  %v3987_v39 = vld [vmem:[%s6885_s16 + $0x8] sm:$0xff] }
0x1cc4   :  { %v3652_v35 = vpop.f32.mrb[82].mxu0  ;;  %v3877_v58 = vmax.f32 %v3875_v62, %v3876_v23  ;;  %v3746_v37 = vmax.f32 %v3744_v63, %v3745_v28  ;;  %v3731_v31 = vmul.f32 0.03448276, %v3730_v9  ;;  %v3774_v30 = vadd.f32 %v3773_v18, %v3772_v24  ;;  %v3988_v28 = vld [vmem:[%s6885_s16 + $0x10] sm:$0xff]  ;;  %v3989_v20 = vld [vmem:[%s6885_s16 + $0x18] sm:$0xff] }
0x1cc5   :  { %v3785_v48 = vsel %vm3784_vm7, %v3650_v36, -inf  ;;  %v3803_v12 = vrot.slane %v3650_v36, 2  ;;  %v3889_v15 = vsel %vm3888_vm3, %v3650_v36, -inf  ;;  %v3653_v25 = vpop.f32.mrb[83].mxu0  ;;  %v3885_v10 = vrot.slane %v3884_v1, 1 }
0x1cc6   :  { %v3787_v49 = vmax.f32 %v3783_v55, %v3785_v48  ;;  %v3890_v61 = vmax.f32 %v3783_v55, %v3889_v15  ;;  %v3908_v5 = vsel %vm6962_vm8, %v3907_v8, %v3877_v58  ;;  %v3747_v54 = vrot.slane %v3746_v37, 1  ;;  %v3990_v25 = vld [vmem:[%s6885_s16 + $0x20] sm:$0xff] }
0x1cc7   :  { %v3804_v11 = vsel %vm3284_vm2, %v3801_v51, %v3803_v12  ;;  %v3814_v41 = vsel %vm3658_vm1, %v3803_v12, 0.0  ;;  %v3886_v2 = vadd.f32 %v3885_v10, %v3884_v1  ;;  %v3682_v47 = vmul.f32 0.03448276, %v3681_v57  ;;  %vm6963_vm2 = vmmov %vm6960_vm5  ;;  %v3991_v10 = vld [vmem:[%s6885_s16 + $0x28] sm:$0xff] }
0x1cc8   :  { %v3788_v40 = vmax.f32 %v3786_v32, %v3787_v49  ;;  %v3812_v43 = vsel %vm652_vm9, %v3804_v11, 0.0  ;;  %v3891_v46 = vmax.f32 %v3786_v32, %v3890_v61  ;;  %v3748_v52 = vmax.f32 %v3746_v37, %v3747_v54  ;;  %vm6964_vm1 = vmmov %vm6963_vm2 }
0x1cc9   :  { %v3813_v60 = vadd.f32 %v3812_v43, %v3811_v45  ;;  %v3887_v24 = vmul.f32 0.035714287, %v3886_v2  ;;  %v3775_v33 = vrot.slane %v3774_v30, 2  ;;  %v3828_v50 = vsel %vm3823_vm0, %v3682_v47, %v3731_v31  ;;  %vm6965_vm15 = vmmov %vm6964_vm1  ;;  %v3993_v2 = vld [vmem:[%s6885_s16 + $0x38] sm:$0xff]  ;;  %v3994_v43 = vld [vmem:[%s6885_s16 + $0x40] sm:$0xff] }
0x1cca   :  { %v3789_v59 = vrot.slane %v3788_v40, 4  ;;  %v3892_v0 = vrot.slane %v3891_v46, 4  ;;  %v3898_v8 = vsel %vm3831_vm14, %v3803_v12, 0.0  ;;  %v3825_v7 = vsel %vm6963_vm2, %v6718_v4, %v3748_v52 }
0x1ccb   :  { %v3815_v17 = vadd.f32 %v3814_v41, %v3813_v60  ;;  %v3899_v21 = vadd.f32 %v3898_v8, %v3813_v60  ;;  %v3911_v13 = vsel %vm6964_vm1, %v3910_v56, %v3887_v24  ;;  %v3776_v22 = vadd.f32 %v3775_v33, %v3774_v30  ;;  %v3992_v41 = vld [vmem:[%s6885_s16 + $0x30] sm:$0xff] }
0x1ccc   :  { %v3790_v44 = vmax.f32 %v3788_v40, %v3789_v59  ;;  %v3893_v42 = vmax.f32 %v3891_v46, %v3892_v0  ;;  %vm3826_vm14 = vcmask 1042432   ;;  %v4854_v45 = vmov 0.0|0.0   ;;  %v3995_v46 = vld [vmem:[%s6885_s16 + $0x48] sm:$0xff]  ;;  %v3996_v8 = vld [vmem:[%s6885_s16 + $0x50] sm:$0xff] }
0x1ccd   :  { %v3816_v14 = vrot.slane %v3815_v17, 4  ;;  %v3900_v26 = vrot.slane %v3899_v21, 4  ;;  %v3777_v32 = vrot.slane %v3776_v22, 1  ;;  %4484 = vmatprep.subr.bf16.mxu1 %v4854_v45  ;;  %v4485_v36 = vpack.c.bf16 %v3987_v39, %v3986_v38  ;;  %v4079_v39 = vld [vmem:[%s6887_s18] sm:$0xff] }
0x1cce   :  { %v3894_v53 = vrot.slane %v3893_v42, 2  ;;  %v3791_v6 = vrot.slane %v3790_v44, 2  ;;  %v4488_v30 = vpack.c.bf16 %v3989_v20, %v3988_v28  ;;  %v4494_v40 = vpack.c.bf16 %v3993_v2, %v3992_v41  ;;  %v4082_v20 = vld [vmem:[%s6887_s18 + $0x18] sm:$0xff] }
0x1ccf   :  { %v3901_v16 = vadd.f32 %v3900_v26, %v3899_v21  ;;  %v3778_v51 = vadd.f32 %v3777_v32, %v3776_v22  ;;  %v3817_v62 = vadd.f32 %v3816_v14, %v3815_v17  ;;  %4486 = vmatpush3.bf16.msra.mxu1 %v4485_v36  ;;  %v4497_v52 = vpack.c.bf16 %v3995_v46, %v3994_v43  ;;  %v3998_v17 = vld [vmem:[%s6885_s16 + $0x60] sm:$0xff]  ;;  %v3999_v22 = vld [vmem:[%s6885_s16 + $0x68] sm:$0xff]  ;;  %v4000_v14 = vld [vmem:[%s6885_s16 + $0x70] sm:$0xff] }
0x1cd0   :  { %v3895_v63 = vmax.f32 %v3893_v42, %v3894_v53  ;;  %v3792_v57 = vmax.f32 %v3790_v44, %v3791_v6  ;;  %4487 = vmatprep.subr.bf16.mxu1 %v4854_v45  ;;  %vm4855_vm5 = vmmov 0   ;;  %v4503_v42 = vpack.c.bf16 %v3999_v22, %v3998_v17  ;;  %v4001_v26 = vld [vmem:[%s6885_s16 + $0x78] sm:$0xff]  ;;  %v3951_v53 = vld [vmem:[%s6884_s15] sm:$0x1]  ;;  %v4081_v36 = vld [vmem:[%s6887_s18 + $0x10] sm:$0xff] }
0x1cd1   :  { %v3902_v3 = vrot.slane %v3901_v16, 2  ;;  %v3779_v34 = vmul.f32 0.03448276, %v3778_v51  ;;  %v3818_v4 = vrot.slane %v3817_v62, 2  ;;  %4458 = vmatprep.mubr.msk.f32.mxu1 %vm4855_vm5, %v6955_v29  ;;  %v4506_v32 = vpack.c.bf16 %v4001_v26, %v4000_v14 }
0x1cd2   :  { %v3896_v9 = vrot.slane %v3895_v63, 1  ;;  %v3793_v18 = vrot.slane %v3792_v57, 1  ;;  %v3952_v6 = vadd.f32 1e-05, %v3951_v53 }
0x1cd3   :  { %v3903_v56 = vadd.f32 %v3902_v3, %v3901_v16  ;;  %v3819_v23 = vadd.f32 %v3818_v4, %v3817_v62  ;;  %v3829_v27 = vsel %vm6965_vm15, %v3828_v50, %v3779_v34  ;;  %4489 = vmatpush3.bf16.msra.mxu1 %v4488_v30 }
0x1cd4   :  { %v3897_v1 = vmax.f32 %v3895_v63, %v3896_v9  ;;  %v3794_v55 = vmax.f32 %v3792_v57, %v3793_v18  ;;  %4490 = vmatprep.subr.bf16.mxu1 %v4854_v45  ;;  %4823 = vrsqrt.f32 %v3952_v6  ;;  %v4250_v57 = vld [vmem:[%s6883_s14] ss:$0 sm:$0xff] }
0x1cd5   :  { %v3904_v35 = vrot.slane %v3903_v56, 1  ;;  %v3820_v58 = vrot.slane %v3819_v23, 1 }
0x1cd6   :  { %v3909_v37 = vsel %vm3826_vm14, %v3908_v5, %v3897_v1  ;;  %v3827_v31 = vsel %vm3826_vm14, %v3825_v7, %v3794_v55  ;;  %v4491_v5 = vpack.c.bf16 %v3991_v10, %v3990_v25  ;;  %v3997_v7 = vld [vmem:[%s6885_s16 + $0x58] sm:$0xff] }
0x1cd7   :  { %3921 = vrot.lane.b32.xlu1 %v3909_v37, %s4852_s5  ;;  %3917 = vrot.lane.b32.xlu0 %v3827_v31, %s4852_s5  ;;  %v3905_v48 = vadd.f32 %v3904_v35, %v3903_v56  ;;  %v3821_v12 = vadd.f32 %v3820_v58, %v3819_v23  ;;  %v3914_v15 = vsel %vm3913_vm12, %v3827_v31, %v3909_v37  ;;  %v4251_v56 = vld [vmem:[%s6881_s12] ss:$0 sm:$0xff] }
0x1cd8   :  { %4492 = vmatpush3.bf16.msra.mxu1 %v4491_v5  ;;  %v4512_v35 = vpack.c.bf16 %v4082_v20, %v4081_v36  ;;  %v4253_v58 = vld [vmem:[%s6886_s17] ss:$0 sm:$0xff] }
0x1cd9   :  { %v3906_v49 = vmul.f32 0.035714287, %v3905_v48  ;;  %v3822_v61 = vmul.f32 0.03448276, %v3821_v12  ;;  %4493 = vmatprep.subr.bf16.mxu1 %v4854_v45 }
0x1cdb   :  { %v3912_v54 = vsel %vm3826_vm14, %v3911_v13, %v3906_v49  ;;  %v3830_v11 = vsel %vm3826_vm14, %v3829_v27, %v3822_v61  ;;  %v4500_v13 = vpack.c.bf16 %v3997_v7, %v3996_v8  ;;  %v4252_v27 = vld [vmem:[%s6966_s27] ss:$0 sm:$0xff] }
0x1cdc   :  { %3930 = vrot.lane.b32.xlu1 %v3912_v54, %s4852_s5  ;;  %3926 = vrot.lane.b32.xlu0 %v3830_v11, %s4852_s5  ;;  %v3915_v47 = vsel %vm3913_vm12, %v3830_v11, %v3912_v54 }
0x1cdd   :  { %4495 = vmatpush3.bf16.msra.mxu1 %v4494_v40 }
0x1cde   :  { %4496 = vmatprep.subr.bf16.mxu1 %v4854_v45  ;;  %v4824_v51 = vpop.eup %4823 }
0x1cdf   :  { %v3966_v34 = vrot.slane %v4824_v51, %v6950_v19  ;;  %v4080_v19 = vld [vmem:[%s6887_s18 + $0x8] sm:$0xff]  ;;  %s4825_s18 = scalar_lea.vmem %s4172_s9, 32 }
0x1ce0   :  { %3935 = vrot.lane.b32.xlu0 %v3915_v47, %s4851_s28  ;;  %v4509_v1 = vpack.c.bf16 %v4080_v19, %v4079_v39  ;;  %p4826_p0 = scmp.ne.s32.totalorder %s4172_s9, %s4825_s18  ;;  %p4831_p2 = scmp.lt.s32.totalorder %s4825_s18, %s4825_s18 }
0x1ce1   :  { %4498 = vmatpush3.bf16.msra.mxu1 %v4497_v52 }
0x1ce2   :  { %4499 = vmatprep.subr.bf16.mxu1 %v4854_v45  ;;  %p4832_p3 = por %p4831_p2, %p4830_p1 }
0x1ce4   :  { %p4833_p4 = pnand %p4832_p3, %p4826_p0 }
0x1ce5   :  { %4501 = vmatpush3.bf16.msra.mxu1 %v4500_v13 }
0x1ce6   :  { %4502 = vmatprep.subr.bf16.mxu1 %v4854_v45 }
0x1ce9   :  { %4504 = vmatpush3.bf16.msra.mxu1 %v4503_v42 }
0x1cea   :  { %4505 = vmatprep.subr.bf16.mxu1 %v4854_v45 }
0x1ced   :  { %4507 = vmatpush3.bf16.msra.mxu1 %v4506_v32 }
0x1cee   :  { %4508 = vmatprep.subr.bf16.mxu1 %v4854_v45 }
0x1d49   :  { %v3922_v60 = vpop.permute.xlu1 %3921  ;;  %v3918_v24 = vpop.permute.xlu0 %3917 }
0x1d4a   :  { %v3924_v33 = vsel %vm3913_vm12, %v3918_v24, %v3922_v60 }
0x1d4b   :  { %v3939_v50 = vrot.slane %v3924_v33, 2 }
0x1d4d   :  { %3940 = vrot.lane.b32.xlu1 %v3939_v50, %s4853_s4 }
0x1d4e   :  { %v3931_v59 = vpop.permute.xlu1 %3930  ;;  %v3927_v0 = vpop.permute.xlu0 %3926 }
0x1d4f   :  { %v3933_v21 = vsel %vm3913_vm12, %v3927_v0, %v3931_v59 }
0x1d50   :  { %v3944_v44 = vrot.slane %v3933_v21, 2 }
0x1d52   :  { %3945 = vrot.lane.b32.xlu0 %v3944_v44, %s4852_s5  ;;  %v3936_v16 = vpop.permute.xlu0 %3935 }
0x1d53   :  { %v3948_v63 = vsel %vm223_vm4, %v3914_v15, %v3936_v16 }
0x1dbf   :  { %v3941_v62 = vpop.permute.xlu1 %3940 }
0x1dc0   :  { %v3949_v3 = vsel %vm652_vm9, %v3948_v63, %v3941_v62  ;;  %vm4163_vm9 = vcmask 25600  }
0x1dc4   :  { %v3946_v4 = vpop.permute.xlu0 %3945 }
0x1dc5   :  { %v3950_v9 = vsel %vm654_vm10, %v3949_v3, %v3946_v4 }
0x1dc6   :  { %v3961_v18 = vsub.f32 %v3950_v9, %v4250_v57 }
0x1dc8   :  { %v3968_v23 = vmul.f32 %v3966_v34, %v3961_v18 }
0x1dca   :  { %v3976_v38 = vmul.f32 %v4251_v56, %v3968_v23 }
0x1dcc   :  { %v3984_v28 = vadd.f32 %v4252_v27, %v3976_v38 }
0x1dce   :  { %v3985_v55 = vmax.f32 %v3984_v28, 0.0 }
0x1dd0   :  { %4459 = vmatmul.mubr.f32.vlgmr.msra.gmra.mrb[64].mxu1 %v3985_v55 }
0x1dd1   :  { %4510 = vmatpush3.bf16.msra.mxu1 %v4509_v1  ;;  %4469 = vmatprep.mubr.msk.f32.mxu1 %vm4855_vm5, %v6955_v29  ;;  %v4254_v29 = vld [vmem:[%s6888_s19] ss:$0 sm:$0xff] }
0x1dd2   :  { %4511 = vmatprep.subr.bf16.mxu1 %v4854_v45 }
0x1dd5   :  { %4513 = vmatpush3.bf16.msra.mxu1 %v4512_v35 }
0x1ea3   :  { %v4075_v37 = vpop.f32.mrb[64].mxu1 }
0x1ea4   :  { %v4076_v31 = vadd.f32 %v4253_v58, %v4075_v37  ;;  %v4460_v30 = vpop.f32.mrb[65].mxu1 }
0x1ea6   :  { %4470 = vmatmul.mubr.msk.f32.vlgmr.msra.gmra.mrb[66].mxu1 %vm223_vm4, %v4076_v31 }
0x1f79   :  { %v4159_v45 = vpop.f32.mrb[66].mxu1 }
0x1f7a   :  { %v4160_v48 = vadd.f32 %v4254_v29, %v4159_v45  ;;  %v4471_v12 = vpop.f32.mrb[67].mxu1 }
0x1f7c   :  { %4164 = vst.msk [vmem:[#allocation4] sm:$0x3] %vm4163_vm9, %v4160_v48 }
0x1f7d   :  { %4836 = shalt.err (!%p4833_p4)
}
0x1f7e   :  { %s4837_s13 = scalar_lea.hbm %s6889_s20, 32 }
0x1f7f   :  { %p4838_p5 = scmp.ne.s32.totalorder %s6889_s20, %s4837_s13  ;;  %p4841_p6 = scmp.lt.u32.totalorder %s4837_s13, %s6889_s20 }
0x1f81   :  { %p4843_p7 = pnand %p4841_p6, %p4838_p5 }
0x1f83   :  { %4846 = shalt.err (!%p4843_p7)
}
0x1f84   :  { %4174 = dma.vmem_to_hbm [thread:$0]  %s4172_s9, 32, %s6889_s20, [#allocation5]  }
0x1f85   :  { %4847 = dma.done.wait [#allocation5], 32  }
0x1f86   :  { %4848 = vsyncadd [#allocation5], 4294967264 }
0x1f87   :  { %4178 = vsyncpa [#allocation5], 1 }

</bundles_post_ra>
